<compile_context>
chip_gen: v7x
topology: tpu7x:2x2x1
jax: 0.10.0
libtpu: 0.0.40
codegen_flags: <defaults>
</compile_context>

<pallas_src>
import jax
import jax.numpy as jnp
from jax.experimental import pallas as pl
from jax.experimental.pallas import tpu as pltpu

# ---------------- configuration (small, consistent with the module) ----------
VOCAB = 1000
HIDDEN = 768          # BERT hidden size (fixed by the module: 768)
SEQ = 8               # token sequence length
BATCH = 2
SED = 16              # sentence_embedding_dim
MFD = 16              # manual_feature_dim
FEAT = SED + MFD      # width of `manual_features` (concatenated onto bert emb)
ATT = 512             # fc1 output / attention embed_dim


# ------------------------------- kernel --------------------------------------
def essay_kernel(
    ids_ref,     # [B, S]        SMEM int32  token ids
    mask_ref,    # [B, S]        VMEM int32  attention mask
    man_ref,     # [B, FEAT]     VMEM f32    manual_features
    tok_hbm,     # [VOCAB, H]    HBM  f32    token-embedding table (pl.ANY)
    wp_ref,      # [H, H]        VMEM bf16   BERT pooler dense weight
    bp_ref,      # [1, H]        VMEM f32    BERT pooler dense bias
    w1b_ref,     # [H, ATT]      VMEM bf16   folded (fc1 bert-block @ w_vo)
    w1m_ref,     # [FEAT, ATT]   VMEM bf16   folded (fc1 manual-block @ w_vo)
    hc_ref,      # [2, ATT]      VMEM f32    row0 = folded bias, row1 = fc2 row
    b2_ref,      # [1, 1]        SMEM f32    fc2 bias
    scores_ref,  # out [B, 1]    VMEM f32
    bert_ref,    # out [B, H]    VMEM f32
    tok_buf,     # scratch [B, S, H] VMEM f32
    sem,         # scratch DMA semaphores (B*S,)
):
    f32, bf16 = jnp.float32, jnp.bfloat16
    B, S = mask_ref.shape

    # ---- fused embedding gather: DMA the B*S needed rows straight from HBM.
    copies = []
    for r in range(B * S):
        b, s = divmod(r, S)
        cp = pltpu.make_async_copy(
            tok_hbm.at[ids_ref[b, s]], tok_buf.at[b, s], sem.at[r])
        cp.start()
        copies.append(cp)
    for cp in copies:
        cp.wait()

    # ---- BERT stand-in: attention-masked mean pool, then pooler dense+tanh.
    # TODO(synk): full 12-layer pretrained BERT encoder not implemented; this
    # stand-in only reproduces the pooler (dense + tanh) stage semantics.
    m = mask_ref[...].astype(f32)                                  # [B, S]
    msum = jnp.maximum(jnp.sum(m, axis=1, keepdims=True), 1.0)     # [B, 1]
    pooled = jnp.sum(tok_buf[...] * m[:, :, None], axis=1) / msum  # [B, H] f32
    bert = jnp.tanh(
        jnp.dot(pooled.astype(bf16), wp_ref[...], preferred_element_type=f32)
        + bp_ref[...]
    )                                                              # [B, H]
    bert_ref[...] = bert

    # ---- fc1 on cat([bert, manual_features], dim=1), then the
    # MultiheadAttention(512, 1) over the length-1 sequence (softmax == 1, so
    # attn == out_proj(v_proj(.))) — the whole affine chain was folded
    # host-side into these two bf16 weights + one f32 bias row.
    attn = (
        jnp.dot(bert.astype(bf16), w1b_ref[...], preferred_element_type=f32)
        + jnp.dot(man_ref[...].astype(bf16), w1m_ref[...],
                  preferred_element_type=f32)
        + hc_ref[0:1, :]
    )                                                              # [B, ATT]

    # ---- ReLU, Dropout(0.3) eval identity, fc2 as a VPU lane reduction.
    # TODO(synk): training-mode dropout (p=0.3) not implemented; eval identity.
    x = jnp.maximum(attn, 0.0)
    scores_ref[...] = (
        jnp.sum(x * hc_ref[1:2, :], axis=-1, keepdims=True) + b2_ref[0, 0]
    )                                                              # [B, 1]


# ------------------------------- wrapper --------------------------------------
def essay_model_forward(ids, mask, manual_features, params):
    B, S = ids.shape
    H = params["tok_emb"].shape[1]

    ins = (
        ids, mask, manual_features,
        params["tok_emb"],
        params["wp"], params["bp"],
        params["w1_bert_vo"], params["w1_man_vo"],
        params["head_consts"], params["b2"],
    )
    vmem = pl.BlockSpec(memory_space=pltpu.MemorySpace.VMEM)
    smem = pl.BlockSpec(memory_space=pltpu.MemorySpace.SMEM)
    hbm = pl.BlockSpec(memory_space=pl.ANY)
    in_specs = [smem, vmem, vmem, hbm, vmem, vmem, vmem, vmem, vmem, smem]

    # NOTE: at B=2 the whole problem fits one ungridded call; if serving
    # batches grow to >=128/256 rows, switch to grid=(cdiv(B, TM),) with
    # weight index_maps returning (0, 0) so weights stay VMEM-resident, mark
    # the batch axis "parallel" (both v7x TensorCores), and emit scores
    # lane-dense ([1, B]) instead of [B, 1].
    scores, bert_emb = pl.pallas_call(
        essay_kernel,
        out_shape=(
            jax.ShapeDtypeStruct((B, 1), jnp.float32),
            jax.ShapeDtypeStruct((B, H), jnp.float32),
        ),
        in_specs=in_specs,
        out_specs=(vmem, vmem),
        scratch_shapes=[
            pltpu.VMEM((B, S, H), jnp.float32),
            pltpu.SemaphoreType.DMA((B * S,)),
        ],
    )(*ins)
    return scores, bert_emb


# ------------------------------ param init ------------------------------------
def init_params(key):
    def uniform(key, shape, fan_in):
        bound = 1.0 / (fan_in ** 0.5)
        return jax.random.uniform(key, shape, jnp.float32, -bound, bound)

    ks = jax.random.split(key, 16)
    fc1_in = HIDDEN + FEAT
    f32, bf16 = jnp.float32, jnp.bfloat16

    # fc1, kept split into the bert-embedding block and the manual-feature
    # block (two matmuls == concat + matmul).
    w1_bert = uniform(ks[3], (HIDDEN, ATT), fc1_in)
    w1_man = uniform(ks[4], (FEAT, ATT), fc1_in)
    b1 = uniform(ks[5], (1, ATT), fc1_in)

    # nn.MultiheadAttention(512, 1): sequence length is 1 so softmax == 1 and
    # q/k projections are dead; v-proj and out-proj are a pure affine map with
    # no activation between fc1 and them, so the whole chain folds into fc1.
    wv = uniform(ks[10], (ATT, ATT), ATT)
    bv = uniform(ks[11], (1, ATT), ATT)
    wo = uniform(ks[12], (ATT, ATT), ATT)
    bo = uniform(ks[13], (1, ATT), ATT)
    w_vo = wv @ wo                       # [512, 512]
    b_vo = bv @ wo + bo                  # [1, 512]

    w1_bert_vo = (w1_bert @ w_vo).astype(bf16)   # [768, 512]
    w1_man_vo = (w1_man @ w_vo).astype(bf16)     # [FEAT, 512]
    b1_vo = b1 @ w_vo + b_vo                     # [1, 512] f32

    # fc2 stored as a [1, 512] row for the in-kernel lane reduction; packed
    # with the folded bias into one [2, 512] block (one DMA descriptor).
    w2_row = uniform(ks[14], (ATT, 1), ATT).reshape(1, ATT)
    head_consts = jnp.concatenate([b1_vo, w2_row], axis=0)   # [2, 512] f32

    return {
        "tok_emb": 0.02 * jax.random.normal(ks[0], (VOCAB, HIDDEN), f32),
        # BERT pooler (weight bf16; bias f32)
        "wp": uniform(ks[1], (HIDDEN, HIDDEN), HIDDEN).astype(bf16),
        "bp": uniform(ks[2], (1, HIDDEN), HIDDEN),
        # folded fc1 + MultiheadAttention(512, 1) value/output projection
        "w1_bert_vo": w1_bert_vo,
        "w1_man_vo": w1_man_vo,
        "head_consts": head_consts,
        # fc2 bias (SMEM scalar)
        "b2": uniform(ks[15], (1, 1), ATT),
    }


# --------------------------------- main ---------------------------------------
if __name__ == "__main__":
    key = jax.random.PRNGKey(0)
    k_par, k_ids, k_man = jax.random.split(key, 3)

    params = init_params(k_par)
    ids = jax.random.randint(k_ids, (BATCH, SEQ), 0, VOCAB, dtype=jnp.int32)
    mask = jnp.ones((BATCH, SEQ), dtype=jnp.int32)
    manual_features = jax.random.normal(k_man, (BATCH, FEAT), jnp.float32)

    scores, bert_emb = jax.jit(essay_model_forward)(ids, mask, manual_features,
                                                    params)
    jax.block_until_ready((scores, bert_emb))
    assert scores.shape == (BATCH, 1) and bert_emb.shape == (BATCH, HIDDEN)
    print("KERNEL_OK")
</pallas_src>

<mosaic_0001>
module attributes {stable_mosaic.version = 11 : i64} {
  func.func @essay_kernel(%arg0: memref<2x8xi32, #tpu.memory_space<smem>>, %arg1: memref<2x8xi32, #tpu.memory_space<vmem>>, %arg2: memref<2x32xf32, #tpu.memory_space<vmem>>, %arg3: memref<1000x768xf32, #tpu.memory_space<any>>, %arg4: memref<768x768xbf16, #tpu.memory_space<vmem>>, %arg5: memref<1x768xf32, #tpu.memory_space<vmem>>, %arg6: memref<768x512xbf16, #tpu.memory_space<vmem>>, %arg7: memref<32x512xbf16, #tpu.memory_space<vmem>>, %arg8: memref<2x512xf32, #tpu.memory_space<vmem>>, %arg9: memref<1x1xf32, #tpu.memory_space<smem>>, %arg10: memref<2x1xf32, #tpu.memory_space<vmem>>, %arg11: memref<2x768xf32, #tpu.memory_space<vmem>>, %arg12: memref<2x8x768xf32, #tpu.memory_space<vmem>>, %arg13: memref<16x!tpu.dma_semaphore, #tpu.memory_space<semaphore_mem>>) attributes {dimension_semantics = [], scalar_prefetch = 0 : i64, scratch_operands = 2 : i64, tpu.core_type = #tpu.core_type<tc>} {
    %c0 = arith.constant 0 : index
    %c0_0 = arith.constant 0 : index
    %0 = memref.load %arg0[%c0, %c0_0] : memref<2x8xi32, #tpu.memory_space<smem>>
    %c0_i32 = arith.constant 0 : i32
    %c0_i32_1 = arith.constant 0 : i32
    %c0_i32_2 = arith.constant 0 : i32
    %c0_i32_3 = arith.constant 0 : i32
    %1 = tpu.memref_slice %arg3[%0, %c0_i32_3] : memref<1000x768xf32, #tpu.memory_space<any>> -> memref<1x768xf32, #tpu.memory_space<any>>
    %2 = tpu.memref_squeeze %1 : memref<1x768xf32, #tpu.memory_space<any>> -> memref<768xf32, #tpu.memory_space<any>>
    %c0_i32_4 = arith.constant 0 : i32
    %3 = tpu.memref_slice %arg12[%c0_i32, %c0_i32_1, %c0_i32_4] : memref<2x8x768xf32, #tpu.memory_space<vmem>> -> memref<1x1x768xf32, #tpu.memory_space<vmem>>
    %4 = tpu.memref_squeeze %3 : memref<1x1x768xf32, #tpu.memory_space<vmem>> -> memref<768xf32, #tpu.memory_space<vmem>>
    %5 = tpu.memref_slice %arg13[%c0_i32_2] : memref<16x!tpu.dma_semaphore, #tpu.memory_space<semaphore_mem>> -> memref<1x!tpu.dma_semaphore, #tpu.memory_space<semaphore_mem>>
    %6 = tpu.memref_squeeze %5 : memref<1x!tpu.dma_semaphore, #tpu.memory_space<semaphore_mem>> -> memref<!tpu.dma_semaphore, #tpu.memory_space<semaphore_mem>>
    tpu.enqueue_dma source(%2 : memref<768xf32, #tpu.memory_space<any>>) target(%4 : memref<768xf32, #tpu.memory_space<vmem>>) target_semaphore(%6 : memref<!tpu.dma_semaphore, #tpu.memory_space<semaphore_mem>>)
    %c0_5 = arith.constant 0 : index
    %c1 = arith.constant 1 : index
    %7 = memref.load %arg0[%c0_5, %c1] : memref<2x8xi32, #tpu.memory_space<smem>>
    %c0_i32_6 = arith.constant 0 : i32
    %c1_i32 = arith.constant 1 : i32
    %c1_i32_7 = arith.constant 1 : i32
    %c0_i32_8 = arith.constant 0 : i32
    %8 = tpu.memref_slice %arg3[%7, %c0_i32_8] : memref<1000x768xf32, #tpu.memory_space<any>> -> memref<1x768xf32, #tpu.memory_space<any>>
    %9 = tpu.memref_squeeze %8 : memref<1x768xf32, #tpu.memory_space<any>> -> memref<768xf32, #tpu.memory_space<any>>
    %c0_i32_9 = arith.constant 0 : i32
    %10 = tpu.memref_slice %arg12[%c0_i32_6, %c1_i32, %c0_i32_9] : memref<2x8x768xf32, #tpu.memory_space<vmem>> -> memref<1x1x768xf32, #tpu.memory_space<vmem>>
    %11 = tpu.memref_squeeze %10 : memref<1x1x768xf32, #tpu.memory_space<vmem>> -> memref<768xf32, #tpu.memory_space<vmem>>
    %12 = tpu.memref_slice %arg13[%c1_i32_7] : memref<16x!tpu.dma_semaphore, #tpu.memory_space<semaphore_mem>> -> memref<1x!tpu.dma_semaphore, #tpu.memory_space<semaphore_mem>>
    %13 = tpu.memref_squeeze %12 : memref<1x!tpu.dma_semaphore, #tpu.memory_space<semaphore_mem>> -> memref<!tpu.dma_semaphore, #tpu.memory_space<semaphore_mem>>
    tpu.enqueue_dma source(%9 : memref<768xf32, #tpu.memory_space<any>>) target(%11 : memref<768xf32, #tpu.memory_space<vmem>>) target_semaphore(%13 : memref<!tpu.dma_semaphore, #tpu.memory_space<semaphore_mem>>)
    %c0_10 = arith.constant 0 : index
    %c2 = arith.constant 2 : index
    %14 = memref.load %arg0[%c0_10, %c2] : memref<2x8xi32, #tpu.memory_space<smem>>
    %c0_i32_11 = arith.constant 0 : i32
    %c2_i32 = arith.constant 2 : i32
    %c2_i32_12 = arith.constant 2 : i32
    %c0_i32_13 = arith.constant 0 : i32
    %15 = tpu.memref_slice %arg3[%14, %c0_i32_13] : memref<1000x768xf32, #tpu.memory_space<any>> -> memref<1x768xf32, #tpu.memory_space<any>>
    %16 = tpu.memref_squeeze %15 : memref<1x768xf32, #tpu.memory_space<any>> -> memref<768xf32, #tpu.memory_space<any>>
    %c0_i32_14 = arith.constant 0 : i32
    %17 = tpu.memref_slice %arg12[%c0_i32_11, %c2_i32, %c0_i32_14] : memref<2x8x768xf32, #tpu.memory_space<vmem>> -> memref<1x1x768xf32, #tpu.memory_space<vmem>>
    %18 = tpu.memref_squeeze %17 : memref<1x1x768xf32, #tpu.memory_space<vmem>> -> memref<768xf32, #tpu.memory_space<vmem>>
    %19 = tpu.memref_slice %arg13[%c2_i32_12] : memref<16x!tpu.dma_semaphore, #tpu.memory_space<semaphore_mem>> -> memref<1x!tpu.dma_semaphore, #tpu.memory_space<semaphore_mem>>
    %20 = tpu.memref_squeeze %19 : memref<1x!tpu.dma_semaphore, #tpu.memory_space<semaphore_mem>> -> memref<!tpu.dma_semaphore, #tpu.memory_space<semaphore_mem>>
    tpu.enqueue_dma source(%16 : memref<768xf32, #tpu.memory_space<any>>) target(%18 : memref<768xf32, #tpu.memory_space<vmem>>) target_semaphore(%20 : memref<!tpu.dma_semaphore, #tpu.memory_space<semaphore_mem>>)
    %c0_15 = arith.constant 0 : index
    %c3 = arith.constant 3 : index
    %21 = memref.load %arg0[%c0_15, %c3] : memref<2x8xi32, #tpu.memory_space<smem>>
    %c0_i32_16 = arith.constant 0 : i32
    %c3_i32 = arith.constant 3 : i32
    %c3_i32_17 = arith.constant 3 : i32
    %c0_i32_18 = arith.constant 0 : i32
    %22 = tpu.memref_slice %arg3[%21, %c0_i32_18] : memref<1000x768xf32, #tpu.memory_space<any>> -> memref<1x768xf32, #tpu.memory_space<any>>
    %23 = tpu.memref_squeeze %22 : memref<1x768xf32, #tpu.memory_space<any>> -> memref<768xf32, #tpu.memory_space<any>>
    %c0_i32_19 = arith.constant 0 : i32
    %24 = tpu.memref_slice %arg12[%c0_i32_16, %c3_i32, %c0_i32_19] : memref<2x8x768xf32, #tpu.memory_space<vmem>> -> memref<1x1x768xf32, #tpu.memory_space<vmem>>
    %25 = tpu.memref_squeeze %24 : memref<1x1x768xf32, #tpu.memory_space<vmem>> -> memref<768xf32, #tpu.memory_space<vmem>>
    %26 = tpu.memref_slice %arg13[%c3_i32_17] : memref<16x!tpu.dma_semaphore, #tpu.memory_space<semaphore_mem>> -> memref<1x!tpu.dma_semaphore, #tpu.memory_space<semaphore_mem>>
    %27 = tpu.memref_squeeze %26 : memref<1x!tpu.dma_semaphore, #tpu.memory_space<semaphore_mem>> -> memref<!tpu.dma_semaphore, #tpu.memory_space<semaphore_mem>>
    tpu.enqueue_dma source(%23 : memref<768xf32, #tpu.memory_space<any>>) target(%25 : memref<768xf32, #tpu.memory_space<vmem>>) target_semaphore(%27 : memref<!tpu.dma_semaphore, #tpu.memory_space<semaphore_mem>>)
    %c0_20 = arith.constant 0 : index
    %c4 = arith.constant 4 : index
    %28 = memref.load %arg0[%c0_20, %c4] : memref<2x8xi32, #tpu.memory_space<smem>>
    %c0_i32_21 = arith.constant 0 : i32
    %c4_i32 = arith.constant 4 : i32
    %c4_i32_22 = arith.constant 4 : i32
    %c0_i32_23 = arith.constant 0 : i32
    %29 = tpu.memref_slice %arg3[%28, %c0_i32_23] : memref<1000x768xf32, #tpu.memory_space<any>> -> memref<1x768xf32, #tpu.memory_space<any>>
    %30 = tpu.memref_squeeze %29 : memref<1x768xf32, #tpu.memory_space<any>> -> memref<768xf32, #tpu.memory_space<any>>
    %c0_i32_24 = arith.constant 0 : i32
    %31 = tpu.memref_slice %arg12[%c0_i32_21, %c4_i32, %c0_i32_24] : memref<2x8x768xf32, #tpu.memory_space<vmem>> -> memref<1x1x768xf32, #tpu.memory_space<vmem>>
    %32 = tpu.memref_squeeze %31 : memref<1x1x768xf32, #tpu.memory_space<vmem>> -> memref<768xf32, #tpu.memory_space<vmem>>
    %33 = tpu.memref_slice %arg13[%c4_i32_22] : memref<16x!tpu.dma_semaphore, #tpu.memory_space<semaphore_mem>> -> memref<1x!tpu.dma_semaphore, #tpu.memory_space<semaphore_mem>>
    %34 = tpu.memref_squeeze %33 : memref<1x!tpu.dma_semaphore, #tpu.memory_space<semaphore_mem>> -> memref<!tpu.dma_semaphore, #tpu.memory_space<semaphore_mem>>
    tpu.enqueue_dma source(%30 : memref<768xf32, #tpu.memory_space<any>>) target(%32 : memref<768xf32, #tpu.memory_space<vmem>>) target_semaphore(%34 : memref<!tpu.dma_semaphore, #tpu.memory_space<semaphore_mem>>)
    %c0_25 = arith.constant 0 : index
    %c5 = arith.constant 5 : index
    %35 = memref.load %arg0[%c0_25, %c5] : memref<2x8xi32, #tpu.memory_space<smem>>
    %c0_i32_26 = arith.constant 0 : i32
    %c5_i32 = arith.constant 5 : i32
    %c5_i32_27 = arith.constant 5 : i32
    %c0_i32_28 = arith.constant 0 : i32
    %36 = tpu.memref_slice %arg3[%35, %c0_i32_28] : memref<1000x768xf32, #tpu.memory_space<any>> -> memref<1x768xf32, #tpu.memory_space<any>>
    %37 = tpu.memref_squeeze %36 : memref<1x768xf32, #tpu.memory_space<any>> -> memref<768xf32, #tpu.memory_space<any>>
    %c0_i32_29 = arith.constant 0 : i32
    %38 = tpu.memref_slice %arg12[%c0_i32_26, %c5_i32, %c0_i32_29] : memref<2x8x768xf32, #tpu.memory_space<vmem>> -> memref<1x1x768xf32, #tpu.memory_space<vmem>>
    %39 = tpu.memref_squeeze %38 : memref<1x1x768xf32, #tpu.memory_space<vmem>> -> memref<768xf32, #tpu.memory_space<vmem>>
    %40 = tpu.memref_slice %arg13[%c5_i32_27] : memref<16x!tpu.dma_semaphore, #tpu.memory_space<semaphore_mem>> -> memref<1x!tpu.dma_semaphore, #tpu.memory_space<semaphore_mem>>
    %41 = tpu.memref_squeeze %40 : memref<1x!tpu.dma_semaphore, #tpu.memory_space<semaphore_mem>> -> memref<!tpu.dma_semaphore, #tpu.memory_space<semaphore_mem>>
    tpu.enqueue_dma source(%37 : memref<768xf32, #tpu.memory_space<any>>) target(%39 : memref<768xf32, #tpu.memory_space<vmem>>) target_semaphore(%41 : memref<!tpu.dma_semaphore, #tpu.memory_space<semaphore_mem>>)
    %c0_30 = arith.constant 0 : index
    %c6 = arith.constant 6 : index
    %42 = memref.load %arg0[%c0_30, %c6] : memref<2x8xi32, #tpu.memory_space<smem>>
    %c0_i32_31 = arith.constant 0 : i32
    %c6_i32 = arith.constant 6 : i32
    %c6_i32_32 = arith.constant 6 : i32
    %c0_i32_33 = arith.constant 0 : i32
    %43 = tpu.memref_slice %arg3[%42, %c0_i32_33] : memref<1000x768xf32, #tpu.memory_space<any>> -> memref<1x768xf32, #tpu.memory_space<any>>
    %44 = tpu.memref_squeeze %43 : memref<1x768xf32, #tpu.memory_space<any>> -> memref<768xf32, #tpu.memory_space<any>>
    %c0_i32_34 = arith.constant 0 : i32
    %45 = tpu.memref_slice %arg12[%c0_i32_31, %c6_i32, %c0_i32_34] : memref<2x8x768xf32, #tpu.memory_space<vmem>> -> memref<1x1x768xf32, #tpu.memory_space<vmem>>
    %46 = tpu.memref_squeeze %45 : memref<1x1x768xf32, #tpu.memory_space<vmem>> -> memref<768xf32, #tpu.memory_space<vmem>>
    %47 = tpu.memref_slice %arg13[%c6_i32_32] : memref<16x!tpu.dma_semaphore, #tpu.memory_space<semaphore_mem>> -> memref<1x!tpu.dma_semaphore, #tpu.memory_space<semaphore_mem>>
    %48 = tpu.memref_squeeze %47 : memref<1x!tpu.dma_semaphore, #tpu.memory_space<semaphore_mem>> -> memref<!tpu.dma_semaphore, #tpu.memory_space<semaphore_mem>>
    tpu.enqueue_dma source(%44 : memref<768xf32, #tpu.memory_space<any>>) target(%46 : memref<768xf32, #tpu.memory_space<vmem>>) target_semaphore(%48 : memref<!tpu.dma_semaphore, #tpu.memory_space<semaphore_mem>>)
    %c0_35 = arith.constant 0 : index
    %c7 = arith.constant 7 : index
    %49 = memref.load %arg0[%c0_35, %c7] : memref<2x8xi32, #tpu.memory_space<smem>>
    %c0_i32_36 = arith.constant 0 : i32
    %c7_i32 = arith.constant 7 : i32
    %c7_i32_37 = arith.constant 7 : i32
    %c0_i32_38 = arith.constant 0 : i32
    %50 = tpu.memref_slice %arg3[%49, %c0_i32_38] : memref<1000x768xf32, #tpu.memory_space<any>> -> memref<1x768xf32, #tpu.memory_space<any>>
    %51 = tpu.memref_squeeze %50 : memref<1x768xf32, #tpu.memory_space<any>> -> memref<768xf32, #tpu.memory_space<any>>
    %c0_i32_39 = arith.constant 0 : i32
    %52 = tpu.memref_slice %arg12[%c0_i32_36, %c7_i32, %c0_i32_39] : memref<2x8x768xf32, #tpu.memory_space<vmem>> -> memref<1x1x768xf32, #tpu.memory_space<vmem>>
    %53 = tpu.memref_squeeze %52 : memref<1x1x768xf32, #tpu.memory_space<vmem>> -> memref<768xf32, #tpu.memory_space<vmem>>
    %54 = tpu.memref_slice %arg13[%c7_i32_37] : memref<16x!tpu.dma_semaphore, #tpu.memory_space<semaphore_mem>> -> memref<1x!tpu.dma_semaphore, #tpu.memory_space<semaphore_mem>>
    %55 = tpu.memref_squeeze %54 : memref<1x!tpu.dma_semaphore, #tpu.memory_space<semaphore_mem>> -> memref<!tpu.dma_semaphore, #tpu.memory_space<semaphore_mem>>
    tpu.enqueue_dma source(%51 : memref<768xf32, #tpu.memory_space<any>>) target(%53 : memref<768xf32, #tpu.memory_space<vmem>>) target_semaphore(%55 : memref<!tpu.dma_semaphore, #tpu.memory_space<semaphore_mem>>)
    %c1_40 = arith.constant 1 : index
    %c0_41 = arith.constant 0 : index
    %56 = memref.load %arg0[%c1_40, %c0_41] : memref<2x8xi32, #tpu.memory_space<smem>>
    %c1_i32_42 = arith.constant 1 : i32
    %c0_i32_43 = arith.constant 0 : i32
    %c8_i32 = arith.constant 8 : i32
    %c0_i32_44 = arith.constant 0 : i32
    %57 = tpu.memref_slice %arg3[%56, %c0_i32_44] : memref<1000x768xf32, #tpu.memory_space<any>> -> memref<1x768xf32, #tpu.memory_space<any>>
    %58 = tpu.memref_squeeze %57 : memref<1x768xf32, #tpu.memory_space<any>> -> memref<768xf32, #tpu.memory_space<any>>
    %c0_i32_45 = arith.constant 0 : i32
    %59 = tpu.memref_slice %arg12[%c1_i32_42, %c0_i32_43, %c0_i32_45] : memref<2x8x768xf32, #tpu.memory_space<vmem>> -> memref<1x1x768xf32, #tpu.memory_space<vmem>>
    %60 = tpu.memref_squeeze %59 : memref<1x1x768xf32, #tpu.memory_space<vmem>> -> memref<768xf32, #tpu.memory_space<vmem>>
    %61 = tpu.memref_slice %arg13[%c8_i32] : memref<16x!tpu.dma_semaphore, #tpu.memory_space<semaphore_mem>> -> memref<1x!tpu.dma_semaphore, #tpu.memory_space<semaphore_mem>>
    %62 = tpu.memref_squeeze %61 : memref<1x!tpu.dma_semaphore, #tpu.memory_space<semaphore_mem>> -> memref<!tpu.dma_semaphore, #tpu.memory_space<semaphore_mem>>
    tpu.enqueue_dma source(%58 : memref<768xf32, #tpu.memory_space<any>>) target(%60 : memref<768xf32, #tpu.memory_space<vmem>>) target_semaphore(%62 : memref<!tpu.dma_semaphore, #tpu.memory_space<semaphore_mem>>)
    %c1_46 = arith.constant 1 : index
    %c1_47 = arith.constant 1 : index
    %63 = memref.load %arg0[%c1_46, %c1_47] : memref<2x8xi32, #tpu.memory_space<smem>>
    %c1_i32_48 = arith.constant 1 : i32
    %c1_i32_49 = arith.constant 1 : i32
    %c9_i32 = arith.constant 9 : i32
    %c0_i32_50 = arith.constant 0 : i32
    %64 = tpu.memref_slice %arg3[%63, %c0_i32_50] : memref<1000x768xf32, #tpu.memory_space<any>> -> memref<1x768xf32, #tpu.memory_space<any>>
    %65 = tpu.memref_squeeze %64 : memref<1x768xf32, #tpu.memory_space<any>> -> memref<768xf32, #tpu.memory_space<any>>
    %c0_i32_51 = arith.constant 0 : i32
    %66 = tpu.memref_slice %arg12[%c1_i32_48, %c1_i32_49, %c0_i32_51] : memref<2x8x768xf32, #tpu.memory_space<vmem>> -> memref<1x1x768xf32, #tpu.memory_space<vmem>>
    %67 = tpu.memref_squeeze %66 : memref<1x1x768xf32, #tpu.memory_space<vmem>> -> memref<768xf32, #tpu.memory_space<vmem>>
    %68 = tpu.memref_slice %arg13[%c9_i32] : memref<16x!tpu.dma_semaphore, #tpu.memory_space<semaphore_mem>> -> memref<1x!tpu.dma_semaphore, #tpu.memory_space<semaphore_mem>>
    %69 = tpu.memref_squeeze %68 : memref<1x!tpu.dma_semaphore, #tpu.memory_space<semaphore_mem>> -> memref<!tpu.dma_semaphore, #tpu.memory_space<semaphore_mem>>
    tpu.enqueue_dma source(%65 : memref<768xf32, #tpu.memory_space<any>>) target(%67 : memref<768xf32, #tpu.memory_space<vmem>>) target_semaphore(%69 : memref<!tpu.dma_semaphore, #tpu.memory_space<semaphore_mem>>)
    %c1_52 = arith.constant 1 : index
    %c2_53 = arith.constant 2 : index
    %70 = memref.load %arg0[%c1_52, %c2_53] : memref<2x8xi32, #tpu.memory_space<smem>>
    %c1_i32_54 = arith.constant 1 : i32
    %c2_i32_55 = arith.constant 2 : i32
    %c10_i32 = arith.constant 10 : i32
    %c0_i32_56 = arith.constant 0 : i32
    %71 = tpu.memref_slice %arg3[%70, %c0_i32_56] : memref<1000x768xf32, #tpu.memory_space<any>> -> memref<1x768xf32, #tpu.memory_space<any>>
    %72 = tpu.memref_squeeze %71 : memref<1x768xf32, #tpu.memory_space<any>> -> memref<768xf32, #tpu.memory_space<any>>
    %c0_i32_57 = arith.constant 0 : i32
    %73 = tpu.memref_slice %arg12[%c1_i32_54, %c2_i32_55, %c0_i32_57] : memref<2x8x768xf32, #tpu.memory_space<vmem>> -> memref<1x1x768xf32, #tpu.memory_space<vmem>>
    %74 = tpu.memref_squeeze %73 : memref<1x1x768xf32, #tpu.memory_space<vmem>> -> memref<768xf32, #tpu.memory_space<vmem>>
    %75 = tpu.memref_slice %arg13[%c10_i32] : memref<16x!tpu.dma_semaphore, #tpu.memory_space<semaphore_mem>> -> memref<1x!tpu.dma_semaphore, #tpu.memory_space<semaphore_mem>>
    %76 = tpu.memref_squeeze %75 : memref<1x!tpu.dma_semaphore, #tpu.memory_space<semaphore_mem>> -> memref<!tpu.dma_semaphore, #tpu.memory_space<semaphore_mem>>
    tpu.enqueue_dma source(%72 : memref<768xf32, #tpu.memory_space<any>>) target(%74 : memref<768xf32, #tpu.memory_space<vmem>>) target_semaphore(%76 : memref<!tpu.dma_semaphore, #tpu.memory_space<semaphore_mem>>)
    %c1_58 = arith.constant 1 : index
    %c3_59 = arith.constant 3 : index
    %77 = memref.load %arg0[%c1_58, %c3_59] : memref<2x8xi32, #tpu.memory_space<smem>>
    %c1_i32_60 = arith.constant 1 : i32
    %c3_i32_61 = arith.constant 3 : i32
    %c11_i32 = arith.constant 11 : i32
    %c0_i32_62 = arith.constant 0 : i32
    %78 = tpu.memref_slice %arg3[%77, %c0_i32_62] : memref<1000x768xf32, #tpu.memory_space<any>> -> memref<1x768xf32, #tpu.memory_space<any>>
    %79 = tpu.memref_squeeze %78 : memref<1x768xf32, #tpu.memory_space<any>> -> memref<768xf32, #tpu.memory_space<any>>
    %c0_i32_63 = arith.constant 0 : i32
    %80 = tpu.memref_slice %arg12[%c1_i32_60, %c3_i32_61, %c0_i32_63] : memref<2x8x768xf32, #tpu.memory_space<vmem>> -> memref<1x1x768xf32, #tpu.memory_space<vmem>>
    %81 = tpu.memref_squeeze %80 : memref<1x1x768xf32, #tpu.memory_space<vmem>> -> memref<768xf32, #tpu.memory_space<vmem>>
    %82 = tpu.memref_slice %arg13[%c11_i32] : memref<16x!tpu.dma_semaphore, #tpu.memory_space<semaphore_mem>> -> memref<1x!tpu.dma_semaphore, #tpu.memory_space<semaphore_mem>>
    %83 = tpu.memref_squeeze %82 : memref<1x!tpu.dma_semaphore, #tpu.memory_space<semaphore_mem>> -> memref<!tpu.dma_semaphore, #tpu.memory_space<semaphore_mem>>
    tpu.enqueue_dma source(%79 : memref<768xf32, #tpu.memory_space<any>>) target(%81 : memref<768xf32, #tpu.memory_space<vmem>>) target_semaphore(%83 : memref<!tpu.dma_semaphore, #tpu.memory_space<semaphore_mem>>)
    %c1_64 = arith.constant 1 : index
    %c4_65 = arith.constant 4 : index
    %84 = memref.load %arg0[%c1_64, %c4_65] : memref<2x8xi32, #tpu.memory_space<smem>>
    %c1_i32_66 = arith.constant 1 : i32
    %c4_i32_67 = arith.constant 4 : i32
    %c12_i32 = arith.constant 12 : i32
    %c0_i32_68 = arith.constant 0 : i32
    %85 = tpu.memref_slice %arg3[%84, %c0_i32_68] : memref<1000x768xf32, #tpu.memory_space<any>> -> memref<1x768xf32, #tpu.memory_space<any>>
    %86 = tpu.memref_squeeze %85 : memref<1x768xf32, #tpu.memory_space<any>> -> memref<768xf32, #tpu.memory_space<any>>
    %c0_i32_69 = arith.constant 0 : i32
    %87 = tpu.memref_slice %arg12[%c1_i32_66, %c4_i32_67, %c0_i32_69] : memref<2x8x768xf32, #tpu.memory_space<vmem>> -> memref<1x1x768xf32, #tpu.memory_space<vmem>>
    %88 = tpu.memref_squeeze %87 : memref<1x1x768xf32, #tpu.memory_space<vmem>> -> memref<768xf32, #tpu.memory_space<vmem>>
    %89 = tpu.memref_slice %arg13[%c12_i32] : memref<16x!tpu.dma_semaphore, #tpu.memory_space<semaphore_mem>> -> memref<1x!tpu.dma_semaphore, #tpu.memory_space<semaphore_mem>>
    %90 = tpu.memref_squeeze %89 : memref<1x!tpu.dma_semaphore, #tpu.memory_space<semaphore_mem>> -> memref<!tpu.dma_semaphore, #tpu.memory_space<semaphore_mem>>
    tpu.enqueue_dma source(%86 : memref<768xf32, #tpu.memory_space<any>>) target(%88 : memref<768xf32, #tpu.memory_space<vmem>>) target_semaphore(%90 : memref<!tpu.dma_semaphore, #tpu.memory_space<semaphore_mem>>)
    %c1_70 = arith.constant 1 : index
    %c5_71 = arith.constant 5 : index
    %91 = memref.load %arg0[%c1_70, %c5_71] : memref<2x8xi32, #tpu.memory_space<smem>>
    %c1_i32_72 = arith.constant 1 : i32
    %c5_i32_73 = arith.constant 5 : i32
    %c13_i32 = arith.constant 13 : i32
    %c0_i32_74 = arith.constant 0 : i32
    %92 = tpu.memref_slice %arg3[%91, %c0_i32_74] : memref<1000x768xf32, #tpu.memory_space<any>> -> memref<1x768xf32, #tpu.memory_space<any>>
    %93 = tpu.memref_squeeze %92 : memref<1x768xf32, #tpu.memory_space<any>> -> memref<768xf32, #tpu.memory_space<any>>
    %c0_i32_75 = arith.constant 0 : i32
    %94 = tpu.memref_slice %arg12[%c1_i32_72, %c5_i32_73, %c0_i32_75] : memref<2x8x768xf32, #tpu.memory_space<vmem>> -> memref<1x1x768xf32, #tpu.memory_space<vmem>>
    %95 = tpu.memref_squeeze %94 : memref<1x1x768xf32, #tpu.memory_space<vmem>> -> memref<768xf32, #tpu.memory_space<vmem>>
    %96 = tpu.memref_slice %arg13[%c13_i32] : memref<16x!tpu.dma_semaphore, #tpu.memory_space<semaphore_mem>> -> memref<1x!tpu.dma_semaphore, #tpu.memory_space<semaphore_mem>>
    %97 = tpu.memref_squeeze %96 : memref<1x!tpu.dma_semaphore, #tpu.memory_space<semaphore_mem>> -> memref<!tpu.dma_semaphore, #tpu.memory_space<semaphore_mem>>
    tpu.enqueue_dma source(%93 : memref<768xf32, #tpu.memory_space<any>>) target(%95 : memref<768xf32, #tpu.memory_space<vmem>>) target_semaphore(%97 : memref<!tpu.dma_semaphore, #tpu.memory_space<semaphore_mem>>)
    %c1_76 = arith.constant 1 : index
    %c6_77 = arith.constant 6 : index
    %98 = memref.load %arg0[%c1_76, %c6_77] : memref<2x8xi32, #tpu.memory_space<smem>>
    %c1_i32_78 = arith.constant 1 : i32
    %c6_i32_79 = arith.constant 6 : i32
    %c14_i32 = arith.constant 14 : i32
    %c0_i32_80 = arith.constant 0 : i32
    %99 = tpu.memref_slice %arg3[%98, %c0_i32_80] : memref<1000x768xf32, #tpu.memory_space<any>> -> memref<1x768xf32, #tpu.memory_space<any>>
    %100 = tpu.memref_squeeze %99 : memref<1x768xf32, #tpu.memory_space<any>> -> memref<768xf32, #tpu.memory_space<any>>
    %c0_i32_81 = arith.constant 0 : i32
    %101 = tpu.memref_slice %arg12[%c1_i32_78, %c6_i32_79, %c0_i32_81] : memref<2x8x768xf32, #tpu.memory_space<vmem>> -> memref<1x1x768xf32, #tpu.memory_space<vmem>>
    %102 = tpu.memref_squeeze %101 : memref<1x1x768xf32, #tpu.memory_space<vmem>> -> memref<768xf32, #tpu.memory_space<vmem>>
    %103 = tpu.memref_slice %arg13[%c14_i32] : memref<16x!tpu.dma_semaphore, #tpu.memory_space<semaphore_mem>> -> memref<1x!tpu.dma_semaphore, #tpu.memory_space<semaphore_mem>>
    %104 = tpu.memref_squeeze %103 : memref<1x!tpu.dma_semaphore, #tpu.memory_space<semaphore_mem>> -> memref<!tpu.dma_semaphore, #tpu.memory_space<semaphore_mem>>
    tpu.enqueue_dma source(%100 : memref<768xf32, #tpu.memory_space<any>>) target(%102 : memref<768xf32, #tpu.memory_space<vmem>>) target_semaphore(%104 : memref<!tpu.dma_semaphore, #tpu.memory_space<semaphore_mem>>)
    %c1_82 = arith.constant 1 : index
    %c7_83 = arith.constant 7 : index
    %105 = memref.load %arg0[%c1_82, %c7_83] : memref<2x8xi32, #tpu.memory_space<smem>>
    %c1_i32_84 = arith.constant 1 : i32
    %c7_i32_85 = arith.constant 7 : i32
    %c15_i32 = arith.constant 15 : i32
    %c0_i32_86 = arith.constant 0 : i32
    %106 = tpu.memref_slice %arg3[%105, %c0_i32_86] : memref<1000x768xf32, #tpu.memory_space<any>> -> memref<1x768xf32, #tpu.memory_space<any>>
    %107 = tpu.memref_squeeze %106 : memref<1x768xf32, #tpu.memory_space<any>> -> memref<768xf32, #tpu.memory_space<any>>
    %c0_i32_87 = arith.constant 0 : i32
    %108 = tpu.memref_slice %arg12[%c1_i32_84, %c7_i32_85, %c0_i32_87] : memref<2x8x768xf32, #tpu.memory_space<vmem>> -> memref<1x1x768xf32, #tpu.memory_space<vmem>>
    %109 = tpu.memref_squeeze %108 : memref<1x1x768xf32, #tpu.memory_space<vmem>> -> memref<768xf32, #tpu.memory_space<vmem>>
    %110 = tpu.memref_slice %arg13[%c15_i32] : memref<16x!tpu.dma_semaphore, #tpu.memory_space<semaphore_mem>> -> memref<1x!tpu.dma_semaphore, #tpu.memory_space<semaphore_mem>>
    %111 = tpu.memref_squeeze %110 : memref<1x!tpu.dma_semaphore, #tpu.memory_space<semaphore_mem>> -> memref<!tpu.dma_semaphore, #tpu.memory_space<semaphore_mem>>
    tpu.enqueue_dma source(%107 : memref<768xf32, #tpu.memory_space<any>>) target(%109 : memref<768xf32, #tpu.memory_space<vmem>>) target_semaphore(%111 : memref<!tpu.dma_semaphore, #tpu.memory_space<semaphore_mem>>)
    %c0_i32_88 = arith.constant 0 : i32
    %c0_i32_89 = arith.constant 0 : i32
    %c0_i32_90 = arith.constant 0 : i32
    %c0_i32_91 = arith.constant 0 : i32
    %112 = tpu.memref_slice %arg3[%0, %c0_i32_91] : memref<1000x768xf32, #tpu.memory_space<any>> -> memref<1x768xf32, #tpu.memory_space<any>>
    %113 = tpu.memref_squeeze %112 : memref<1x768xf32, #tpu.memory_space<any>> -> memref<768xf32, #tpu.memory_space<any>>
    %c0_i32_92 = arith.constant 0 : i32
    %114 = tpu.memref_slice %arg12[%c0_i32_88, %c0_i32_89, %c0_i32_92] : memref<2x8x768xf32, #tpu.memory_space<vmem>> -> memref<1x1x768xf32, #tpu.memory_space<vmem>>
    %115 = tpu.memref_squeeze %114 : memref<1x1x768xf32, #tpu.memory_space<vmem>> -> memref<768xf32, #tpu.memory_space<vmem>>
    %116 = tpu.memref_slice %arg13[%c0_i32_90] : memref<16x!tpu.dma_semaphore, #tpu.memory_space<semaphore_mem>> -> memref<1x!tpu.dma_semaphore, #tpu.memory_space<semaphore_mem>>
    %117 = tpu.memref_squeeze %116 : memref<1x!tpu.dma_semaphore, #tpu.memory_space<semaphore_mem>> -> memref<!tpu.dma_semaphore, #tpu.memory_space<semaphore_mem>>
    tpu.wait_dma2 semaphore(%117 : memref<!tpu.dma_semaphore, #tpu.memory_space<semaphore_mem>>) src(%113 : memref<768xf32, #tpu.memory_space<any>>) dst(%115 : memref<768xf32, #tpu.memory_space<vmem>>)
    %c0_i32_93 = arith.constant 0 : i32
    %c1_i32_94 = arith.constant 1 : i32
    %c1_i32_95 = arith.constant 1 : i32
    %c0_i32_96 = arith.constant 0 : i32
    %118 = tpu.memref_slice %arg3[%7, %c0_i32_96] : memref<1000x768xf32, #tpu.memory_space<any>> -> memref<1x768xf32, #tpu.memory_space<any>>
    %119 = tpu.memref_squeeze %118 : memref<1x768xf32, #tpu.memory_space<any>> -> memref<768xf32, #tpu.memory_space<any>>
    %c0_i32_97 = arith.constant 0 : i32
    %120 = tpu.memref_slice %arg12[%c0_i32_93, %c1_i32_94, %c0_i32_97] : memref<2x8x768xf32, #tpu.memory_space<vmem>> -> memref<1x1x768xf32, #tpu.memory_space<vmem>>
    %121 = tpu.memref_squeeze %120 : memref<1x1x768xf32, #tpu.memory_space<vmem>> -> memref<768xf32, #tpu.memory_space<vmem>>
    %122 = tpu.memref_slice %arg13[%c1_i32_95] : memref<16x!tpu.dma_semaphore, #tpu.memory_space<semaphore_mem>> -> memref<1x!tpu.dma_semaphore, #tpu.memory_space<semaphore_mem>>
    %123 = tpu.memref_squeeze %122 : memref<1x!tpu.dma_semaphore, #tpu.memory_space<semaphore_mem>> -> memref<!tpu.dma_semaphore, #tpu.memory_space<semaphore_mem>>
    tpu.wait_dma2 semaphore(%123 : memref<!tpu.dma_semaphore, #tpu.memory_space<semaphore_mem>>) src(%119 : memref<768xf32, #tpu.memory_space<any>>) dst(%121 : memref<768xf32, #tpu.memory_space<vmem>>)
    %c0_i32_98 = arith.constant 0 : i32
    %c2_i32_99 = arith.constant 2 : i32
    %c2_i32_100 = arith.constant 2 : i32
    %c0_i32_101 = arith.constant 0 : i32
    %124 = tpu.memref_slice %arg3[%14, %c0_i32_101] : memref<1000x768xf32, #tpu.memory_space<any>> -> memref<1x768xf32, #tpu.memory_space<any>>
    %125 = tpu.memref_squeeze %124 : memref<1x768xf32, #tpu.memory_space<any>> -> memref<768xf32, #tpu.memory_space<any>>
    %c0_i32_102 = arith.constant 0 : i32
    %126 = tpu.memref_slice %arg12[%c0_i32_98, %c2_i32_99, %c0_i32_102] : memref<2x8x768xf32, #tpu.memory_space<vmem>> -> memref<1x1x768xf32, #tpu.memory_space<vmem>>
    %127 = tpu.memref_squeeze %126 : memref<1x1x768xf32, #tpu.memory_space<vmem>> -> memref<768xf32, #tpu.memory_space<vmem>>
    %128 = tpu.memref_slice %arg13[%c2_i32_100] : memref<16x!tpu.dma_semaphore, #tpu.memory_space<semaphore_mem>> -> memref<1x!tpu.dma_semaphore, #tpu.memory_space<semaphore_mem>>
    %129 = tpu.memref_squeeze %128 : memref<1x!tpu.dma_semaphore, #tpu.memory_space<semaphore_mem>> -> memref<!tpu.dma_semaphore, #tpu.memory_space<semaphore_mem>>
    tpu.wait_dma2 semaphore(%129 : memref<!tpu.dma_semaphore, #tpu.memory_space<semaphore_mem>>) src(%125 : memref<768xf32, #tpu.memory_space<any>>) dst(%127 : memref<768xf32, #tpu.memory_space<vmem>>)
    %c0_i32_103 = arith.constant 0 : i32
    %c3_i32_104 = arith.constant 3 : i32
    %c3_i32_105 = arith.constant 3 : i32
    %c0_i32_106 = arith.constant 0 : i32
    %130 = tpu.memref_slice %arg3[%21, %c0_i32_106] : memref<1000x768xf32, #tpu.memory_space<any>> -> memref<1x768xf32, #tpu.memory_space<any>>
    %131 = tpu.memref_squeeze %130 : memref<1x768xf32, #tpu.memory_space<any>> -> memref<768xf32, #tpu.memory_space<any>>
    %c0_i32_107 = arith.constant 0 : i32
    %132 = tpu.memref_slice %arg12[%c0_i32_103, %c3_i32_104, %c0_i32_107] : memref<2x8x768xf32, #tpu.memory_space<vmem>> -> memref<1x1x768xf32, #tpu.memory_space<vmem>>
    %133 = tpu.memref_squeeze %132 : memref<1x1x768xf32, #tpu.memory_space<vmem>> -> memref<768xf32, #tpu.memory_space<vmem>>
    %134 = tpu.memref_slice %arg13[%c3_i32_105] : memref<16x!tpu.dma_semaphore, #tpu.memory_space<semaphore_mem>> -> memref<1x!tpu.dma_semaphore, #tpu.memory_space<semaphore_mem>>
    %135 = tpu.memref_squeeze %134 : memref<1x!tpu.dma_semaphore, #tpu.memory_space<semaphore_mem>> -> memref<!tpu.dma_semaphore, #tpu.memory_space<semaphore_mem>>
    tpu.wait_dma2 semaphore(%135 : memref<!tpu.dma_semaphore, #tpu.memory_space<semaphore_mem>>) src(%131 : memref<768xf32, #tpu.memory_space<any>>) dst(%133 : memref<768xf32, #tpu.memory_space<vmem>>)
    %c0_i32_108 = arith.constant 0 : i32
    %c4_i32_109 = arith.constant 4 : i32
    %c4_i32_110 = arith.constant 4 : i32
    %c0_i32_111 = arith.constant 0 : i32
    %136 = tpu.memref_slice %arg3[%28, %c0_i32_111] : memref<1000x768xf32, #tpu.memory_space<any>> -> memref<1x768xf32, #tpu.memory_space<any>>
    %137 = tpu.memref_squeeze %136 : memref<1x768xf32, #tpu.memory_space<any>> -> memref<768xf32, #tpu.memory_space<any>>
    %c0_i32_112 = arith.constant 0 : i32
    %138 = tpu.memref_slice %arg12[%c0_i32_108, %c4_i32_109, %c0_i32_112] : memref<2x8x768xf32, #tpu.memory_space<vmem>> -> memref<1x1x768xf32, #tpu.memory_space<vmem>>
    %139 = tpu.memref_squeeze %138 : memref<1x1x768xf32, #tpu.memory_space<vmem>> -> memref<768xf32, #tpu.memory_space<vmem>>
    %140 = tpu.memref_slice %arg13[%c4_i32_110] : memref<16x!tpu.dma_semaphore, #tpu.memory_space<semaphore_mem>> -> memref<1x!tpu.dma_semaphore, #tpu.memory_space<semaphore_mem>>
    %141 = tpu.memref_squeeze %140 : memref<1x!tpu.dma_semaphore, #tpu.memory_space<semaphore_mem>> -> memref<!tpu.dma_semaphore, #tpu.memory_space<semaphore_mem>>
    tpu.wait_dma2 semaphore(%141 : memref<!tpu.dma_semaphore, #tpu.memory_space<semaphore_mem>>) src(%137 : memref<768xf32, #tpu.memory_space<any>>) dst(%139 : memref<768xf32, #tpu.memory_space<vmem>>)
    %c0_i32_113 = arith.constant 0 : i32
    %c5_i32_114 = arith.constant 5 : i32
    %c5_i32_115 = arith.constant 5 : i32
    %c0_i32_116 = arith.constant 0 : i32
    %142 = tpu.memref_slice %arg3[%35, %c0_i32_116] : memref<1000x768xf32, #tpu.memory_space<any>> -> memref<1x768xf32, #tpu.memory_space<any>>
    %143 = tpu.memref_squeeze %142 : memref<1x768xf32, #tpu.memory_space<any>> -> memref<768xf32, #tpu.memory_space<any>>
    %c0_i32_117 = arith.constant 0 : i32
    %144 = tpu.memref_slice %arg12[%c0_i32_113, %c5_i32_114, %c0_i32_117] : memref<2x8x768xf32, #tpu.memory_space<vmem>> -> memref<1x1x768xf32, #tpu.memory_space<vmem>>
    %145 = tpu.memref_squeeze %144 : memref<1x1x768xf32, #tpu.memory_space<vmem>> -> memref<768xf32, #tpu.memory_space<vmem>>
    %146 = tpu.memref_slice %arg13[%c5_i32_115] : memref<16x!tpu.dma_semaphore, #tpu.memory_space<semaphore_mem>> -> memref<1x!tpu.dma_semaphore, #tpu.memory_space<semaphore_mem>>
    %147 = tpu.memref_squeeze %146 : memref<1x!tpu.dma_semaphore, #tpu.memory_space<semaphore_mem>> -> memref<!tpu.dma_semaphore, #tpu.memory_space<semaphore_mem>>
    tpu.wait_dma2 semaphore(%147 : memref<!tpu.dma_semaphore, #tpu.memory_space<semaphore_mem>>) src(%143 : memref<768xf32, #tpu.memory_space<any>>) dst(%145 : memref<768xf32, #tpu.memory_space<vmem>>)
    %c0_i32_118 = arith.constant 0 : i32
    %c6_i32_119 = arith.constant 6 : i32
    %c6_i32_120 = arith.constant 6 : i32
    %c0_i32_121 = arith.constant 0 : i32
    %148 = tpu.memref_slice %arg3[%42, %c0_i32_121] : memref<1000x768xf32, #tpu.memory_space<any>> -> memref<1x768xf32, #tpu.memory_space<any>>
    %149 = tpu.memref_squeeze %148 : memref<1x768xf32, #tpu.memory_space<any>> -> memref<768xf32, #tpu.memory_space<any>>
    %c0_i32_122 = arith.constant 0 : i32
    %150 = tpu.memref_slice %arg12[%c0_i32_118, %c6_i32_119, %c0_i32_122] : memref<2x8x768xf32, #tpu.memory_space<vmem>> -> memref<1x1x768xf32, #tpu.memory_space<vmem>>
    %151 = tpu.memref_squeeze %150 : memref<1x1x768xf32, #tpu.memory_space<vmem>> -> memref<768xf32, #tpu.memory_space<vmem>>
    %152 = tpu.memref_slice %arg13[%c6_i32_120] : memref<16x!tpu.dma_semaphore, #tpu.memory_space<semaphore_mem>> -> memref<1x!tpu.dma_semaphore, #tpu.memory_space<semaphore_mem>>
    %153 = tpu.memref_squeeze %152 : memref<1x!tpu.dma_semaphore, #tpu.memory_space<semaphore_mem>> -> memref<!tpu.dma_semaphore, #tpu.memory_space<semaphore_mem>>
    tpu.wait_dma2 semaphore(%153 : memref<!tpu.dma_semaphore, #tpu.memory_space<semaphore_mem>>) src(%149 : memref<768xf32, #tpu.memory_space<any>>) dst(%151 : memref<768xf32, #tpu.memory_space<vmem>>)
    %c0_i32_123 = arith.constant 0 : i32
    %c7_i32_124 = arith.constant 7 : i32
    %c7_i32_125 = arith.constant 7 : i32
    %c0_i32_126 = arith.constant 0 : i32
    %154 = tpu.memref_slice %arg3[%49, %c0_i32_126] : memref<1000x768xf32, #tpu.memory_space<any>> -> memref<1x768xf32, #tpu.memory_space<any>>
    %155 = tpu.memref_squeeze %154 : memref<1x768xf32, #tpu.memory_space<any>> -> memref<768xf32, #tpu.memory_space<any>>
    %c0_i32_127 = arith.constant 0 : i32
    %156 = tpu.memref_slice %arg12[%c0_i32_123, %c7_i32_124, %c0_i32_127] : memref<2x8x768xf32, #tpu.memory_space<vmem>> -> memref<1x1x768xf32, #tpu.memory_space<vmem>>
    %157 = tpu.memref_squeeze %156 : memref<1x1x768xf32, #tpu.memory_space<vmem>> -> memref<768xf32, #tpu.memory_space<vmem>>
    %158 = tpu.memref_slice %arg13[%c7_i32_125] : memref<16x!tpu.dma_semaphore, #tpu.memory_space<semaphore_mem>> -> memref<1x!tpu.dma_semaphore, #tpu.memory_space<semaphore_mem>>
    %159 = tpu.memref_squeeze %158 : memref<1x!tpu.dma_semaphore, #tpu.memory_space<semaphore_mem>> -> memref<!tpu.dma_semaphore, #tpu.memory_space<semaphore_mem>>
    tpu.wait_dma2 semaphore(%159 : memref<!tpu.dma_semaphore, #tpu.memory_space<semaphore_mem>>) src(%155 : memref<768xf32, #tpu.memory_space<any>>) dst(%157 : memref<768xf32, #tpu.memory_space<vmem>>)
    %c1_i32_128 = arith.constant 1 : i32
    %c0_i32_129 = arith.constant 0 : i32
    %c8_i32_130 = arith.constant 8 : i32
    %c0_i32_131 = arith.constant 0 : i32
    %160 = tpu.memref_slice %arg3[%56, %c0_i32_131] : memref<1000x768xf32, #tpu.memory_space<any>> -> memref<1x768xf32, #tpu.memory_space<any>>
    %161 = tpu.memref_squeeze %160 : memref<1x768xf32, #tpu.memory_space<any>> -> memref<768xf32, #tpu.memory_space<any>>
    %c0_i32_132 = arith.constant 0 : i32
    %162 = tpu.memref_slice %arg12[%c1_i32_128, %c0_i32_129, %c0_i32_132] : memref<2x8x768xf32, #tpu.memory_space<vmem>> -> memref<1x1x768xf32, #tpu.memory_space<vmem>>
    %163 = tpu.memref_squeeze %162 : memref<1x1x768xf32, #tpu.memory_space<vmem>> -> memref<768xf32, #tpu.memory_space<vmem>>
    %164 = tpu.memref_slice %arg13[%c8_i32_130] : memref<16x!tpu.dma_semaphore, #tpu.memory_space<semaphore_mem>> -> memref<1x!tpu.dma_semaphore, #tpu.memory_space<semaphore_mem>>
    %165 = tpu.memref_squeeze %164 : memref<1x!tpu.dma_semaphore, #tpu.memory_space<semaphore_mem>> -> memref<!tpu.dma_semaphore, #tpu.memory_space<semaphore_mem>>
    tpu.wait_dma2 semaphore(%165 : memref<!tpu.dma_semaphore, #tpu.memory_space<semaphore_mem>>) src(%161 : memref<768xf32, #tpu.memory_space<any>>) dst(%163 : memref<768xf32, #tpu.memory_space<vmem>>)
    %c1_i32_133 = arith.constant 1 : i32
    %c1_i32_134 = arith.constant 1 : i32
    %c9_i32_135 = arith.constant 9 : i32
    %c0_i32_136 = arith.constant 0 : i32
    %166 = tpu.memref_slice %arg3[%63, %c0_i32_136] : memref<1000x768xf32, #tpu.memory_space<any>> -> memref<1x768xf32, #tpu.memory_space<any>>
    %167 = tpu.memref_squeeze %166 : memref<1x768xf32, #tpu.memory_space<any>> -> memref<768xf32, #tpu.memory_space<any>>
    %c0_i32_137 = arith.constant 0 : i32
    %168 = tpu.memref_slice %arg12[%c1_i32_133, %c1_i32_134, %c0_i32_137] : memref<2x8x768xf32, #tpu.memory_space<vmem>> -> memref<1x1x768xf32, #tpu.memory_space<vmem>>
    %169 = tpu.memref_squeeze %168 : memref<1x1x768xf32, #tpu.memory_space<vmem>> -> memref<768xf32, #tpu.memory_space<vmem>>
    %170 = tpu.memref_slice %arg13[%c9_i32_135] : memref<16x!tpu.dma_semaphore, #tpu.memory_space<semaphore_mem>> -> memref<1x!tpu.dma_semaphore, #tpu.memory_space<semaphore_mem>>
    %171 = tpu.memref_squeeze %170 : memref<1x!tpu.dma_semaphore, #tpu.memory_space<semaphore_mem>> -> memref<!tpu.dma_semaphore, #tpu.memory_space<semaphore_mem>>
    tpu.wait_dma2 semaphore(%171 : memref<!tpu.dma_semaphore, #tpu.memory_space<semaphore_mem>>) src(%167 : memref<768xf32, #tpu.memory_space<any>>) dst(%169 : memref<768xf32, #tpu.memory_space<vmem>>)
    %c1_i32_138 = arith.constant 1 : i32
    %c2_i32_139 = arith.constant 2 : i32
    %c10_i32_140 = arith.constant 10 : i32
    %c0_i32_141 = arith.constant 0 : i32
    %172 = tpu.memref_slice %arg3[%70, %c0_i32_141] : memref<1000x768xf32, #tpu.memory_space<any>> -> memref<1x768xf32, #tpu.memory_space<any>>
    %173 = tpu.memref_squeeze %172 : memref<1x768xf32, #tpu.memory_space<any>> -> memref<768xf32, #tpu.memory_space<any>>
    %c0_i32_142 = arith.constant 0 : i32
    %174 = tpu.memref_slice %arg12[%c1_i32_138, %c2_i32_139, %c0_i32_142] : memref<2x8x768xf32, #tpu.memory_space<vmem>> -> memref<1x1x768xf32, #tpu.memory_space<vmem>>
    %175 = tpu.memref_squeeze %174 : memref<1x1x768xf32, #tpu.memory_space<vmem>> -> memref<768xf32, #tpu.memory_space<vmem>>
    %176 = tpu.memref_slice %arg13[%c10_i32_140] : memref<16x!tpu.dma_semaphore, #tpu.memory_space<semaphore_mem>> -> memref<1x!tpu.dma_semaphore, #tpu.memory_space<semaphore_mem>>
    %177 = tpu.memref_squeeze %176 : memref<1x!tpu.dma_semaphore, #tpu.memory_space<semaphore_mem>> -> memref<!tpu.dma_semaphore, #tpu.memory_space<semaphore_mem>>
    tpu.wait_dma2 semaphore(%177 : memref<!tpu.dma_semaphore, #tpu.memory_space<semaphore_mem>>) src(%173 : memref<768xf32, #tpu.memory_space<any>>) dst(%175 : memref<768xf32, #tpu.memory_space<vmem>>)
    %c1_i32_143 = arith.constant 1 : i32
    %c3_i32_144 = arith.constant 3 : i32
    %c11_i32_145 = arith.constant 11 : i32
    %c0_i32_146 = arith.constant 0 : i32
    %178 = tpu.memref_slice %arg3[%77, %c0_i32_146] : memref<1000x768xf32, #tpu.memory_space<any>> -> memref<1x768xf32, #tpu.memory_space<any>>
    %179 = tpu.memref_squeeze %178 : memref<1x768xf32, #tpu.memory_space<any>> -> memref<768xf32, #tpu.memory_space<any>>
    %c0_i32_147 = arith.constant 0 : i32
    %180 = tpu.memref_slice %arg12[%c1_i32_143, %c3_i32_144, %c0_i32_147] : memref<2x8x768xf32, #tpu.memory_space<vmem>> -> memref<1x1x768xf32, #tpu.memory_space<vmem>>
    %181 = tpu.memref_squeeze %180 : memref<1x1x768xf32, #tpu.memory_space<vmem>> -> memref<768xf32, #tpu.memory_space<vmem>>
    %182 = tpu.memref_slice %arg13[%c11_i32_145] : memref<16x!tpu.dma_semaphore, #tpu.memory_space<semaphore_mem>> -> memref<1x!tpu.dma_semaphore, #tpu.memory_space<semaphore_mem>>
    %183 = tpu.memref_squeeze %182 : memref<1x!tpu.dma_semaphore, #tpu.memory_space<semaphore_mem>> -> memref<!tpu.dma_semaphore, #tpu.memory_space<semaphore_mem>>
    tpu.wait_dma2 semaphore(%183 : memref<!tpu.dma_semaphore, #tpu.memory_space<semaphore_mem>>) src(%179 : memref<768xf32, #tpu.memory_space<any>>) dst(%181 : memref<768xf32, #tpu.memory_space<vmem>>)
    %c1_i32_148 = arith.constant 1 : i32
    %c4_i32_149 = arith.constant 4 : i32
    %c12_i32_150 = arith.constant 12 : i32
    %c0_i32_151 = arith.constant 0 : i32
    %184 = tpu.memref_slice %arg3[%84, %c0_i32_151] : memref<1000x768xf32, #tpu.memory_space<any>> -> memref<1x768xf32, #tpu.memory_space<any>>
    %185 = tpu.memref_squeeze %184 : memref<1x768xf32, #tpu.memory_space<any>> -> memref<768xf32, #tpu.memory_space<any>>
    %c0_i32_152 = arith.constant 0 : i32
    %186 = tpu.memref_slice %arg12[%c1_i32_148, %c4_i32_149, %c0_i32_152] : memref<2x8x768xf32, #tpu.memory_space<vmem>> -> memref<1x1x768xf32, #tpu.memory_space<vmem>>
    %187 = tpu.memref_squeeze %186 : memref<1x1x768xf32, #tpu.memory_space<vmem>> -> memref<768xf32, #tpu.memory_space<vmem>>
    %188 = tpu.memref_slice %arg13[%c12_i32_150] : memref<16x!tpu.dma_semaphore, #tpu.memory_space<semaphore_mem>> -> memref<1x!tpu.dma_semaphore, #tpu.memory_space<semaphore_mem>>
    %189 = tpu.memref_squeeze %188 : memref<1x!tpu.dma_semaphore, #tpu.memory_space<semaphore_mem>> -> memref<!tpu.dma_semaphore, #tpu.memory_space<semaphore_mem>>
    tpu.wait_dma2 semaphore(%189 : memref<!tpu.dma_semaphore, #tpu.memory_space<semaphore_mem>>) src(%185 : memref<768xf32, #tpu.memory_space<any>>) dst(%187 : memref<768xf32, #tpu.memory_space<vmem>>)
    %c1_i32_153 = arith.constant 1 : i32
    %c5_i32_154 = arith.constant 5 : i32
    %c13_i32_155 = arith.constant 13 : i32
    %c0_i32_156 = arith.constant 0 : i32
    %190 = tpu.memref_slice %arg3[%91, %c0_i32_156] : memref<1000x768xf32, #tpu.memory_space<any>> -> memref<1x768xf32, #tpu.memory_space<any>>
    %191 = tpu.memref_squeeze %190 : memref<1x768xf32, #tpu.memory_space<any>> -> memref<768xf32, #tpu.memory_space<any>>
    %c0_i32_157 = arith.constant 0 : i32
    %192 = tpu.memref_slice %arg12[%c1_i32_153, %c5_i32_154, %c0_i32_157] : memref<2x8x768xf32, #tpu.memory_space<vmem>> -> memref<1x1x768xf32, #tpu.memory_space<vmem>>
    %193 = tpu.memref_squeeze %192 : memref<1x1x768xf32, #tpu.memory_space<vmem>> -> memref<768xf32, #tpu.memory_space<vmem>>
    %194 = tpu.memref_slice %arg13[%c13_i32_155] : memref<16x!tpu.dma_semaphore, #tpu.memory_space<semaphore_mem>> -> memref<1x!tpu.dma_semaphore, #tpu.memory_space<semaphore_mem>>
    %195 = tpu.memref_squeeze %194 : memref<1x!tpu.dma_semaphore, #tpu.memory_space<semaphore_mem>> -> memref<!tpu.dma_semaphore, #tpu.memory_space<semaphore_mem>>
    tpu.wait_dma2 semaphore(%195 : memref<!tpu.dma_semaphore, #tpu.memory_space<semaphore_mem>>) src(%191 : memref<768xf32, #tpu.memory_space<any>>) dst(%193 : memref<768xf32, #tpu.memory_space<vmem>>)
    %c1_i32_158 = arith.constant 1 : i32
    %c6_i32_159 = arith.constant 6 : i32
    %c14_i32_160 = arith.constant 14 : i32
    %c0_i32_161 = arith.constant 0 : i32
    %196 = tpu.memref_slice %arg3[%98, %c0_i32_161] : memref<1000x768xf32, #tpu.memory_space<any>> -> memref<1x768xf32, #tpu.memory_space<any>>
    %197 = tpu.memref_squeeze %196 : memref<1x768xf32, #tpu.memory_space<any>> -> memref<768xf32, #tpu.memory_space<any>>
    %c0_i32_162 = arith.constant 0 : i32
    %198 = tpu.memref_slice %arg12[%c1_i32_158, %c6_i32_159, %c0_i32_162] : memref<2x8x768xf32, #tpu.memory_space<vmem>> -> memref<1x1x768xf32, #tpu.memory_space<vmem>>
    %199 = tpu.memref_squeeze %198 : memref<1x1x768xf32, #tpu.memory_space<vmem>> -> memref<768xf32, #tpu.memory_space<vmem>>
    %200 = tpu.memref_slice %arg13[%c14_i32_160] : memref<16x!tpu.dma_semaphore, #tpu.memory_space<semaphore_mem>> -> memref<1x!tpu.dma_semaphore, #tpu.memory_space<semaphore_mem>>
    %201 = tpu.memref_squeeze %200 : memref<1x!tpu.dma_semaphore, #tpu.memory_space<semaphore_mem>> -> memref<!tpu.dma_semaphore, #tpu.memory_space<semaphore_mem>>
    tpu.wait_dma2 semaphore(%201 : memref<!tpu.dma_semaphore, #tpu.memory_space<semaphore_mem>>) src(%197 : memref<768xf32, #tpu.memory_space<any>>) dst(%199 : memref<768xf32, #tpu.memory_space<vmem>>)
    %c1_i32_163 = arith.constant 1 : i32
    %c7_i32_164 = arith.constant 7 : i32
    %c15_i32_165 = arith.constant 15 : i32
    %c0_i32_166 = arith.constant 0 : i32
    %202 = tpu.memref_slice %arg3[%105, %c0_i32_166] : memref<1000x768xf32, #tpu.memory_space<any>> -> memref<1x768xf32, #tpu.memory_space<any>>
    %203 = tpu.memref_squeeze %202 : memref<1x768xf32, #tpu.memory_space<any>> -> memref<768xf32, #tpu.memory_space<any>>
    %c0_i32_167 = arith.constant 0 : i32
    %204 = tpu.memref_slice %arg12[%c1_i32_163, %c7_i32_164, %c0_i32_167] : memref<2x8x768xf32, #tpu.memory_space<vmem>> -> memref<1x1x768xf32, #tpu.memory_space<vmem>>
    %205 = tpu.memref_squeeze %204 : memref<1x1x768xf32, #tpu.memory_space<vmem>> -> memref<768xf32, #tpu.memory_space<vmem>>
    %206 = tpu.memref_slice %arg13[%c15_i32_165] : memref<16x!tpu.dma_semaphore, #tpu.memory_space<semaphore_mem>> -> memref<1x!tpu.dma_semaphore, #tpu.memory_space<semaphore_mem>>
    %207 = tpu.memref_squeeze %206 : memref<1x!tpu.dma_semaphore, #tpu.memory_space<semaphore_mem>> -> memref<!tpu.dma_semaphore, #tpu.memory_space<semaphore_mem>>
    tpu.wait_dma2 semaphore(%207 : memref<!tpu.dma_semaphore, #tpu.memory_space<semaphore_mem>>) src(%203 : memref<768xf32, #tpu.memory_space<any>>) dst(%205 : memref<768xf32, #tpu.memory_space<vmem>>)
    %c0_168 = arith.constant 0 : index
    %c0_169 = arith.constant 0 : index
    %208 = vector.load %arg1[%c0_168, %c0_169] : memref<2x8xi32, #tpu.memory_space<vmem>>, vector<2x8xi32>
    %209 = arith.sitofp %208 : vector<2x8xi32> to vector<2x8xf32>
    %cst = arith.constant dense<0.000000e+00> : vector<2xf32>
    %210 = vector.multi_reduction <add>, %209, %cst [1] : vector<2x8xf32> to vector<2xf32>
    %211 = vector.shape_cast %210 : vector<2xf32> to vector<2x1xf32>
    %cst_170 = arith.constant 1.000000e+00 : f32
    %212 = vector.broadcast %cst_170 : f32 to vector<2x1xf32>
    %213 = arith.maximumf %211, %212 : vector<2x1xf32>
    %c0_171 = arith.constant 0 : index
    %c0_172 = arith.constant 0 : index
    %c0_173 = arith.constant 0 : index
    %214 = vector.load %arg12[%c0_171, %c0_172, %c0_173] : memref<2x8x768xf32, #tpu.memory_space<vmem>>, vector<2x8x768xf32>
    %215 = vector.shape_cast %209 : vector<2x8xf32> to vector<2x8x1xf32>
    %216 = vector.broadcast %215 : vector<2x8x1xf32> to vector<2x8x768xf32>
    %217 = arith.mulf %214, %216 : vector<2x8x768xf32>
    %cst_174 = arith.constant dense<0.000000e+00> : vector<2x768xf32>
    %218 = vector.multi_reduction <add>, %217, %cst_174 [1] : vector<2x8x768xf32> to vector<2x768xf32>
    %219 = vector.broadcast %213 : vector<2x1xf32> to vector<2x768xf32>
    %220 = arith.divf %218, %219 : vector<2x768xf32>
    %221 = arith.truncf %220 : vector<2x768xf32> to vector<2x768xbf16>
    %c0_175 = arith.constant 0 : index
    %c0_176 = arith.constant 0 : index
    %222 = vector.load %arg4[%c0_175, %c0_176] : memref<768x768xbf16, #tpu.memory_space<vmem>>, vector<768x768xbf16>
    %cst_177 = arith.constant dense<0.000000e+00> : vector<2x768xf32>
    %223 = tpu.matmul %221, %222, %cst_177 {dimension_numbers = #tpu.dot_dimension_numbers<[1], [0], [0], [1], [0, 0, 1, 1], [], []>} : vector<2x768xbf16>, vector<768x768xbf16>, vector<2x768xf32> -> vector<2x768xf32>
    %c0_178 = arith.constant 0 : index
    %c0_179 = arith.constant 0 : index
    %224 = vector.load %arg5[%c0_178, %c0_179] : memref<1x768xf32, #tpu.memory_space<vmem>>, vector<1x768xf32>
    %225 = vector.broadcast %224 : vector<1x768xf32> to vector<2x768xf32>
    %226 = arith.addf %223, %225 : vector<2x768xf32>
    %227 = math.tanh %226 : vector<2x768xf32>
    %c0_180 = arith.constant 0 : index
    %c0_181 = arith.constant 0 : index
    %228 = vector.load %arg11[%c0_180, %c0_181] : memref<2x768xf32, #tpu.memory_space<vmem>>, vector<2x768xf32>
    tpu.vector_store %arg11[%c0_180, %c0_181], %227 {strides = array<i32>} : memref<2x768xf32, #tpu.memory_space<vmem>>, vector<2x768xf32>,
    %229 = arith.truncf %227 : vector<2x768xf32> to vector<2x768xbf16>
    %c0_182 = arith.constant 0 : index
    %c0_183 = arith.constant 0 : index
    %230 = vector.load %arg6[%c0_182, %c0_183] : memref<768x512xbf16, #tpu.memory_space<vmem>>, vector<768x512xbf16>
    %cst_184 = arith.constant dense<0.000000e+00> : vector<2x512xf32>
    %231 = tpu.matmul %229, %230, %cst_184 {dimension_numbers = #tpu.dot_dimension_numbers<[1], [0], [0], [1], [0, 0, 1, 1], [], []>} : vector<2x768xbf16>, vector<768x512xbf16>, vector<2x512xf32> -> vector<2x512xf32>
    %c0_185 = arith.constant 0 : index
    %c0_186 = arith.constant 0 : index
    %232 = vector.load %arg2[%c0_185, %c0_186] : memref<2x32xf32, #tpu.memory_space<vmem>>, vector<2x32xf32>
    %233 = arith.truncf %232 : vector<2x32xf32> to vector<2x32xbf16>
    %c0_187 = arith.constant 0 : index
    %c0_188 = arith.constant 0 : index
    %234 = vector.load %arg7[%c0_187, %c0_188] : memref<32x512xbf16, #tpu.memory_space<vmem>>, vector<32x512xbf16>
    %cst_189 = arith.constant dense<0.000000e+00> : vector<2x512xf32>
    %235 = tpu.matmul %233, %234, %cst_189 {dimension_numbers = #tpu.dot_dimension_numbers<[1], [0], [0], [1], [0, 0, 1, 1], [], []>} : vector<2x32xbf16>, vector<32x512xbf16>, vector<2x512xf32> -> vector<2x512xf32>
    %236 = arith.addf %231, %235 : vector<2x512xf32>
    %c0_190 = arith.constant 0 : index
    %c0_191 = arith.constant 0 : index
    %237 = vector.load %arg8[%c0_190, %c0_191] : memref<2x512xf32, #tpu.memory_space<vmem>>, vector<1x512xf32>
    %238 = vector.broadcast %237 : vector<1x512xf32> to vector<2x512xf32>
    %239 = arith.addf %236, %238 : vector<2x512xf32>
    %cst_192 = arith.constant 0.000000e+00 : f32
    %240 = vector.broadcast %cst_192 : f32 to vector<2x512xf32>
    %241 = arith.maximumf %239, %240 : vector<2x512xf32>
    %c1_193 = arith.constant 1 : index
    %c0_194 = arith.constant 0 : index
    %242 = vector.load %arg8[%c1_193, %c0_194] : memref<2x512xf32, #tpu.memory_space<vmem>>, vector<1x512xf32>
    %243 = vector.broadcast %242 : vector<1x512xf32> to vector<2x512xf32>
    %244 = arith.mulf %241, %243 : vector<2x512xf32>
    %cst_195 = arith.constant dense<0.000000e+00> : vector<2xf32>
    %245 = vector.multi_reduction <add>, %244, %cst_195 [1] : vector<2x512xf32> to vector<2xf32>
    %246 = vector.shape_cast %245 : vector<2xf32> to vector<2x1xf32>
    %c0_196 = arith.constant 0 : index
    %c0_197 = arith.constant 0 : index
    %247 = memref.load %arg9[%c0_196, %c0_197] : memref<1x1xf32, #tpu.memory_space<smem>>
    %248 = vector.broadcast %247 : f32 to vector<2x1xf32>
    %249 = arith.addf %246, %248 : vector<2x1xf32>
    %c0_198 = arith.constant 0 : index
    %c0_199 = arith.constant 0 : index
    %250 = vector.load %arg10[%c0_198, %c0_199] : memref<2x1xf32, #tpu.memory_space<vmem>>, vector<2x1xf32>
    tpu.vector_store %arg10[%c0_198, %c0_199], %249 {strides = array<i32>} : memref<2x1xf32, #tpu.memory_space<vmem>>, vector<2x1xf32>,
    return
  }
}

</mosaic_0001>

<bundles_post_ra>
// kernel: essay_model_forward.1
= control target key start
LH: loop header
LB: loop body
LE: loop exit
PB: predicated region body
PF: predicated region fallthrough
CT: control target
= control target key end

     0   :  { %s7169_s0 = inlined_call_operand.hbm [shape: s32[2,8], index: 0, kind: input, shape index: {}]   ;;  %s7170_s1 = inlined_call_operand.hbm [shape: s32[2,8], index: 1, kind: input, shape index: {}]   ;;  %s7171_s2 = inlined_call_operand.hbm [shape: f32[2,32], index: 2, kind: input, shape index: {}]   ;;  %s7172_s3 = inlined_call_operand.hbm [shape: f32[1000,768], index: 3, kind: input, shape index: {}]   ;;  %s7173_s4 = inlined_call_operand.hbm [shape: bf16[768,768], index: 4, kind: input, shape index: {}]   ;;  %s7174_s5 = inlined_call_operand.hbm [shape: f32[1,768], index: 5, kind: input, shape index: {}]   ;;  %s7175_s6 = inlined_call_operand.hbm [shape: bf16[768,512], index: 6, kind: input, shape index: {}]   ;;  %s7176_s7 = inlined_call_operand.hbm [shape: bf16[32,512], index: 7, kind: input, shape index: {}]   ;;  %s7177_s8 = inlined_call_operand.hbm [shape: f32[2,512], index: 8, kind: input, shape index: {}]   ;;  %s7178_s9 = inlined_call_operand.<no memory space> [shape: f32[1,1], index: 9, kind: input, shape index: {}]   ;;  %s7179_s10 = inlined_call_operand.vmem [shape: f32[2,1], index: 10, kind: output, shape index: {0}]   ;;  %s7180_s11 = inlined_call_operand.hbm [shape: f32[2,768], index: 11, kind: output, shape index: {1}]  }
   0x1   :  { %7185 = sst [smem:[#allocation58_spill]] %s7178_s9 }
   0x2   :  { %7186 = sst [smem:[#allocation59_spill]] %s7179_s10 }
   0x3   :  { %18 = vsyncpa [#allocation8], 0 }
   0x4   :  { %19 = vsyncpa [#allocation6], 0 }
   0x5   :  { %20 = vsyncpa [#allocation11], 0 }
   0x6   :  { %21 = vsyncpa [#allocation14], 0 }
   0x7   :  { %22 = vsyncpa [#allocation17], 0 }
   0x8   :  { %23 = vsyncpa [#allocation7], 0  ;;  %s6529_s17 = smov [#allocation10]   ;;  %s6530_s19 = smov [#allocation13]  }
   0x9   :  { %s48_s18 = sshll.u32 %s6529_s17, 4  ;;  %s70_s20 = sshll.u32 %s6530_s19, 4  ;;  %s49_s18 = int_to_ptr.vmem [resolvable:$true] %s48_s18  ;;  %s71_s20 = int_to_ptr.vmem [resolvable:$true] %s70_s20 }
   0xa   :  { %s5915_s23 = scalar_lea.hbm %s7171_s2, 32 }
   0xb   :  { %p5916_p0 = scmp.ne.s32.totalorder %s7171_s2, %s5915_s23  ;;  %p5919_p1 = scmp.lt.u32.totalorder %s5915_s23, %s7171_s2 }
   0xd   :  { %p5921_p2 = pnand %p5919_p1, %p5916_p0 }
   0xf   :  { %5924 = shalt.err (!%p5921_p2)
}
  0x10   :  { %s5925_s28 = scalar_lea.vmem %s49_s18, 32  ;;  %p5930_p4 = scmp.lt.s32.totalorder %s49_s18, %s49_s18 }
  0x11   :  { %p5926_p3 = scmp.ne.s32.totalorder %s49_s18, %s5925_s28  ;;  %p5931_p5 = scmp.lt.s32.totalorder %s5925_s28, %s5925_s28 }
  0x13   :  { %p5932_p6 = por %p5931_p5, %p5930_p4 }
  0x15   :  { %p5933_p7 = pnand %p5932_p6, %p5926_p3 }
  0x17   :  { %5936 = shalt.err (!%p5933_p7)
}
  0x18   :  { %51 = dma.hbm_to_vmem [thread:$0]  %s7171_s2, 32, %s49_s18, [#allocation11]  }
  0x19   :  { %s5937_s14 = scalar_lea.hbm %s7174_s5, 96 }
  0x1a   :  { %p5938_p8 = scmp.ne.s32.totalorder %s7174_s5, %s5937_s14  ;;  %p5941_p9 = scmp.lt.u32.totalorder %s5937_s14, %s7174_s5 }
  0x1c   :  { %p5943_p10 = pnand %p5941_p9, %p5938_p8 }
  0x1e   :  { %5946 = shalt.err (!%p5943_p10)
}
  0x1f   :  { %s5947_s21 = scalar_lea.vmem %s71_s20, 96  ;;  %p5952_p12 = scmp.lt.s32.totalorder %s71_s20, %s71_s20 }
  0x20   :  { %p5948_p11 = scmp.ne.s32.totalorder %s71_s20, %s5947_s21  ;;  %p5953_p13 = scmp.lt.s32.totalorder %s5947_s21, %s5947_s21 }
  0x22   :  { %p5954_p0 = por %p5953_p13, %p5952_p12 }
  0x24   :  { %p5955_p1 = pnand %p5954_p0, %p5948_p11 }
  0x26   :  { %5958 = shalt.err (!%p5955_p1)
}
  0x27   :  { %73 = dma.hbm_to_vmem [thread:$0]  %s7174_s5, 96, %s71_s20, [#allocation14]  }
  0x28   :  { %s6531_s22 = smov [#allocation16]   ;;  %s6532_s24 = smov [#allocation9]  }
  0x29   :  { %s91_s23 = sshll.u32 %s6531_s22, 4  ;;  %s38_s25 = sshll.u32 %s6532_s24, 4  ;;  %s92_s23 = int_to_ptr.vmem [resolvable:$true] %s91_s23  ;;  %s39_s25 = int_to_ptr.vmem [resolvable:$true] %s38_s25 }
  0x2a   :  { %s5959_s28 = scalar_lea.hbm %s7176_s7, 1024 }
  0x2b   :  { %p5960_p2 = scmp.ne.s32.totalorder %s7176_s7, %s5959_s28  ;;  %p5963_p3 = scmp.lt.u32.totalorder %s5959_s28, %s7176_s7 }
  0x2d   :  { %p5965_p4 = pnand %p5963_p3, %p5960_p2 }
  0x2f   :  { %5968 = shalt.err (!%p5965_p4)
}
  0x30   :  { %s5969_s5 = scalar_lea.vmem %s92_s23, 1024  ;;  %p5974_p6 = scmp.lt.s32.totalorder %s92_s23, %s92_s23 }
  0x31   :  { %p5970_p5 = scmp.ne.s32.totalorder %s92_s23, %s5969_s5  ;;  %p5975_p7 = scmp.lt.s32.totalorder %s5969_s5, %s5969_s5 }
  0x33   :  { %p5976_p8 = por %p5975_p7, %p5974_p6 }
  0x35   :  { %p5977_p9 = pnand %p5976_p8, %p5970_p5 }
  0x37   :  { %5980 = shalt.err (!%p5977_p9)
}
  0x38   :  { %s6533_s20 = smov 256   ;;  %s6534_s14 = smov 16  }
  0x39   :  { %97 = dma.hbm_to_vmem [thread:$0]  %s7176_s7, 1024, %s92_s23, [#allocation17], %s6533_s20, %s6533_s20, %s6534_s14  }
  0x3a   :  { %s5981_s21 = scalar_lea.hbm %s7169_s0, 32 }
  0x3b   :  { %p5982_p10 = scmp.ne.s32.totalorder %s7169_s0, %s5981_s21  ;;  %p5985_p11 = scmp.lt.u32.totalorder %s5981_s21, %s7169_s0 }
  0x3d   :  { %p5987_p12 = pnand %p5985_p11, %p5982_p10 }
  0x3f   :  { %5990 = shalt.err (!%p5987_p12)
}
  0x40   :  { %s6535_s26 = smov [#allocation5]   ;;  %s5991_s29 = scalar_lea.hbm %s7170_s1, 32 }
  0x41   :  { %31 = dma.hbm_to_smem %s7169_s0, 32, %s6535_s26, [#allocation8]  }
  0x42   :  { %p5992_p13 = scmp.ne.s32.totalorder %s7170_s1, %s5991_s29  ;;  %p5995_p0 = scmp.lt.u32.totalorder %s5991_s29, %s7170_s1 }
  0x44   :  { %p5997_p1 = pnand %p5995_p0, %p5992_p13 }
  0x46   :  { %6000 = shalt.err (!%p5997_p1)
}
  0x47   :  { %s6001_s15 = scalar_lea.vmem %s39_s25, 32  ;;  %p6006_p3 = scmp.lt.s32.totalorder %s39_s25, %s39_s25 }
  0x48   :  { %p6002_p2 = scmp.ne.s32.totalorder %s39_s25, %s6001_s15  ;;  %p6007_p4 = scmp.lt.s32.totalorder %s6001_s15, %s6001_s15 }
  0x4a   :  { %p6008_p5 = por %p6007_p4, %p6006_p3 }
  0x4c   :  { %p6009_p6 = pnand %p6008_p5, %p6002_p2 }
  0x4e   :  { %6012 = shalt.err (!%p6009_p6)
}
  0x4f   :  { %41 = dma.hbm_to_vmem [thread:$0]  %s7170_s1, 32, %s39_s25, [#allocation6]  }
  0x50   :  { %s6536_s17 = smov [#allocation12]   ;;  %s6013_s18 = scalar_lea.hbm %s7173_s4, 36864 }
  0x51   :  { %s57_s19 = sshll.u32 %s6536_s17, 4  ;;  %p6014_p7 = scmp.ne.s32.totalorder %s7173_s4, %s6013_s18  ;;  %s58_s19 = int_to_ptr.vmem [resolvable:$true] %s57_s19 }
  0x52   :  { %p6017_p8 = scmp.lt.u32.totalorder %s6013_s18, %s7173_s4 }
  0x54   :  { %p6019_p9 = pnand %p6017_p8, %p6014_p7 }
  0x56   :  { %6022 = shalt.err (!%p6019_p9)
}
  0x57   :  { %s6023_s28 = scalar_lea.vmem %s58_s19, 36864  ;;  %p6028_p11 = scmp.lt.s32.totalorder %s58_s19, %s58_s19 }
  0x58   :  { %p6024_p10 = scmp.ne.s32.totalorder %s58_s19, %s6023_s28  ;;  %p6029_p12 = scmp.lt.s32.totalorder %s6023_s28, %s6023_s28 }
  0x5a   :  { %p6030_p13 = por %p6029_p12, %p6028_p11 }
  0x5c   :  { %p6031_p0 = pnand %p6030_p13, %p6024_p10 }
  0x5e   :  { %6034 = shalt.err (!%p6031_p0)
}
  0x5f   :  { %s6537_s1 = smov 384   ;;  %s6538_s25 = smov 24  }
  0x60   :  { %63 = dma.hbm_to_vmem [thread:$0]  %s7173_s4, 36864, %s58_s19, [#allocation11], %s6537_s1, %s6537_s1, %s6538_s25  }
  0x61   :  { %s6539_s29 = smov [#allocation15]   ;;  %s6540_s12 = smov [#allocation18]  }
  0x62   :  { %s79_s30 = sshll.u32 %s6539_s29, 4  ;;  %s104_s13 = sshll.u32 %s6540_s12, 4  ;;  %s80_s30 = int_to_ptr.vmem [resolvable:$true] %s79_s30  ;;  %s105_s13 = int_to_ptr.vmem [resolvable:$true] %s104_s13 }
  0x63   :  { %s6035_s0 = scalar_lea.hbm %s7175_s6, 24576 }
  0x64   :  { %p6036_p1 = scmp.ne.s32.totalorder %s7175_s6, %s6035_s0  ;;  %p6039_p2 = scmp.lt.u32.totalorder %s6035_s0, %s7175_s6 }
  0x66   :  { %p6041_p3 = pnand %p6039_p2, %p6036_p1 }
  0x68   :  { %6044 = shalt.err (!%p6041_p3)
}
  0x69   :  { %s6045_s4 = scalar_lea.vmem %s80_s30, 24576  ;;  %p6050_p5 = scmp.lt.s32.totalorder %s80_s30, %s80_s30 }
  0x6a   :  { %p6046_p4 = scmp.ne.s32.totalorder %s80_s30, %s6045_s4  ;;  %p6051_p6 = scmp.lt.s32.totalorder %s6045_s4, %s6045_s4 }
  0x6c   :  { %p6052_p7 = por %p6051_p6, %p6050_p5 }
  0x6e   :  { %p6053_p8 = pnand %p6052_p7, %p6046_p4 }
  0x70   :  { %6056 = shalt.err (!%p6053_p8)
}
  0x71   :  { %85 = dma.hbm_to_vmem [thread:$0]  %s7175_s6, 24576, %s80_s30, [#allocation14], %s6533_s20, %s6533_s20, %s6534_s14  }
  0x72   :  { %s6057_s26 = scalar_lea.hbm %s7177_s8, 128 }
  0x73   :  { %p6058_p9 = scmp.ne.s32.totalorder %s7177_s8, %s6057_s26  ;;  %p6061_p10 = scmp.lt.u32.totalorder %s6057_s26, %s7177_s8 }
  0x75   :  { %p6063_p11 = pnand %p6061_p10, %p6058_p9 }
  0x77   :  { %6066 = shalt.err (!%p6063_p11)
}
  0x78   :  { %s6067_s7 = scalar_lea.vmem %s105_s13, 128  ;;  %p6072_p13 = scmp.lt.s32.totalorder %s105_s13, %s105_s13 }
  0x79   :  { %p6068_p12 = scmp.ne.s32.totalorder %s105_s13, %s6067_s7  ;;  %p6073_p0 = scmp.lt.s32.totalorder %s6067_s7, %s6067_s7 }
  0x7b   :  { %p6074_p1 = por %p6073_p0, %p6072_p13 }
  0x7d   :  { %p6075_p2 = pnand %p6074_p1, %p6068_p12 }
  0x7f   :  { %6078 = shalt.err (!%p6075_p2)
}
  0x80   :  { %107 = dma.hbm_to_vmem [thread:$0]  %s7177_s8, 128, %s105_s13, [#allocation17]  }
  0x81   :  { %6485 = dma.done.wait [#allocation8], 32  }
  0x82   :  { %6486 = vsyncadd [#allocation8], 4294967264 }
  0x83   :  { %6487 = dma.done.wait [#allocation6], 32  }
  0x84   :  { %6488 = vsyncadd [#allocation6], 4294967264 }
  0x85   :  { %6489 = dma.done.wait [#allocation11], 36896  }
  0x86   :  { %6490 = vsyncadd [#allocation11], 4294930400 }
  0x87   :  { %6491 = dma.done.wait [#allocation14], 24672  }
  0x88   :  { %6492 = vsyncadd [#allocation14], 4294942624 }
  0x89   :  { %6493 = dma.done.wait [#allocation17], 1152  }
  0x8a   :  { %6494 = vsyncadd [#allocation17], 4294966144 }
  0x8b   :  { %134 = sfence }
  0x8c   :  { %s136_s14 = sld [smem:[#allocation5]]  ;;  %s6541_s23 = smov [#allocation2]  }
  0x8d   :  { %s144_s29 = sshll.u32 %s6541_s23, 4  ;;  %s6726_s30 = sld [smem:[#allocation5 + $0x1]]  ;;  %s6724_s29 = int_to_ptr.vmem [resolvable:$true] %s144_s29 }
  0x8e   :  { %s6542_s8 = smov [#allocation2 + $0x1]   ;;  %s6728_s13 = sld [smem:[#allocation5 + $0x2]] }
  0x8f   :  { %s158_s12 = sshll.u32 %s6542_s8, 4  ;;  %s6543_s16 = smov [#allocation2 + $0x2]   ;;  %s6730_s12 = int_to_ptr.vmem [resolvable:$true] %s158_s12 }
  0x90   :  { %s172_s17 = sshll.u32 %s6543_s16, 4  ;;  %s6734_s21 = sld [smem:[#allocation5 + $0x3]]  ;;  %s6732_s17 = int_to_ptr.vmem [resolvable:$true] %s172_s17 }
  0x91   :  { %s6744_s7 = scalar_lea.hbm %s7172_s3, 96000 }
  0x92   :  { %s137_s5 = sshrl.u32 %s136_s14, 3  ;;  %s138_s15 = sand.u32 7, %s136_s14  }
  0x93   :  { %s139_s0 = smul.u32 48, %s137_s5  ;;  %s149_s4 = sshrl.u32 %s6726_s30, 3 }
  0x94   :  { %s150_s18 = sand.u32 7, %s6726_s30   ;;  %s151_s27 = smul.u32 48, %s149_s4 }
  0x95   :  { %s140_s2 = sadd.s32 %s139_s0, %s138_s15 }
  0x96   :  { %s4566_s19 = sshll.u32 %s140_s2, 4 }
  0x97   :  { %s142_s26 = scalar_lea.hbm %s7172_s3, %s4566_s19 }
  0x98   :  { %s6079_s28 = scalar_lea.hbm %s142_s26, 96  ;;  %p6082_p4 = scmp.lt.u32.totalorder %s142_s26, %s7172_s3 }
  0x99   :  { %p6080_p3 = scmp.ne.s32.totalorder %s142_s26, %s6079_s28  ;;  %p6083_p5 = scmp.lt.u32.totalorder %s6744_s7, %s6079_s28 }
  0x9a   :  { %p6085_p7 = scmp.lt.u32.totalorder %s6079_s28, %s142_s26 }
  0x9b   :  { %p6084_p6 = por %p6083_p5, %p6082_p4 }
  0x9d   :  { %p6086_p8 = por %p6085_p7, %p6084_p6 }
  0x9f   :  { %p6087_p9 = pnand %p6086_p8, %p6080_p3 }
  0xa1   :  { %6090 = shalt.err (!%p6087_p9)  }
  0xa2   :  { %s6091_s14 = scalar_lea.vmem %s6724_s29, 96  ;;  %s6753_s23 = scalar_lea.vmem %s6724_s29, 1536 }
  0xa3   :  { %p6092_p10 = scmp.ne.s32.totalorder %s6724_s29, %s6091_s14  ;;  %p6096_p11 = scmp.lt.s32.totalorder %s6724_s29, %s6724_s29 }
  0xa4   :  { %p6097_p12 = scmp.lt.s32.totalorder %s6753_s23, %s6091_s14 }
  0xa6   :  { %p6098_p13 = por %p6097_p12, %p6096_p11 }
  0xa8   :  { %p6099_p0 = pnand %p6098_p13, %p6092_p10 }
  0xaa   :  { %6102 = shalt.err (!%p6099_p0)  }
  0xab   :  { %s7181_s30 = smov 128   ;;  %s7183_s8 = smov 1  }
  0xac   :  { %147 = dma.hbm_to_vmem [thread:$0]  %s142_s26, 96, %s6724_s29, [#allocation3], %s7181_s30, %s7181_s30, %s7183_s8 }
  0xad   :  { %s152_s5 = sadd.s32 %s151_s27, %s150_s18  ;;  %s163_s15 = sshrl.u32 %s6728_s13, 3 }
  0xae   :  { %s4568_s0 = sshll.u32 %s152_s5, 4  ;;  %s164_s16 = sand.u32 7, %s6728_s13  }
  0xaf   :  { %s154_s19 = scalar_lea.hbm %s7172_s3, %s4568_s0  ;;  %s165_s22 = smul.u32 48, %s163_s15 }
  0xb0   :  { %s6103_s24 = scalar_lea.hbm %s154_s19, 96  ;;  %p6106_p2 = scmp.lt.u32.totalorder %s154_s19, %s7172_s3 }
  0xb1   :  { %p6104_p1 = scmp.ne.s32.totalorder %s154_s19, %s6103_s24  ;;  %p6107_p3 = scmp.lt.u32.totalorder %s6744_s7, %s6103_s24 }
  0xb2   :  { %p6109_p5 = scmp.lt.u32.totalorder %s6103_s24, %s154_s19 }
  0xb3   :  { %p6108_p4 = por %p6107_p3, %p6106_p2 }
  0xb5   :  { %p6110_p6 = por %p6109_p5, %p6108_p4 }
  0xb7   :  { %p6111_p7 = pnand %p6110_p6, %p6104_p1 }
  0xb9   :  { %6114 = shalt.err (!%p6111_p7)  }
  0xba   :  { %s6115_s13 = scalar_lea.vmem %s6730_s12, 96  ;;  %p6120_p9 = scmp.lt.s32.totalorder %s6730_s12, %s6724_s29 }
  0xbb   :  { %p6116_p8 = scmp.ne.s32.totalorder %s6730_s12, %s6115_s13  ;;  %p6121_p10 = scmp.lt.s32.totalorder %s6753_s23, %s6115_s13 }
  0xbd   :  { %p6122_p11 = por %p6121_p10, %p6120_p9 }
  0xbf   :  { %p6123_p12 = pnand %p6122_p11, %p6116_p8 }
  0xc1   :  { %6126 = shalt.err (!%p6123_p12)  }
  0xc2   :  { %161 = dma.hbm_to_vmem [thread:$0]  %s154_s19, 96, %s6730_s12, [#allocation3 + $0x1], %s7181_s30, %s7181_s30, %s7183_s8 }
  0xc3   :  { %s166_s18 = sadd.s32 %s165_s22, %s164_s16  ;;  %s177_s26 = sshrl.u32 %s6734_s21, 3 }
  0xc4   :  { %s4570_s27 = sshll.u32 %s166_s18, 4  ;;  %s178_s25 = sand.u32 7, %s6734_s21  }
  0xc5   :  { %s168_s14 = scalar_lea.hbm %s7172_s3, %s4570_s27  ;;  %s179_s5 = smul.u32 48, %s177_s26 }
  0xc6   :  { %s6127_s15 = scalar_lea.hbm %s168_s14, 96  ;;  %p6130_p0 = scmp.lt.u32.totalorder %s168_s14, %s7172_s3 }
  0xc7   :  { %p6128_p13 = scmp.ne.s32.totalorder %s168_s14, %s6127_s15  ;;  %p6131_p1 = scmp.lt.u32.totalorder %s6744_s7, %s6127_s15 }
  0xc8   :  { %p6133_p3 = scmp.lt.u32.totalorder %s6127_s15, %s168_s14 }
  0xc9   :  { %p6132_p2 = por %p6131_p1, %p6130_p0 }
  0xcb   :  { %p6134_p4 = por %p6133_p3, %p6132_p2 }
  0xcd   :  { %p6135_p5 = pnand %p6134_p4, %p6128_p13 }
  0xcf   :  { %6138 = shalt.err (!%p6135_p5)  }
  0xd0   :  { %s6139_s12 = scalar_lea.vmem %s6732_s17, 96  ;;  %p6144_p7 = scmp.lt.s32.totalorder %s6732_s17, %s6724_s29 }
  0xd1   :  { %p6140_p6 = scmp.ne.s32.totalorder %s6732_s17, %s6139_s12  ;;  %p6145_p8 = scmp.lt.s32.totalorder %s6753_s23, %s6139_s12 }
  0xd3   :  { %p6146_p9 = por %p6145_p8, %p6144_p7 }
  0xd5   :  { %p6147_p10 = pnand %p6146_p9, %p6140_p6 }
  0xd7   :  { %6150 = shalt.err (!%p6147_p10)  }
  0xd8   :  { %175 = dma.hbm_to_vmem [thread:$0]  %s168_s14, 96, %s6732_s17, [#allocation3 + $0x2], %s7181_s30, %s7181_s30, %s7183_s8 }
  0xd9   :  { %s180_s21 = sadd.s32 %s179_s5, %s178_s25  ;;  %s6546_s4 = smov [#allocation2 + $0x3]  }
  0xda   :  { %s4572_s16 = sshll.u32 %s180_s21, 4  ;;  %s186_s19 = sshll.u32 %s6546_s4, 4  ;;  %s187_s19 = int_to_ptr.vmem [resolvable:$true] %s186_s19 }
  0xdb   :  { %s182_s28 = scalar_lea.hbm %s7172_s3, %s4572_s16 }
  0xdc   :  { %s6151_s1 = scalar_lea.hbm %s182_s28, 96  ;;  %p6154_p12 = scmp.lt.u32.totalorder %s182_s28, %s7172_s3 }
  0xdd   :  { %p6152_p11 = scmp.ne.s32.totalorder %s182_s28, %s6151_s1  ;;  %p6155_p13 = scmp.lt.u32.totalorder %s6744_s7, %s6151_s1 }
  0xde   :  { %p6157_p1 = scmp.lt.u32.totalorder %s6151_s1, %s182_s28 }
  0xdf   :  { %p6156_p0 = por %p6155_p13, %p6154_p12 }
  0xe1   :  { %p6158_p2 = por %p6157_p1, %p6156_p0 }
  0xe3   :  { %p6159_p3 = pnand %p6158_p2, %p6152_p11 }
  0xe5   :  { %6162 = shalt.err (!%p6159_p3)  }
  0xe6   :  { %s6163_s17 = scalar_lea.vmem %s187_s19, 96  ;;  %p6168_p5 = scmp.lt.s32.totalorder %s187_s19, %s6724_s29 }
  0xe7   :  { %p6164_p4 = scmp.ne.s32.totalorder %s187_s19, %s6163_s17  ;;  %p6169_p6 = scmp.lt.s32.totalorder %s6753_s23, %s6163_s17 }
  0xe9   :  { %p6170_p7 = por %p6169_p6, %p6168_p5 }
  0xeb   :  { %p6171_p8 = pnand %p6170_p7, %p6164_p4 }
  0xed   :  { %6174 = shalt.err (!%p6171_p8)  }
  0xee   :  { %189 = dma.hbm_to_vmem [thread:$0]  %s182_s28, 96, %s187_s19, [#allocation3 + $0x3], %s7181_s30, %s7181_s30, %s7183_s8 }
  0xef   :  { %s4573_s26 = sld [smem:[#allocation5 + $0x4]]  ;;  %s6547_s27 = smov [#allocation2 + $0x4]  }
  0xf0   :  { %s200_s25 = sshll.u32 %s6547_s27, 4  ;;  %s4575_s6 = sld [smem:[#allocation5 + $0x5]]  ;;  %s6810_s25 = int_to_ptr.vmem [resolvable:$true] %s200_s25 }
  0xf1   :  { %s6548_s20 = smov [#allocation2 + $0x5]   ;;  %s6812_s5 = sld [smem:[#allocation5 + $0x6]] }
  0xf2   :  { %s214_s14 = sshll.u32 %s6548_s20, 4  ;;  %s6549_s15 = smov [#allocation2 + $0x6]   ;;  %s6814_s14 = int_to_ptr.vmem [resolvable:$true] %s214_s14 }
  0xf3   :  { %s6816_s0 = sshll.u32 %s6549_s15, 4  ;;  %s6818_s2 = sld [smem:[#allocation5 + $0x7]]  ;;  %s229_s0 = int_to_ptr.vmem [resolvable:$true] %s6816_s0 }
  0xf5   :  { %s191_s12 = sshrl.u32 %s4573_s26, 3  ;;  %s192_s21 = sand.u32 7, %s4573_s26  }
  0xf6   :  { %s193_s16 = smul.u32 48, %s191_s12  ;;  %s205_s4 = sshrl.u32 %s4575_s6, 3 }
  0xf7   :  { %s206_s19 = sand.u32 7, %s4575_s6   ;;  %s207_s22 = smul.u32 48, %s205_s4 }
  0xf8   :  { %s194_s24 = sadd.s32 %s193_s16, %s192_s21  ;;  %s219_s28 = sshrl.u32 %s6812_s5, 3 }
  0xf9   :  { %s4574_s1 = sshll.u32 %s194_s24, 4  ;;  %s208_s13 = sadd.s32 %s207_s22, %s206_s19 }
  0xfa   :  { %s196_s27 = scalar_lea.hbm %s7172_s3, %s4574_s1  ;;  %s4576_s20 = sshll.u32 %s208_s13, 4 }
  0xfb   :  { %s6175_s15 = scalar_lea.hbm %s196_s27, 96  ;;  %p6178_p10 = scmp.lt.u32.totalorder %s196_s27, %s7172_s3 }
  0xfc   :  { %p6176_p9 = scmp.ne.s32.totalorder %s196_s27, %s6175_s15  ;;  %p6179_p11 = scmp.lt.u32.totalorder %s6744_s7, %s6175_s15 }
  0xfd   :  { %p6181_p13 = scmp.lt.u32.totalorder %s6175_s15, %s196_s27 }
  0xfe   :  { %p6180_p12 = por %p6179_p11, %p6178_p10 }
 0x100   :  { %p6182_p0 = por %p6181_p13, %p6180_p12 }
 0x102   :  { %p6183_p1 = pnand %p6182_p0, %p6176_p9 }
 0x104   :  { %6186 = shalt.err (!%p6183_p1)  }
 0x105   :  { %s6187_s26 = scalar_lea.vmem %s6810_s25, 96  ;;  %p6192_p3 = scmp.lt.s32.totalorder %s6810_s25, %s6724_s29 }
 0x106   :  { %p6188_p2 = scmp.ne.s32.totalorder %s6810_s25, %s6187_s26  ;;  %p6193_p4 = scmp.lt.s32.totalorder %s6753_s23, %s6187_s26 }
 0x108   :  { %p6194_p5 = por %p6193_p4, %p6192_p3 }
 0x10a   :  { %p6195_p6 = pnand %p6194_p5, %p6188_p2 }
 0x10c   :  { %6198 = shalt.err (!%p6195_p6)  }
 0x10d   :  { %s7187_s30 = smov 1   ;;  %s7188_s8 = smov 128  }
 0x10e   :  { %203 = dma.hbm_to_vmem [thread:$0]  %s196_s27, 96, %s6810_s25, [#allocation3 + $0x4], %s7188_s8, %s7188_s8, %s7187_s30 }
 0x10f   :  { %s210_s21 = scalar_lea.hbm %s7172_s3, %s4576_s20  ;;  %s220_s16 = sand.u32 7, %s6812_s5  }
 0x110   :  { %s6199_s4 = scalar_lea.hbm %s210_s21, 96  ;;  %p6202_p8 = scmp.lt.u32.totalorder %s210_s21, %s7172_s3 }
 0x111   :  { %p6200_p7 = scmp.ne.s32.totalorder %s210_s21, %s6199_s4  ;;  %p6203_p9 = scmp.lt.u32.totalorder %s6744_s7, %s6199_s4 }
 0x112   :  { %p6205_p11 = scmp.lt.u32.totalorder %s6199_s4, %s210_s21 }
 0x113   :  { %p6204_p10 = por %p6203_p9, %p6202_p8 }
 0x115   :  { %p6206_p12 = por %p6205_p11, %p6204_p10 }
 0x117   :  { %p6207_p13 = pnand %p6206_p12, %p6200_p7 }
 0x119   :  { %6210 = shalt.err (!%p6207_p13)  }
 0x11a   :  { %s6211_s25 = scalar_lea.vmem %s6814_s14, 96  ;;  %p6216_p1 = scmp.lt.s32.totalorder %s6814_s14, %s6724_s29 }
 0x11b   :  { %p6212_p0 = scmp.ne.s32.totalorder %s6814_s14, %s6211_s25  ;;  %p6217_p2 = scmp.lt.s32.totalorder %s6753_s23, %s6211_s25 }
 0x11d   :  { %p6218_p3 = por %p6217_p2, %p6216_p1 }
 0x11f   :  { %p6219_p4 = pnand %p6218_p3, %p6212_p0 }
 0x121   :  { %6222 = shalt.err (!%p6219_p4)  }
 0x122   :  { %217 = dma.hbm_to_vmem [thread:$0]  %s210_s21, 96, %s6814_s14, [#allocation3 + $0x5], %s7188_s8, %s7188_s8, %s7187_s30 }
 0x123   :  { %s221_s24 = smul.u32 48, %s219_s28  ;;  %s233_s1 = sshrl.u32 %s6818_s2, 3 }
 0x124   :  { %s234_s13 = sand.u32 7, %s6818_s2   ;;  %s235_s17 = smul.u32 48, %s233_s1 }
 0x125   :  { %s222_s18 = sadd.s32 %s221_s24, %s220_s16 }
 0x126   :  { %s4578_s27 = sshll.u32 %s222_s18, 4  ;;  %s236_s6 = sadd.s32 %s235_s17, %s234_s13 }
 0x127   :  { %s224_s26 = scalar_lea.hbm %s7172_s3, %s4578_s27 }
 0x128   :  { %s6223_s12 = scalar_lea.hbm %s224_s26, 96  ;;  %p6226_p6 = scmp.lt.u32.totalorder %s224_s26, %s7172_s3 }
 0x129   :  { %p6224_p5 = scmp.ne.s32.totalorder %s224_s26, %s6223_s12  ;;  %p6227_p7 = scmp.lt.u32.totalorder %s6744_s7, %s6223_s12 }
 0x12a   :  { %p6229_p9 = scmp.lt.u32.totalorder %s6223_s12, %s224_s26 }
 0x12b   :  { %p6228_p8 = por %p6227_p7, %p6226_p6 }
 0x12d   :  { %p6230_p10 = por %p6229_p9, %p6228_p8 }
 0x12f   :  { %p6231_p11 = pnand %p6230_p10, %p6224_p5 }
 0x131   :  { %6234 = shalt.err (!%p6231_p11)  }
 0x132   :  { %s6235_s14 = scalar_lea.vmem %s229_s0, 96  ;;  %p6240_p13 = scmp.lt.s32.totalorder %s229_s0, %s6724_s29 }
 0x133   :  { %p6236_p12 = scmp.ne.s32.totalorder %s229_s0, %s6235_s14  ;;  %p6241_p0 = scmp.lt.s32.totalorder %s6753_s23, %s6235_s14 }
 0x135   :  { %p6242_p1 = por %p6241_p0, %p6240_p13 }
 0x137   :  { %p6243_p2 = pnand %p6242_p1, %p6236_p12 }
 0x139   :  { %6246 = shalt.err (!%p6243_p2)  }
 0x13a   :  { %231 = dma.hbm_to_vmem [thread:$0]  %s224_s26, 96, %s229_s0, [#allocation3 + $0x6], %s7188_s8, %s7188_s8, %s7187_s30 }
 0x13b   :  { %s4580_s5 = sshll.u32 %s236_s6, 4  ;;  %s6550_s2 = smov [#allocation2 + $0x7]  }
 0x13c   :  { %s242_s28 = sshll.u32 %s6550_s2, 4  ;;  %s238_s22 = scalar_lea.hbm %s7172_s3, %s4580_s5  ;;  %s243_s28 = int_to_ptr.vmem [resolvable:$true] %s242_s28 }
 0x13d   :  { %s6247_s25 = scalar_lea.hbm %s238_s22, 96  ;;  %p6250_p4 = scmp.lt.u32.totalorder %s238_s22, %s7172_s3 }
 0x13e   :  { %p6248_p3 = scmp.ne.s32.totalorder %s238_s22, %s6247_s25  ;;  %p6251_p5 = scmp.lt.u32.totalorder %s6744_s7, %s6247_s25 }
 0x13f   :  { %p6253_p7 = scmp.lt.u32.totalorder %s6247_s25, %s238_s22 }
 0x140   :  { %p6252_p6 = por %p6251_p5, %p6250_p4 }
 0x142   :  { %p6254_p8 = por %p6253_p7, %p6252_p6 }
 0x144   :  { %p6255_p9 = pnand %p6254_p8, %p6248_p3 }
 0x146   :  { %6258 = shalt.err (!%p6255_p9)  }
 0x147   :  { %s6259_s0 = scalar_lea.vmem %s243_s28, 96  ;;  %p6264_p11 = scmp.lt.s32.totalorder %s243_s28, %s6724_s29 }
 0x148   :  { %p6260_p10 = scmp.ne.s32.totalorder %s243_s28, %s6259_s0  ;;  %p6265_p12 = scmp.lt.s32.totalorder %s6753_s23, %s6259_s0 }
 0x14a   :  { %p6266_p13 = por %p6265_p12, %p6264_p11 }
 0x14c   :  { %p6267_p0 = pnand %p6266_p13, %p6260_p10 }
 0x14e   :  { %6270 = shalt.err (!%p6267_p0)  }
 0x14f   :  { %245 = dma.hbm_to_vmem [thread:$0]  %s238_s22, 96, %s243_s28, [#allocation3 + $0x7], %s7188_s8, %s7188_s8, %s7187_s30 }
 0x150   :  { %s4581_s13 = sld [smem:[#allocation5 + $0x80]]  ;;  %s6551_s18 = smov [#allocation2 + $0x30]  }
 0x151   :  { %s256_s17 = sshll.u32 %s6551_s18, 4  ;;  %s4583_s27 = sld [smem:[#allocation5 + $0x81]]  ;;  %s6883_s17 = int_to_ptr.vmem [resolvable:$true] %s256_s17 }
 0x152   :  { %s6552_s20 = smov [#allocation2 + $0x31]   ;;  %s6885_s26 = sld [smem:[#allocation5 + $0x82]] }
 0x153   :  { %s270_s15 = sshll.u32 %s6552_s20, 4  ;;  %s6553_s6 = smov [#allocation2 + $0x32]   ;;  %s6887_s15 = int_to_ptr.vmem [resolvable:$true] %s270_s15 }
 0x154   :  { %s6889_s12 = sshll.u32 %s6553_s6, 4  ;;  %s6891_s4 = sld [smem:[#allocation5 + $0x83]]  ;;  %s285_s12 = int_to_ptr.vmem [resolvable:$true] %s6889_s12 }
 0x156   :  { %s247_s19 = sshrl.u32 %s4581_s13, 3  ;;  %s248_s14 = sand.u32 7, %s4581_s13  }
 0x157   :  { %s249_s5 = smul.u32 48, %s247_s19  ;;  %s261_s2 = sshrl.u32 %s4583_s27, 3 }
 0x158   :  { %s262_s28 = sand.u32 7, %s4583_s27   ;;  %s263_s21 = smul.u32 48, %s261_s2 }
 0x159   :  { %s250_s16 = sadd.s32 %s249_s5, %s248_s14  ;;  %s275_s22 = sshrl.u32 %s6885_s26, 3 }
 0x15a   :  { %s4582_s25 = sshll.u32 %s250_s16, 4  ;;  %s264_s24 = sadd.s32 %s263_s21, %s262_s28 }
 0x15b   :  { %s252_s18 = scalar_lea.hbm %s7172_s3, %s4582_s25  ;;  %s4584_s20 = sshll.u32 %s264_s24, 4 }
 0x15c   :  { %s6271_s6 = scalar_lea.hbm %s252_s18, 96  ;;  %p6274_p2 = scmp.lt.u32.totalorder %s252_s18, %s7172_s3 }
 0x15d   :  { %p6272_p1 = scmp.ne.s32.totalorder %s252_s18, %s6271_s6  ;;  %p6275_p3 = scmp.lt.u32.totalorder %s6744_s7, %s6271_s6 }
 0x15e   :  { %p6277_p5 = scmp.lt.u32.totalorder %s6271_s6, %s252_s18 }
 0x15f   :  { %p6276_p4 = por %p6275_p3, %p6274_p2 }
 0x161   :  { %p6278_p6 = por %p6277_p5, %p6276_p4 }
 0x163   :  { %p6279_p7 = pnand %p6278_p6, %p6272_p1 }
 0x165   :  { %6282 = shalt.err (!%p6279_p7)  }
 0x166   :  { %s6283_s13 = scalar_lea.vmem %s6883_s17, 96  ;;  %p6288_p9 = scmp.lt.s32.totalorder %s6883_s17, %s6724_s29 }
 0x167   :  { %p6284_p8 = scmp.ne.s32.totalorder %s6883_s17, %s6283_s13  ;;  %p6289_p10 = scmp.lt.s32.totalorder %s6753_s23, %s6283_s13 }
 0x169   :  { %p6290_p11 = por %p6289_p10, %p6288_p9 }
 0x16b   :  { %p6291_p12 = pnand %p6290_p11, %p6284_p8 }
 0x16d   :  { %6294 = shalt.err (!%p6291_p12)  }
 0x16e   :  { %259 = dma.hbm_to_vmem [thread:$0]  %s252_s18, 96, %s6883_s17, [#allocation3 + $0x8], %s7188_s8, %s7188_s8, %s7187_s30 }
 0x16f   :  { %s266_s27 = scalar_lea.hbm %s7172_s3, %s4584_s20  ;;  %s276_s19 = sand.u32 7, %s6885_s26  }
 0x170   :  { %s6295_s14 = scalar_lea.hbm %s266_s27, 96  ;;  %p6298_p0 = scmp.lt.u32.totalorder %s266_s27, %s7172_s3 }
 0x171   :  { %p6296_p13 = scmp.ne.s32.totalorder %s266_s27, %s6295_s14  ;;  %p6299_p1 = scmp.lt.u32.totalorder %s6744_s7, %s6295_s14 }
 0x172   :  { %p6301_p3 = scmp.lt.u32.totalorder %s6295_s14, %s266_s27 }
 0x173   :  { %p6300_p2 = por %p6299_p1, %p6298_p0 }
 0x175   :  { %p6302_p4 = por %p6301_p3, %p6300_p2 }
 0x177   :  { %p6303_p5 = pnand %p6302_p4, %p6296_p13 }
 0x179   :  { %6306 = shalt.err (!%p6303_p5)  }
 0x17a   :  { %s6307_s17 = scalar_lea.vmem %s6887_s15, 96  ;;  %p6312_p7 = scmp.lt.s32.totalorder %s6887_s15, %s6724_s29 }
 0x17b   :  { %p6308_p6 = scmp.ne.s32.totalorder %s6887_s15, %s6307_s17  ;;  %p6313_p8 = scmp.lt.s32.totalorder %s6753_s23, %s6307_s17 }
 0x17d   :  { %p6314_p9 = por %p6313_p8, %p6312_p7 }
 0x17f   :  { %p6315_p10 = pnand %p6314_p9, %p6308_p6 }
 0x181   :  { %6318 = shalt.err (!%p6315_p10)  }
 0x182   :  { %273 = dma.hbm_to_vmem [thread:$0]  %s266_s27, 96, %s6887_s15, [#allocation3 + $0x9], %s7188_s8, %s7188_s8, %s7187_s30 }
 0x183   :  { %s277_s28 = smul.u32 48, %s275_s22  ;;  %s289_s21 = sshrl.u32 %s6891_s4, 3 }
 0x184   :  { %s290_s16 = sand.u32 7, %s6891_s4   ;;  %s291_s24 = smul.u32 48, %s289_s21 }
 0x185   :  { %s278_s25 = sadd.s32 %s277_s28, %s276_s19 }
 0x186   :  { %s4586_s1 = sshll.u32 %s278_s25, 4  ;;  %s292_s6 = sadd.s32 %s291_s24, %s290_s16 }
 0x187   :  { %s280_s20 = scalar_lea.hbm %s7172_s3, %s4586_s1 }
 0x188   :  { %s6319_s13 = scalar_lea.hbm %s280_s20, 96  ;;  %p6322_p12 = scmp.lt.u32.totalorder %s280_s20, %s7172_s3 }
 0x189   :  { %p6320_p11 = scmp.ne.s32.totalorder %s280_s20, %s6319_s13  ;;  %p6323_p13 = scmp.lt.u32.totalorder %s6744_s7, %s6319_s13 }
 0x18a   :  { %p6325_p1 = scmp.lt.u32.totalorder %s6319_s13, %s280_s20 }
 0x18b   :  { %p6324_p0 = por %p6323_p13, %p6322_p12 }
 0x18d   :  { %p6326_p2 = por %p6325_p1, %p6324_p0 }
 0x18f   :  { %p6327_p3 = pnand %p6326_p2, %p6320_p11 }
 0x191   :  { %6330 = shalt.err (!%p6327_p3)  }
 0x192   :  { %s6331_s15 = scalar_lea.vmem %s285_s12, 96  ;;  %p6336_p5 = scmp.lt.s32.totalorder %s285_s12, %s6724_s29 }
 0x193   :  { %p6332_p4 = scmp.ne.s32.totalorder %s285_s12, %s6331_s15  ;;  %p6337_p6 = scmp.lt.s32.totalorder %s6753_s23, %s6331_s15 }
 0x195   :  { %p6338_p7 = por %p6337_p6, %p6336_p5 }
 0x197   :  { %p6339_p8 = pnand %p6338_p7, %p6332_p4 }
 0x199   :  { %6342 = shalt.err (!%p6339_p8)  }
 0x19a   :  { %287 = dma.hbm_to_vmem [thread:$0]  %s280_s20, 96, %s285_s12, [#allocation3 + $0xa], %s7188_s8, %s7188_s8, %s7187_s30 }
 0x19b   :  { %s4588_s26 = sshll.u32 %s292_s6, 4  ;;  %s6554_s4 = smov [#allocation2 + $0x33]  }
 0x19c   :  { %s298_s22 = sshll.u32 %s6554_s4, 4  ;;  %s294_s14 = scalar_lea.hbm %s7172_s3, %s4588_s26  ;;  %s299_s22 = int_to_ptr.vmem [resolvable:$true] %s298_s22 }
 0x19d   :  { %s6343_s5 = scalar_lea.hbm %s294_s14, 96  ;;  %p6346_p10 = scmp.lt.u32.totalorder %s294_s14, %s7172_s3 }
 0x19e   :  { %p6344_p9 = scmp.ne.s32.totalorder %s294_s14, %s6343_s5  ;;  %p6347_p11 = scmp.lt.u32.totalorder %s6744_s7, %s6343_s5 }
 0x19f   :  { %p6349_p13 = scmp.lt.u32.totalorder %s6343_s5, %s294_s14 }
 0x1a0   :  { %p6348_p12 = por %p6347_p11, %p6346_p10 }
 0x1a2   :  { %p6350_p0 = por %p6349_p13, %p6348_p12 }
 0x1a4   :  { %p6351_p1 = pnand %p6350_p0, %p6344_p9 }
 0x1a6   :  { %6354 = shalt.err (!%p6351_p1)  }
 0x1a7   :  { %s6355_s12 = scalar_lea.vmem %s299_s22, 96  ;;  %p6360_p3 = scmp.lt.s32.totalorder %s299_s22, %s6724_s29 }
 0x1a8   :  { %p6356_p2 = scmp.ne.s32.totalorder %s299_s22, %s6355_s12  ;;  %p6361_p4 = scmp.lt.s32.totalorder %s6753_s23, %s6355_s12 }
 0x1aa   :  { %p6362_p5 = por %p6361_p4, %p6360_p3 }
 0x1ac   :  { %p6363_p6 = pnand %p6362_p5, %p6356_p2 }
 0x1ae   :  { %6366 = shalt.err (!%p6363_p6)  }
 0x1af   :  { %301 = dma.hbm_to_vmem [thread:$0]  %s294_s14, 96, %s299_s22, [#allocation3 + $0xb], %s7188_s8, %s7188_s8, %s7187_s30 }
 0x1b0   :  { %s4589_s28 = sld [smem:[#allocation5 + $0x84]]  ;;  %s6555_s21 = smov [#allocation2 + $0x34]  }
 0x1b1   :  { %s312_s16 = sshll.u32 %s6555_s21, 4  ;;  %s4591_s25 = sld [smem:[#allocation5 + $0x85]]  ;;  %s6956_s16 = int_to_ptr.vmem [resolvable:$true] %s312_s16 }
 0x1b2   :  { %s6556_s24 = smov [#allocation2 + $0x35]   ;;  %s6958_s0 = sld [smem:[#allocation5 + $0x86]] }
 0x1b3   :  { %s326_s1 = sshll.u32 %s6556_s24, 4  ;;  %s6557_s18 = smov [#allocation2 + $0x36]   ;;  %s6960_s1 = int_to_ptr.vmem [resolvable:$true] %s326_s1 }
 0x1b4   :  { %s6962_s20 = sshll.u32 %s6557_s18, 4  ;;  %s6964_s6 = sld [smem:[#allocation5 + $0x87]]  ;;  %s341_s20 = int_to_ptr.vmem [resolvable:$true] %s6962_s20 }
 0x1b6   :  { %s303_s13 = sshrl.u32 %s4589_s28, 3  ;;  %s304_s9 = sand.u32 7, %s4589_s28  }
 0x1b7   :  { %s305_s10 = smul.u32 48, %s303_s13  ;;  %s317_s15 = sshrl.u32 %s4591_s25, 3 }
 0x1b8   :  { %s318_s26 = sand.u32 7, %s4591_s25   ;;  %s319_s4 = smul.u32 48, %s317_s15 }
 0x1b9   :  { %s306_s22 = sadd.s32 %s305_s10, %s304_s9  ;;  %s331_s27 = sshrl.u32 %s6958_s0, 3 }
 0x1ba   :  { %s4590_s19 = sshll.u32 %s306_s22, 4  ;;  %s320_s14 = sadd.s32 %s319_s4, %s318_s26 }
 0x1bb   :  { %s308_s17 = scalar_lea.hbm %s7172_s3, %s4590_s19  ;;  %s4592_s12 = sshll.u32 %s320_s14, 4 }
 0x1bc   :  { %s6367_s21 = scalar_lea.hbm %s308_s17, 96  ;;  %p6370_p8 = scmp.lt.u32.totalorder %s308_s17, %s7172_s3 }
 0x1bd   :  { %p6368_p7 = scmp.ne.s32.totalorder %s308_s17, %s6367_s21  ;;  %p6371_p9 = scmp.lt.u32.totalorder %s6744_s7, %s6367_s21 }
 0x1be   :  { %p6373_p11 = scmp.lt.u32.totalorder %s6367_s21, %s308_s17 }
 0x1bf   :  { %p6372_p10 = por %p6371_p9, %p6370_p8 }
 0x1c1   :  { %p6374_p12 = por %p6373_p11, %p6372_p10 }
 0x1c3   :  { %p6375_p13 = pnand %p6374_p12, %p6368_p7 }
 0x1c5   :  { %6378 = shalt.err (!%p6375_p13)  }
 0x1c6   :  { %s6379_s28 = scalar_lea.vmem %s6956_s16, 96  ;;  %p6384_p1 = scmp.lt.s32.totalorder %s6956_s16, %s6724_s29 }
 0x1c7   :  { %p6380_p0 = scmp.ne.s32.totalorder %s6956_s16, %s6379_s28  ;;  %p6385_p2 = scmp.lt.s32.totalorder %s6753_s23, %s6379_s28 }
 0x1c9   :  { %p6386_p3 = por %p6385_p2, %p6384_p1 }
 0x1cb   :  { %p6387_p4 = pnand %p6386_p3, %p6380_p0 }
 0x1cd   :  { %6390 = shalt.err (!%p6387_p4)  }
 0x1ce   :  { %315 = dma.hbm_to_vmem [thread:$0]  %s308_s17, 96, %s6956_s16, [#allocation3 + $0xc], %s7188_s8, %s7188_s8, %s7187_s30 }
 0x1cf   :  { %s322_s9 = scalar_lea.hbm %s7172_s3, %s4592_s12  ;;  %s332_s10 = sand.u32 7, %s6958_s0  }
 0x1d0   :  { %s6391_s15 = scalar_lea.hbm %s322_s9, 96  ;;  %p6394_p6 = scmp.lt.u32.totalorder %s322_s9, %s7172_s3 }
 0x1d1   :  { %p6392_p5 = scmp.ne.s32.totalorder %s322_s9, %s6391_s15  ;;  %p6395_p7 = scmp.lt.u32.totalorder %s6744_s7, %s6391_s15 }
 0x1d2   :  { %p6397_p9 = scmp.lt.u32.totalorder %s6391_s15, %s322_s9 }
 0x1d3   :  { %p6396_p8 = por %p6395_p7, %p6394_p6 }
 0x1d5   :  { %p6398_p10 = por %p6397_p9, %p6396_p8 }
 0x1d7   :  { %p6399_p11 = pnand %p6398_p10, %p6392_p5 }
 0x1d9   :  { %6402 = shalt.err (!%p6399_p11)  }
 0x1da   :  { %s6403_s16 = scalar_lea.vmem %s6960_s1, 96  ;;  %p6408_p13 = scmp.lt.s32.totalorder %s6960_s1, %s6724_s29 }
 0x1db   :  { %p6404_p12 = scmp.ne.s32.totalorder %s6960_s1, %s6403_s16  ;;  %p6409_p0 = scmp.lt.s32.totalorder %s6753_s23, %s6403_s16 }
 0x1dd   :  { %p6410_p1 = por %p6409_p0, %p6408_p13 }
 0x1df   :  { %p6411_p2 = pnand %p6410_p1, %p6404_p12 }
 0x1e1   :  { %6414 = shalt.err (!%p6411_p2)  }
 0x1e2   :  { %329 = dma.hbm_to_vmem [thread:$0]  %s322_s9, 96, %s6960_s1, [#allocation3 + $0xd], %s7188_s8, %s7188_s8, %s7187_s30 }
 0x1e3   :  { %s333_s22 = smul.u32 48, %s331_s27  ;;  %s345_s19 = sshrl.u32 %s6964_s6, 3 }
 0x1e4   :  { %s346_s14 = sand.u32 7, %s6964_s6   ;;  %s347_s2 = smul.u32 48, %s345_s19 }
 0x1e5   :  { %s334_s5 = sadd.s32 %s333_s22, %s332_s10 }
 0x1e6   :  { %s4594_s17 = sshll.u32 %s334_s5, 4  ;;  %s348_s18 = sadd.s32 %s347_s2, %s346_s14 }
 0x1e7   :  { %s336_s24 = scalar_lea.hbm %s7172_s3, %s4594_s17 }
 0x1e8   :  { %s6415_s28 = scalar_lea.hbm %s336_s24, 96  ;;  %p6418_p4 = scmp.lt.u32.totalorder %s336_s24, %s7172_s3 }
 0x1e9   :  { %p6416_p3 = scmp.ne.s32.totalorder %s336_s24, %s6415_s28  ;;  %p6419_p5 = scmp.lt.u32.totalorder %s6744_s7, %s6415_s28 }
 0x1ea   :  { %p6421_p7 = scmp.lt.u32.totalorder %s6415_s28, %s336_s24 }
 0x1eb   :  { %p6420_p6 = por %p6419_p5, %p6418_p4 }
 0x1ed   :  { %p6422_p8 = por %p6421_p7, %p6420_p6 }
 0x1ef   :  { %p6423_p9 = pnand %p6422_p8, %p6416_p3 }
 0x1f1   :  { %6426 = shalt.err (!%p6423_p9)  }
 0x1f2   :  { %s6427_s1 = scalar_lea.vmem %s341_s20, 96  ;;  %p6432_p11 = scmp.lt.s32.totalorder %s341_s20, %s6724_s29 }
 0x1f3   :  { %p6428_p10 = scmp.ne.s32.totalorder %s341_s20, %s6427_s1  ;;  %p6433_p12 = scmp.lt.s32.totalorder %s6753_s23, %s6427_s1 }
 0x1f5   :  { %p6434_p13 = por %p6433_p12, %p6432_p11 }
 0x1f7   :  { %p6435_p0 = pnand %p6434_p13, %p6428_p10 }
 0x1f9   :  { %6438 = shalt.err (!%p6435_p0)  }
 0x1fa   :  { %343 = dma.hbm_to_vmem [thread:$0]  %s336_s24, 96, %s341_s20, [#allocation3 + $0xe], %s7188_s8, %s7188_s8, %s7187_s30 }
 0x1fb   :  { %s4596_s0 = sshll.u32 %s348_s18, 4  ;;  %s6558_s6 = smov [#allocation2 + $0x37]  }
 0x1fc   :  { %s354_s27 = sshll.u32 %s6558_s6, 4  ;;  %s350_s15 = scalar_lea.hbm %s7172_s3, %s4596_s0  ;;  %s355_s27 = int_to_ptr.vmem [resolvable:$true] %s354_s27 }
 0x1fd   :  { %s6439_s26 = scalar_lea.hbm %s350_s15, 96  ;;  %p6442_p2 = scmp.lt.u32.totalorder %s350_s15, %s7172_s3 }
 0x1fe   :  { %p6440_p1 = scmp.ne.s32.totalorder %s350_s15, %s6439_s26  ;;  %p6443_p3 = scmp.lt.u32.totalorder %s6744_s7, %s6439_s26 }
 0x1ff   :  { %p6445_p5 = scmp.lt.u32.totalorder %s6439_s26, %s350_s15 }
 0x200   :  { %p6444_p4 = por %p6443_p3, %p6442_p2 }
 0x202   :  { %p6446_p6 = por %p6445_p5, %p6444_p4 }
 0x204   :  { %p6447_p7 = pnand %p6446_p6, %p6440_p1 }
 0x206   :  { %6450 = shalt.err (!%p6447_p7)  }
 0x207   :  { %s6451_s20 = scalar_lea.vmem %s355_s27, 96  ;;  %p6456_p9 = scmp.lt.s32.totalorder %s355_s27, %s6724_s29 }
 0x208   :  { %p6452_p8 = scmp.ne.s32.totalorder %s355_s27, %s6451_s20  ;;  %p6457_p10 = scmp.lt.s32.totalorder %s6753_s23, %s6451_s20 }
 0x20a   :  { %p6458_p11 = por %p6457_p10, %p6456_p9 }
 0x20c   :  { %p6459_p12 = pnand %p6458_p11, %p6452_p8 }
 0x20e   :  { %6462 = shalt.err (!%p6459_p12)  }
 0x20f   :  { %357 = dma.hbm_to_vmem [thread:$0]  %s350_s15, 96, %s355_s27, [#allocation3 + $0xf], %s7188_s8, %s7188_s8, %s7187_s30 }
 0x210   :  { %6495 = dma.done.wait [#allocation3], 96 }
 0x211   :  { %6496 = vsyncadd [#allocation3], 4294967200 }
 0x212   :  { %6497 = dma.done.wait [#allocation3 + $0x1], 96 }
 0x213   :  { %6498 = vsyncadd [#allocation3 + $0x1], 4294967200 }
 0x214   :  { %6499 = dma.done.wait [#allocation3 + $0x2], 96 }
 0x215   :  { %6500 = vsyncadd [#allocation3 + $0x2], 4294967200 }
 0x216   :  { %6501 = dma.done.wait [#allocation3 + $0x3], 96 }
 0x217   :  { %6502 = vsyncadd [#allocation3 + $0x3], 4294967200 }
 0x218   :  { %6503 = dma.done.wait [#allocation3 + $0x4], 96 }
 0x219   :  { %6504 = vsyncadd [#allocation3 + $0x4], 4294967200 }
 0x21a   :  { %6505 = dma.done.wait [#allocation3 + $0x5], 96 }
 0x21b   :  { %6506 = vsyncadd [#allocation3 + $0x5], 4294967200 }
 0x21c   :  { %6507 = dma.done.wait [#allocation3 + $0x6], 96 }
 0x21d   :  { %6508 = vsyncadd [#allocation3 + $0x6], 4294967200 }
 0x21e   :  { %6509 = dma.done.wait [#allocation3 + $0x7], 96 }
 0x21f   :  { %6510 = vsyncadd [#allocation3 + $0x7], 4294967200 }
 0x220   :  { %6511 = dma.done.wait [#allocation3 + $0x8], 96 }
 0x221   :  { %6512 = vsyncadd [#allocation3 + $0x8], 4294967200 }
 0x222   :  { %6513 = dma.done.wait [#allocation3 + $0x9], 96 }
 0x223   :  { %6514 = vsyncadd [#allocation3 + $0x9], 4294967200 }
 0x224   :  { %6515 = dma.done.wait [#allocation3 + $0xa], 96 }
 0x225   :  { %6516 = vsyncadd [#allocation3 + $0xa], 4294967200 }
 0x226   :  { %6517 = dma.done.wait [#allocation3 + $0xb], 96 }
 0x227   :  { %6518 = vsyncadd [#allocation3 + $0xb], 4294967200 }
 0x228   :  { %6519 = dma.done.wait [#allocation3 + $0xc], 96 }
 0x229   :  { %6520 = vsyncadd [#allocation3 + $0xc], 4294967200 }
 0x22a   :  { %6521 = dma.done.wait [#allocation3 + $0xd], 96 }
 0x22b   :  { %6522 = vsyncadd [#allocation3 + $0xd], 4294967200 }
 0x22c   :  { %6523 = dma.done.wait [#allocation3 + $0xe], 96 }
 0x22d   :  { %6524 = vsyncadd [#allocation3 + $0xe], 4294967200 }
 0x22e   :  { %6525 = dma.done.wait [#allocation3 + $0xf], 96 }
 0x22f   :  { %6526 = vsyncadd [#allocation3 + $0xf], 4294967200  ;;  %v409_v0 = vlaneseq  ;;  %v390_v3 = vld [vmem:[#allocation9] sm:$0x3]  ;;  %vm392_vm0 = vcmask 58368   ;;  %vm882_vm1 = vcmask 1041409  }
 0x230   :  { %v391_v4 = vcvt.s32.f32 %v390_v3  ;;  %v5167_v5 = vld [vmem:[#allocation12 + $0x4] ss:$24 sps:$4 sm:$0xff]   ;;  %v5171_v7 = vld [vmem:[#allocation12] ss:$24 sps:$4 sm:$0xff]   ;;  %v5173_v11 = vld [vmem:[#allocation12 + $0x34] ss:$24 sps:$4 sm:$0xff]  }
 0x231   :  { %v7029_v1 = vshrl.u32 %v409_v0, 7  ;;  %v5169_v6 = vld [vmem:[#allocation12 + $0xc] ss:$24 sps:$4 sm:$0xff]   ;;  %v5172_v8 = vld [vmem:[#allocation12 + $0x8] ss:$24 sps:$4 sm:$0xff]   ;;  %2346 = vmatprep.subr.bf16.mxu0 %v5167_v5  ;;  %vm3004_vm2 = vcmask 261120  }
 0x232   :  { %v393_v9 = vsel %vm392_vm0, %v391_v4, 0.0  ;;  %2469 = vmatprep.subr.bf16.mxu1 %v5169_v6  ;;  %v5175_v12 = vld [vmem:[#allocation12 + $0x3c] ss:$24 sps:$4 sm:$0xff]   ;;  %2347 = vmatpush1.bf16.msra.mxu0 %v5171_v7  ;;  %v5177_v13 = vld [vmem:[#allocation12 + $0x30] ss:$24 sps:$4 sm:$0xff]   ;;  %vm4353_vm3 = vcmask 1041408  }
 0x233   :  { %v7032_v2 = vsub.s32 0, %v7029_v1  ;;  %394 = vadd.xlane.f32.xlu0 %v393_v9  ;;  %v5178_v14 = vld [vmem:[#allocation12 + $0x38] ss:$24 sps:$4 sm:$0xff]   ;;  %2470 = vmatpush1.bf16.msra.mxu1 %v5172_v8  ;;  %v5179_v15 = vld [vmem:[#allocation12 + $0x64] ss:$24 sps:$4 sm:$0xff]   ;;  %v7036_v26 = vsub.s32 1, %v7029_v1 }
 0x234   :  { %2348 = vmatprep.subr.bf16.mxu0 %v5173_v11  ;;  %2471 = vmatprep.subr.bf16.mxu1 %v5175_v12  ;;  %v5181_v16 = vld [vmem:[#allocation12 + $0x6c] ss:$24 sps:$4 sm:$0xff]   ;;  %v5183_v17 = vld [vmem:[#allocation12 + $0x60] ss:$24 sps:$4 sm:$0xff]   ;;  %v5187_v20 = vld [vmem:[#allocation12 + $0x9c] ss:$24 sps:$4 sm:$0xff]  }
 0x235   :  { %v412_v10 = vrot.slane %v391_v4, %v7032_v2  ;;  %v5184_v18 = vld [vmem:[#allocation12 + $0x68] ss:$24 sps:$4 sm:$0xff]   ;;  %v5185_v19 = vld [vmem:[#allocation12 + $0x94] ss:$24 sps:$4 sm:$0xff]   ;;  %v5190_v22 = vld [vmem:[#allocation12 + $0x98] ss:$24 sps:$4 sm:$0xff]   ;;  %v419_v31 = vrot.slane %v391_v4, %v7036_v26 }
 0x236   :  { %2349 = vmatpush1.bf16.msra.mxu0 %v5177_v13  ;;  %v5189_v21 = vld [vmem:[#allocation12 + $0x90] ss:$24 sps:$4 sm:$0xff]   ;;  %v5191_v23 = vld [vmem:[#allocation12 + $0xc4] ss:$24 sps:$4 sm:$0xff]   ;;  %v5195_v25 = vld [vmem:[#allocation12 + $0xc0] ss:$24 sps:$4 sm:$0xff]  }
 0x237   :  { %414 = vbcast.lane.b32.xlu1 %v412_v10, 256  ;;  %2472 = vmatpush1.bf16.msra.mxu1 %v5178_v14  ;;  %v5193_v24 = vld [vmem:[#allocation12 + $0xcc] ss:$24 sps:$4 sm:$0xff]   ;;  %v5196_v27 = vld [vmem:[#allocation12 + $0xc8] ss:$24 sps:$4 sm:$0xff]   ;;  %s6561_s3 = smov [#allocation19]  }
 0x238   :  { %2350 = vmatprep.subr.bf16.mxu0 %v5179_v15  ;;  %2473 = vmatprep.subr.bf16.mxu1 %v5181_v16  ;;  %v5197_v28 = vld [vmem:[#allocation12 + $0xf4] ss:$24 sps:$4 sm:$0xff]   ;;  %v5201_v30 = vld [vmem:[#allocation12 + $0xf0] ss:$24 sps:$4 sm:$0xff]   ;;  %v5203_v33 = vld [vmem:[#allocation12 + $0x124] ss:$24 sps:$4 sm:$0xff]  }
 0x239   :  { %v5199_v29 = vld [vmem:[#allocation12 + $0xfc] ss:$24 sps:$4 sm:$0xff]   ;;  %v5202_v32 = vld [vmem:[#allocation12 + $0xf8] ss:$24 sps:$4 sm:$0xff]   ;;  %v5205_v34 = vld [vmem:[#allocation12 + $0x12c] ss:$24 sps:$4 sm:$0xff]  }
 0x23a   :  { %2351 = vmatpush1.bf16.msra.mxu0 %v5183_v17  ;;  %v5207_v35 = vld [vmem:[#allocation12 + $0x120] ss:$24 sps:$4 sm:$0xff]   ;;  %v5209_v37 = vld [vmem:[#allocation12 + $0x154] ss:$24 sps:$4 sm:$0xff]   ;;  %v5213_v39 = vld [vmem:[#allocation12 + $0x150] ss:$24 sps:$4 sm:$0xff]  }
 0x23b   :  { %2474 = vmatpush1.bf16.msra.mxu1 %v5184_v18  ;;  %2352 = vmatprep.subr.bf16.mxu0 %v5185_v19  ;;  %v5208_v36 = vld [vmem:[#allocation12 + $0x128] ss:$24 sps:$4 sm:$0xff]   ;;  %v5211_v38 = vld [vmem:[#allocation12 + $0x15c] ss:$24 sps:$4 sm:$0xff]   ;;  %v5214_v40 = vld [vmem:[#allocation12 + $0x158] ss:$24 sps:$4 sm:$0xff]  }
 0x23c   :  { %2475 = vmatprep.subr.bf16.mxu1 %v5187_v20  ;;  %v5215_v41 = vld [vmem:[#allocation12 + $0x184] ss:$24 sps:$4 sm:$0xff]   ;;  %v5219_v43 = vld [vmem:[#allocation12 + $0x180] ss:$24 sps:$4 sm:$0xff]   ;;  %v5221_v45 = vld [vmem:[#allocation12 + $0x1b4] ss:$24 sps:$4 sm:$0xff]  }
 0x23d   :  { %v5217_v42 = vld [vmem:[#allocation12 + $0x18c] ss:$24 sps:$4 sm:$0xff]   ;;  %v5220_v44 = vld [vmem:[#allocation12 + $0x188] ss:$24 sps:$4 sm:$0xff]   ;;  %v5223_v46 = vld [vmem:[#allocation12 + $0x1bc] ss:$24 sps:$4 sm:$0xff]  }
 0x23e   :  { %2353 = vmatpush1.bf16.msra.mxu0 %v5189_v21  ;;  %v5225_v47 = vld [vmem:[#allocation12 + $0x1b0] ss:$24 sps:$4 sm:$0xff]   ;;  %v5227_v49 = vld [vmem:[#allocation12 + $0x1e4] ss:$24 sps:$4 sm:$0xff]   ;;  %v5231_v51 = vld [vmem:[#allocation12 + $0x1e0] ss:$24 sps:$4 sm:$0xff]  }
 0x23f   :  { %2476 = vmatpush1.bf16.msra.mxu1 %v5190_v22  ;;  %2354 = vmatprep.subr.bf16.mxu0 %v5191_v23  ;;  %v5226_v48 = vld [vmem:[#allocation12 + $0x1b8] ss:$24 sps:$4 sm:$0xff]   ;;  %v5229_v50 = vld [vmem:[#allocation12 + $0x1ec] ss:$24 sps:$4 sm:$0xff]   ;;  %v5232_v52 = vld [vmem:[#allocation12 + $0x1e8] ss:$24 sps:$4 sm:$0xff]  }
 0x240   :  { %2477 = vmatprep.subr.bf16.mxu1 %v5193_v24  ;;  %v5233_v53 = vld [vmem:[#allocation12 + $0x214] ss:$24 sps:$4 sm:$0xff]   ;;  %v5237_v55 = vld [vmem:[#allocation12 + $0x210] ss:$24 sps:$4 sm:$0xff]   ;;  %v5239_v57 = vld [vmem:[#allocation12 + $0x244] ss:$24 sps:$4 sm:$0xff]  }
 0x241   :  { %v5235_v54 = vld [vmem:[#allocation12 + $0x21c] ss:$24 sps:$4 sm:$0xff]   ;;  %v5238_v56 = vld [vmem:[#allocation12 + $0x218] ss:$24 sps:$4 sm:$0xff]   ;;  %v5241_v58 = vld [vmem:[#allocation12 + $0x24c] ss:$24 sps:$4 sm:$0xff]  }
 0x242   :  { %2355 = vmatpush1.bf16.msra.mxu0 %v5195_v25  ;;  %v5243_v59 = vld [vmem:[#allocation12 + $0x240] ss:$24 sps:$4 sm:$0xff]   ;;  %v5245_v61 = vld [vmem:[#allocation12 + $0x274] ss:$24 sps:$4 sm:$0xff]   ;;  %v5249_v63 = vld [vmem:[#allocation12 + $0x270] ss:$24 sps:$4 sm:$0xff]  }
 0x243   :  { %2478 = vmatpush1.bf16.msra.mxu1 %v5196_v27  ;;  %2356 = vmatprep.subr.bf16.mxu0 %v5197_v28  ;;  %v5244_v60 = vld [vmem:[#allocation12 + $0x248] ss:$24 sps:$4 sm:$0xff]   ;;  %v5247_v62 = vld [vmem:[#allocation12 + $0x27c] ss:$24 sps:$4 sm:$0xff]   ;;  %v5250_v0 = vld [vmem:[#allocation12 + $0x278] ss:$24 sps:$4 sm:$0xff]  }
 0x244   :  { %2479 = vmatprep.subr.bf16.mxu1 %v5199_v29  ;;  %v5251_v3 = vld [vmem:[#allocation12 + $0x2a4] ss:$24 sps:$4 sm:$0xff]   ;;  %v5255_v5 = vld [vmem:[#allocation12 + $0x2a0] ss:$24 sps:$4 sm:$0xff]   ;;  %v5257_v7 = vld [vmem:[#allocation12 + $0x2d4] ss:$24 sps:$4 sm:$0xff]  }
 0x245   :  { %v5253_v4 = vld [vmem:[#allocation12 + $0x2ac] ss:$24 sps:$4 sm:$0xff]   ;;  %v5256_v6 = vld [vmem:[#allocation12 + $0x2a8] ss:$24 sps:$4 sm:$0xff]   ;;  %v5259_v8 = vld [vmem:[#allocation12 + $0x2dc] ss:$24 sps:$4 sm:$0xff]  }
 0x246   :  { %2357 = vmatpush1.bf16.msra.mxu0 %v5201_v30  ;;  %v5261_v9 = vld [vmem:[#allocation12 + $0x2d0] ss:$24 sps:$4 sm:$0xff]   ;;  %v5265_v11 = vld [vmem:[#allocation12 + $0x304] ss:$24 sps:$4 sm:$0xff]   ;;  %v400_v16 = vld [vmem:[#allocation2 + $0x18] sm:$0xff]  ;;  %s4376_s29 = sshll.u32 %s6561_s3, 4  ;;  %s4377_s29 = int_to_ptr.vmem [resolvable:$true] %s4376_s29 }
 0x247   :  { %2480 = vmatpush1.bf16.msra.mxu1 %v5202_v32  ;;  %2358 = vmatprep.subr.bf16.mxu0 %v5203_v33  ;;  %v5262_v10 = vld [vmem:[#allocation12 + $0x2d8] ss:$24 sps:$4 sm:$0xff]   ;;  %v5268_v12 = vld [vmem:[#allocation12 + $0x30c] ss:$24 sps:$4 sm:$0xff]   ;;  %v397_v15 = vld [vmem:[#allocation2] sm:$0xff]  ;;  %s6463_s7 = scalar_lea.vmem %s4377_s29, 192  ;;  %p6468_p0 = scmp.lt.s32.totalorder %s4377_s29, %s4377_s29 }
 0x248   :  { %2481 = vmatprep.subr.bf16.mxu1 %v5205_v34  ;;  %v398_v13 = vld [vmem:[#allocation2 + $0x8] sm:$0xff]  ;;  %v399_v17 = vld [vmem:[#allocation2 + $0x10] sm:$0xff]  ;;  %v401_v22 = vld [vmem:[#allocation2 + $0x20] sm:$0xff]  ;;  %p6464_p13 = scmp.ne.s32.totalorder %s4377_s29, %s6463_s7  ;;  %p6469_p1 = scmp.lt.s32.totalorder %s6463_s7, %s6463_s7 }
 0x249   :  { %421 = vbcast.lane.b32.xlu0 %v419_v31, 256  ;;  %v402_v18 = vld [vmem:[#allocation2 + $0x28] sm:$0xff] }
 0x24a   :  { %2359 = vmatpush1.bf16.msra.mxu0 %v5207_v35  ;;  %p6470_p2 = por %p6469_p1, %p6468_p0 }
 0x24b   :  { %2482 = vmatpush1.bf16.msra.mxu1 %v5208_v36  ;;  %2360 = vmatprep.subr.bf16.mxu0 %v5209_v37 }
 0x24c   :  { %2483 = vmatprep.subr.bf16.mxu1 %v5211_v38  ;;  %p6471_p3 = pnand %p6470_p2, %p6464_p13 }
 0x24e   :  { %2361 = vmatpush1.bf16.msra.mxu0 %v5213_v39 }
 0x24f   :  { %2484 = vmatpush1.bf16.msra.mxu1 %v5214_v40  ;;  %2362 = vmatprep.subr.bf16.mxu0 %v5215_v41 }
 0x250   :  { %2485 = vmatprep.subr.bf16.mxu1 %v5217_v42 }
 0x252   :  { %2363 = vmatpush1.bf16.msra.mxu0 %v5219_v43 }
 0x253   :  { %2486 = vmatpush1.bf16.msra.mxu1 %v5220_v44  ;;  %2364 = vmatprep.subr.bf16.mxu0 %v5221_v45 }
 0x254   :  { %2487 = vmatprep.subr.bf16.mxu1 %v5223_v46 }
 0x256   :  { %2365 = vmatpush1.bf16.msra.mxu0 %v5225_v47  ;;  %v403_v47 = vld [vmem:[#allocation2 + $0x30] sm:$0xff] }
 0x257   :  { %2488 = vmatpush1.bf16.msra.mxu1 %v5226_v48  ;;  %2366 = vmatprep.subr.bf16.mxu0 %v5227_v49  ;;  %v404_v48 = vld [vmem:[#allocation2 + $0x38] sm:$0xff] }
 0x258   :  { %2489 = vmatprep.subr.bf16.mxu1 %v5229_v50 }
 0x25a   :  { %2367 = vmatpush1.bf16.msra.mxu0 %v5231_v51 }
 0x25b   :  { %2490 = vmatpush1.bf16.msra.mxu1 %v5232_v52  ;;  %2368 = vmatprep.subr.bf16.mxu0 %v5233_v53  ;;  %v405_v53 = vld [vmem:[#allocation2 + $0x40] sm:$0xff] }
 0x25c   :  { %2491 = vmatprep.subr.bf16.mxu1 %v5235_v54  ;;  %v406_v54 = vld [vmem:[#allocation2 + $0x48] sm:$0xff] }
 0x25e   :  { %2369 = vmatpush1.bf16.msra.mxu0 %v5237_v55  ;;  %v407_v55 = vld [vmem:[#allocation2 + $0x50] sm:$0xff] }
 0x25f   :  { %2492 = vmatpush1.bf16.msra.mxu1 %v5238_v56  ;;  %2370 = vmatprep.subr.bf16.mxu0 %v5239_v57  ;;  %v408_v56 = vld [vmem:[#allocation2 + $0x58] sm:$0xff] }
 0x260   :  { %2493 = vmatprep.subr.bf16.mxu1 %v5241_v58 }
 0x262   :  { %2371 = vmatpush1.bf16.msra.mxu0 %v5243_v59 }
 0x263   :  { %2494 = vmatpush1.bf16.msra.mxu1 %v5244_v60  ;;  %2372 = vmatprep.subr.bf16.mxu0 %v5245_v61 }
 0x264   :  { %2495 = vmatprep.subr.bf16.mxu1 %v5247_v62 }
 0x266   :  { %2373 = vmatpush1.bf16.msra.mxu0 %v5249_v63 }
 0x267   :  { %2496 = vmatpush1.bf16.msra.mxu1 %v5250_v0  ;;  %2374 = vmatprep.subr.bf16.mxu0 %v5251_v3 }
 0x268   :  { %2497 = vmatprep.subr.bf16.mxu1 %v5253_v4 }
 0x26a   :  { %2375 = vmatpush1.bf16.msra.mxu0 %v5255_v5 }
 0x26b   :  { %2498 = vmatpush1.bf16.msra.mxu1 %v5256_v6  ;;  %2376 = vmatprep.subr.bf16.mxu0 %v5257_v7 }
 0x26c   :  { %2499 = vmatprep.subr.bf16.mxu1 %v5259_v8 }
 0x26e   :  { %2377 = vmatpush1.bf16.msra.mxu0 %v5261_v9 }
 0x26f   :  { %2500 = vmatpush1.bf16.msra.mxu1 %v5262_v10  ;;  %2387 = vmatprep.subr.bf16.mxu0 %v5265_v11 }
 0x270   :  { %2510 = vmatprep.subr.bf16.mxu1 %v5268_v12 }
 0x2a9   :  { %v415_v14 = vpop.permute.xlu1 %414 }
 0x2aa   :  { %v424_v19 = vmul.f32 %v415_v14, %v398_v13  ;;  %v423_v20 = vmul.f32 %v415_v14, %v397_v15  ;;  %v426_v21 = vmul.f32 %v415_v14, %v400_v16  ;;  %v425_v23 = vmul.f32 %v415_v14, %v399_v17 }
 0x2ab   :  { %v428_v24 = vmul.f32 %v415_v14, %v402_v18  ;;  %v427_v27 = vmul.f32 %v415_v14, %v401_v22 }
 0x2ac   :  { %v441_v25 = vrot.slane %v424_v19, 4  ;;  %v435_v28 = vrot.slane %v423_v20, 4  ;;  %v453_v29 = vrot.slane %v426_v21, 4  ;;  %v447_v30 = vrot.slane %v425_v23, 4 }
 0x2ad   :  { %v465_v31 = vrot.slane %v428_v24, 4  ;;  %v459_v35 = vrot.slane %v427_v27, 4 }
 0x2ae   :  { %v442_v32 = vadd.f32 %v441_v25, %v424_v19  ;;  %v436_v33 = vadd.f32 %v435_v28, %v423_v20  ;;  %v454_v34 = vadd.f32 %v453_v29, %v426_v21  ;;  %v448_v36 = vadd.f32 %v447_v30, %v425_v23 }
 0x2af   :  { %v466_v37 = vadd.f32 %v465_v31, %v428_v24  ;;  %v460_v39 = vadd.f32 %v459_v35, %v427_v27 }
 0x2b0   :  { %v443_v38 = vrot.slane %v442_v32, 2  ;;  %v437_v40 = vrot.slane %v436_v33, 2  ;;  %v455_v41 = vrot.slane %v454_v34, 2  ;;  %v449_v42 = vrot.slane %v448_v36, 2 }
 0x2b1   :  { %v467_v43 = vrot.slane %v466_v37, 2  ;;  %v461_v45 = vrot.slane %v460_v39, 2 }
 0x2b2   :  { %v444_v44 = vadd.f32 %v443_v38, %v442_v32  ;;  %v438_v49 = vadd.f32 %v437_v40, %v436_v33  ;;  %v456_v50 = vadd.f32 %v455_v41, %v454_v34  ;;  %v450_v51 = vadd.f32 %v449_v42, %v448_v36 }
 0x2b3   :  { %v468_v57 = vadd.f32 %v467_v43, %v466_v37  ;;  %v462_v59 = vadd.f32 %v461_v45, %v460_v39 }
 0x2b4   :  { %v445_v58 = vrot.slane %v444_v44, 1  ;;  %v439_v62 = vrot.slane %v438_v49, 1  ;;  %v457_v63 = vrot.slane %v456_v50, 1  ;;  %v451_v5 = vrot.slane %v450_v51, 1 }
 0x2b5   :  { %v469_v9 = vrot.slane %v468_v57, 1  ;;  %v463_v19 = vrot.slane %v462_v59, 1 }
 0x2b6   :  { %v446_v23 = vadd.f32 %v445_v58, %v444_v44  ;;  %v440_v28 = vadd.f32 %v439_v62, %v438_v49  ;;  %v458_v32 = vadd.f32 %v457_v63, %v456_v50  ;;  %v452_v37 = vadd.f32 %v451_v5, %v450_v51 }
 0x2c0   :  { %v395_v46 = vpop.xlane.xlu0 %394 }
 0x2c1   :  { %v396_v52 = vmax.f32 %v395_v46, 1.0 }
 0x2c3   :  { %5899 = vrcp.f32 %v396_v52  ;;  %v508_v60 = vrot.slane %v396_v52, 1 }
 0x2c4   :  { %v422_v61 = vpop.permute.xlu0 %421 }
 0x2c5   :  { %v429_v0 = vmul.f32 %v422_v61, %v403_v47  ;;  %v430_v3 = vmul.f32 %v422_v61, %v404_v48  ;;  %v431_v4 = vmul.f32 %v422_v61, %v405_v53  ;;  %v432_v6 = vmul.f32 %v422_v61, %v406_v54 }
 0x2c6   :  { %v433_v7 = vmul.f32 %v422_v61, %v407_v55  ;;  %v434_v8 = vmul.f32 %v422_v61, %v408_v56  ;;  %5901 = vrcp.f32 %v508_v60  ;;  %v470_v54 = vadd.f32 %v469_v9, %v468_v57 }
 0x2c7   :  { %v471_v10 = vrot.slane %v429_v0, 4  ;;  %v477_v11 = vrot.slane %v430_v3, 4  ;;  %v483_v12 = vrot.slane %v431_v4, 4  ;;  %v489_v13 = vrot.slane %v432_v6, 4 }
 0x2c8   :  { %v495_v14 = vrot.slane %v433_v7, 4  ;;  %v501_v15 = vrot.slane %v434_v8, 4  ;;  %v464_v60 = vadd.f32 %v463_v19, %v462_v59 }
 0x2c9   :  { %v472_v16 = vadd.f32 %v471_v10, %v429_v0  ;;  %v478_v17 = vadd.f32 %v477_v11, %v430_v3  ;;  %v484_v18 = vadd.f32 %v483_v12, %v431_v4  ;;  %v490_v20 = vadd.f32 %v489_v13, %v432_v6 }
 0x2ca   :  { %v496_v21 = vadd.f32 %v495_v14, %v433_v7  ;;  %v502_v22 = vadd.f32 %v501_v15, %v434_v8 }
 0x2cb   :  { %v473_v24 = vrot.slane %v472_v16, 2  ;;  %v479_v25 = vrot.slane %v478_v17, 2  ;;  %v485_v27 = vrot.slane %v484_v18, 2  ;;  %v491_v29 = vrot.slane %v490_v20, 2 }
 0x2cc   :  { %v497_v30 = vrot.slane %v496_v21, 2  ;;  %v503_v31 = vrot.slane %v502_v22, 2 }
 0x2cd   :  { %v5900_v33 = vpop.eup %5899  ;;  %v474_v34 = vadd.f32 %v473_v24, %v472_v16  ;;  %v480_v35 = vadd.f32 %v479_v25, %v478_v17  ;;  %v486_v36 = vadd.f32 %v485_v27, %v484_v18  ;;  %v492_v38 = vadd.f32 %v491_v29, %v490_v20  ;;  %v5263_v25 = vld [vmem:[#allocation12 + $0x300] ss:$24 sps:$4 sm:$0xff]  }
 0x2ce   :  { %v498_v39 = vadd.f32 %v497_v30, %v496_v21  ;;  %v504_v40 = vadd.f32 %v503_v31, %v502_v22  ;;  %v513_v41 = vmul.f32 %v5900_v33, %v446_v23  ;;  %v512_v45 = vmul.f32 %v5900_v33, %v440_v28  ;;  %v5266_v27 = vld [vmem:[#allocation12 + $0x308] ss:$24 sps:$4 sm:$0xff]  }
 0x2cf   :  { %v487_v42 = vrot.slane %v486_v36, 1  ;;  %v481_v43 = vrot.slane %v480_v35, 1  ;;  %v475_v44 = vrot.slane %v474_v34, 1  ;;  %v493_v48 = vrot.slane %v492_v38, 1 }
 0x2d0   :  { %v499_v46 = vrot.slane %v498_v39, 1  ;;  %v526_v47 = vpack.c.bf16 %v513_v41, %v513_v41  ;;  %v515_v49 = vmul.f32 %v5900_v33, %v458_v32  ;;  %v5902_v55 = vpop.eup %5901  ;;  %v525_v51 = vpack.c.bf16 %v512_v45, %v512_v45 }
 0x2d1   :  { %v488_v52 = vadd.f32 %v487_v42, %v486_v36  ;;  %v482_v50 = vadd.f32 %v481_v43, %v480_v35  ;;  %v476_v53 = vadd.f32 %v475_v44, %v474_v34  ;;  %v494_v58 = vadd.f32 %v493_v48, %v492_v38  ;;  %v5271_v38 = vld [vmem:[#allocation12 + $0x334] ss:$24 sps:$4 sm:$0xff]   ;;  %v5269_v48 = vld [vmem:[#allocation12 + $0x330] ss:$24 sps:$4 sm:$0xff]  }
 0x2d2   :  { %v500_v56 = vadd.f32 %v499_v46, %v498_v39  ;;  %v528_v63 = vpack.c.bf16 %v515_v49, %v515_v49  ;;  %v514_v0 = vmul.f32 %v5900_v33, %v452_v37  ;;  %v870_v3 = vunpack.c.l.b16 %v526_v47  ;;  %v5274_v39 = vld [vmem:[#allocation12 + $0x33c] ss:$24 sps:$4 sm:$0xff]   ;;  %v5272_v49 = vld [vmem:[#allocation12 + $0x338] ss:$24 sps:$4 sm:$0xff]  }
 0x2d3   :  { %v520_v61 = vmul.f32 %v5902_v55, %v482_v50  ;;  %v519_v62 = vmul.f32 %v5902_v55, %v476_v53  ;;  %v522_v4 = vmul.f32 %v5902_v55, %v494_v58  ;;  %v521_v5 = vmul.f32 %v5902_v55, %v488_v52  ;;  %v5277_v52 = vld [vmem:[#allocation12 + $0x364] ss:$24 sps:$4 sm:$0xff]  }
 0x2d4   :  { %v505_v6 = vrot.slane %v504_v40, 1  ;;  %v527_v10 = vpack.c.bf16 %v514_v0, %v514_v0  ;;  %v517_v11 = vmul.f32 %v5900_v33, %v470_v54  ;;  %v869_v12 = vunpack.c.l.b16 %v525_v51  ;;  %v5280_v50 = vld [vmem:[#allocation12 + $0x36c] ss:$24 sps:$4 sm:$0xff]   ;;  %v5286_v58 = vld [vmem:[#allocation12 + $0x39c] ss:$24 sps:$4 sm:$0xff]  }
 0x2d5   :  { %v532_v7 = vpack.c.bf16 %v520_v61, %v520_v61  ;;  %v531_v8 = vpack.c.bf16 %v519_v62, %v519_v62  ;;  %v534_v13 = vpack.c.bf16 %v522_v4, %v522_v4  ;;  %v533_v57 = vpack.c.bf16 %v521_v5, %v521_v5  ;;  %v5283_v51 = vld [vmem:[#allocation12 + $0x394] ss:$24 sps:$4 sm:$0xff]   ;;  %v5284_v61 = vld [vmem:[#allocation12 + $0x398] ss:$24 sps:$4 sm:$0xff]   ;;  %v5289_v62 = vld [vmem:[#allocation12 + $0x3c4] ss:$24 sps:$4 sm:$0xff]  }
 0x2d6   :  { %v506_v9 = vadd.f32 %v505_v6, %v504_v40  ;;  %v872_v16 = vunpack.c.l.b16 %v528_v63  ;;  %v516_v59 = vmul.f32 %v5900_v33, %v464_v60  ;;  %v523_v20 = vmul.f32 %v5902_v55, %v500_v56  ;;  %v5278_v56 = vld [vmem:[#allocation12 + $0x368] ss:$24 sps:$4 sm:$0xff]   ;;  %v5292_v63 = vld [vmem:[#allocation12 + $0x3cc] ss:$24 sps:$4 sm:$0xff]   ;;  %v5298_v5 = vld [vmem:[#allocation12 + $0x3fc] ss:$24 sps:$4 sm:$0xff]  }
 0x2d7   :  { %v876_v14 = vunpack.c.l.b16 %v532_v7  ;;  %v875_v15 = vunpack.c.l.b16 %v531_v8  ;;  %v878_v17 = vunpack.c.l.b16 %v534_v13  ;;  %v877_v18 = vunpack.c.l.b16 %v533_v57  ;;  %v5281_v60 = vld [vmem:[#allocation12 + $0x390] ss:$24 sps:$4 sm:$0xff]   ;;  %v5287_v0 = vld [vmem:[#allocation12 + $0x3c0] ss:$24 sps:$4 sm:$0xff]   ;;  %v5295_v4 = vld [vmem:[#allocation12 + $0x3f4] ss:$24 sps:$4 sm:$0xff]  }
 0x2d8   :  { %v524_v19 = vmul.f32 %v5902_v55, %v506_v9  ;;  %v871_v23 = vunpack.c.l.b16 %v527_v10  ;;  %v530_v24 = vpack.c.bf16 %v517_v11, %v517_v11  ;;  %v535_v31 = vpack.c.bf16 %v523_v20, %v523_v20  ;;  %v5275_v55 = vld [vmem:[#allocation12 + $0x360] ss:$24 sps:$4 sm:$0xff]   ;;  %v5293_v6 = vld [vmem:[#allocation12 + $0x3f0] ss:$24 sps:$4 sm:$0xff]   ;;  %v5301_v8 = vld [vmem:[#allocation12 + $0x424] ss:$24 sps:$4 sm:$0xff]  }
 0x2d9   :  { %v884_v21 = vrot.slane %v876_v14, 7  ;;  %v881_v22 = vrot.slane %v875_v15, 7  ;;  %v888_v28 = vrot.slane %v878_v17, 7  ;;  %v886_v29 = vrot.slane %v877_v18, 7  ;;  %v5296_v7 = vld [vmem:[#allocation12 + $0x3f8] ss:$24 sps:$4 sm:$0xff]  }
 0x2da   :  { %v536_v30 = vpack.c.bf16 %v524_v19, %v524_v19  ;;  %v529_v35 = vpack.c.bf16 %v516_v59, %v516_v59  ;;  %v879_v42 = vunpack.c.l.b16 %v535_v31  ;;  %v874_v43 = vunpack.c.l.b16 %v530_v24  ;;  %v5304_v10 = vld [vmem:[#allocation12 + $0x42c] ss:$24 sps:$4 sm:$0xff]   ;;  %v5299_v11 = vld [vmem:[#allocation12 + $0x420] ss:$24 sps:$4 sm:$0xff]   ;;  %v5310_v57 = vld [vmem:[#allocation12 + $0x45c] ss:$24 sps:$4 sm:$0xff]  }
 0x2db   :  { %v885_v32 = vsel %vm882_vm1, %v884_v21, %v870_v3  ;;  %v883_v34 = vsel %vm882_vm1, %v881_v22, %v869_v12  ;;  %v889_v37 = vsel %vm882_vm1, %v888_v28, %v872_v16  ;;  %v7047_v40 = vsel %vm882_vm1, %v886_v29, %v871_v23  ;;  %v5290_v3 = vld [vmem:[#allocation12 + $0x3c8] ss:$24 sps:$4 sm:$0xff]   ;;  %v5307_v13 = vld [vmem:[#allocation12 + $0x454] ss:$24 sps:$4 sm:$0xff]   ;;  %v5308_v14 = vld [vmem:[#allocation12 + $0x458] ss:$24 sps:$4 sm:$0xff]  }
 0x2dc   :  { %v7041_v33 = vpack.c.b16 %v885_v32, %v885_v32  ;;  %v7043_v36 = vpack.c.b16 %v883_v34, %v883_v34  ;;  %v880_v41 = vunpack.c.l.b16 %v536_v30  ;;  %v7053_v44 = vpack.c.b16 %v889_v37, %v889_v37  ;;  %v5302_v12 = vld [vmem:[#allocation12 + $0x428] ss:$24 sps:$4 sm:$0xff]   ;;  %v5313_v15 = vld [vmem:[#allocation12 + $0x484] ss:$24 sps:$4 sm:$0xff]   ;;  %v5319_v18 = vld [vmem:[#allocation12 + $0x4b4] ss:$24 sps:$4 sm:$0xff]  }
 0x2dd   :  { %v873_v46 = vunpack.c.l.b16 %v529_v35  ;;  %v890_v47 = vrot.slane %v879_v42, 7  ;;  %v5305_v9 = vld [vmem:[#allocation12 + $0x450] ss:$24 sps:$4 sm:$0xff]   ;;  %v5316_v16 = vld [vmem:[#allocation12 + $0x48c] ss:$24 sps:$4 sm:$0xff]  }
 0x2de   :  { %2378 = vmatprep.mubr.bf16.mxu0 %v7041_v33  ;;  %2501 = vmatprep.mubr.bf16.mxu1 %v7041_v33  ;;  %v892_v45 = vrot.slane %v880_v41, 7  ;;  %v5311_v59 = vld [vmem:[#allocation12 + $0x480] ss:$24 sps:$4 sm:$0xff]   ;;  %v5322_v19 = vld [vmem:[#allocation12 + $0x4bc] ss:$24 sps:$4 sm:$0xff]  }
 0x2df   :  { %2379 = vmatmul.mubr.bf16.vlgmr.msra.gmra.mrb[0].mxu0 %v7043_v36  ;;  %2502 = vmatmul.mubr.bf16.vlgmr.msra.gmra.mrb[0].mxu1 %v7043_v36  ;;  %v7061_v54 = vsel %vm882_vm1, %v890_v47, %v873_v46  ;;  %v5314_v17 = vld [vmem:[#allocation12 + $0x488] ss:$24 sps:$4 sm:$0xff]   ;;  %v5320_v21 = vld [vmem:[#allocation12 + $0x4b8] ss:$24 sps:$4 sm:$0xff]   ;;  %v5325_v22 = vld [vmem:[#allocation12 + $0x4e4] ss:$24 sps:$4 sm:$0xff]  }
 0x2e0   :  { %2388 = vmatpush1.bf16.msra.mxu0 %v5263_v25  ;;  %2511 = vmatpush1.bf16.msra.mxu1 %v5266_v27  ;;  %v7058_v53 = vsel %vm882_vm1, %v892_v45, %v874_v43  ;;  %v5317_v20 = vld [vmem:[#allocation12 + $0x4b0] ss:$24 sps:$4 sm:$0xff]   ;;  %v5328_v23 = vld [vmem:[#allocation12 + $0x4ec] ss:$24 sps:$4 sm:$0xff]   ;;  %v5323_v24 = vld [vmem:[#allocation12 + $0x4e0] ss:$24 sps:$4 sm:$0xff]  }
 0x2e1   :  { %2419 = vmatprep.mubr.bf16.mxu0 %v7053_v44  ;;  %2542 = vmatprep.mubr.bf16.mxu1 %v7053_v44  ;;  %v5326_v25 = vld [vmem:[#allocation12 + $0x4e8] ss:$24 sps:$4 sm:$0xff]   ;;  %v5331_v27 = vld [vmem:[#allocation12 + $0x514] ss:$24 sps:$4 sm:$0xff]   ;;  %v5332_v30 = vld [vmem:[#allocation12 + $0x518] ss:$24 sps:$4 sm:$0xff]  }
 0x2e2   :  { %2389 = vmatprep.subr.bf16.mxu0 %v5271_v38  ;;  %2512 = vmatprep.subr.bf16.mxu1 %v5274_v39  ;;  %v5334_v28 = vld [vmem:[#allocation12 + $0x51c] ss:$24 sps:$4 sm:$0xff]   ;;  %v5329_v29 = vld [vmem:[#allocation12 + $0x510] ss:$24 sps:$4 sm:$0xff]   ;;  %v5340_v32 = vld [vmem:[#allocation12 + $0x54c] ss:$24 sps:$4 sm:$0xff]  }
 0x2e3   :  { %v5337_v31 = vld [vmem:[#allocation12 + $0x544] ss:$24 sps:$4 sm:$0xff]   ;;  %v5335_v34 = vld [vmem:[#allocation12 + $0x540] ss:$24 sps:$4 sm:$0xff]   ;;  %v5343_v37 = vld [vmem:[#allocation12 + $0x574] ss:$24 sps:$4 sm:$0xff]  }
 0x2e4   :  { %2390 = vmatpush1.bf16.msra.mxu0 %v5269_v48  ;;  %2513 = vmatpush1.bf16.msra.mxu1 %v5272_v49  ;;  %v5338_v35 = vld [vmem:[#allocation12 + $0x548] ss:$24 sps:$4 sm:$0xff]   ;;  %v5346_v38 = vld [vmem:[#allocation12 + $0x57c] ss:$24 sps:$4 sm:$0xff]   ;;  %v5344_v41 = vld [vmem:[#allocation12 + $0x578] ss:$24 sps:$4 sm:$0xff]  }
 0x2e5   :  { %2391 = vmatprep.subr.bf16.mxu0 %v5277_v52  ;;  %2514 = vmatprep.subr.bf16.mxu1 %v5280_v50  ;;  %v5341_v39 = vld [vmem:[#allocation12 + $0x570] ss:$24 sps:$4 sm:$0xff]   ;;  %v5349_v42 = vld [vmem:[#allocation12 + $0x5a4] ss:$24 sps:$4 sm:$0xff]   ;;  %v5347_v45 = vld [vmem:[#allocation12 + $0x5a0] ss:$24 sps:$4 sm:$0xff]  }
 0x2e6   :  { %v5352_v43 = vld [vmem:[#allocation12 + $0x5ac] ss:$24 sps:$4 sm:$0xff]   ;;  %v5350_v46 = vld [vmem:[#allocation12 + $0x5a8] ss:$24 sps:$4 sm:$0xff]   ;;  %v5358_v48 = vld [vmem:[#allocation12 + $0x5dc] ss:$24 sps:$4 sm:$0xff]  }
 0x2e7   :  { %v5355_v47 = vld [vmem:[#allocation12 + $0x5d4] ss:$24 sps:$4 sm:$0xff]   ;;  %v5353_v49 = vld [vmem:[#allocation12 + $0x5d0] ss:$24 sps:$4 sm:$0xff]   ;;  %v5361_v50 = vld [vmem:[#allocation12 + $0x604] ss:$24 sps:$4 sm:$0xff]  }
 0x2e8   :  { %2392 = vmatpush1.bf16.msra.mxu0 %v5275_v55  ;;  %2515 = vmatpush1.bf16.msra.mxu1 %v5278_v56  ;;  %v5356_v52 = vld [vmem:[#allocation12 + $0x5d8] ss:$24 sps:$4 sm:$0xff]   ;;  %v5364_v55 = vld [vmem:[#allocation12 + $0x60c] ss:$24 sps:$4 sm:$0xff]  }
 0x2e9   :  { %2393 = vmatprep.subr.bf16.mxu0 %v5283_v51  ;;  %2516 = vmatprep.subr.bf16.mxu1 %v5286_v58  ;;  %v5359_v56 = vld [vmem:[#allocation12 + $0x600] ss:$24 sps:$4 sm:$0xff]   ;;  %v5367_v58 = vld [vmem:[#allocation12 + $0x634] ss:$24 sps:$4 sm:$0xff]  }
 0x2ea   :  { %v5362_v51 = vld [vmem:[#allocation12 + $0x608] ss:$24 sps:$4 sm:$0xff]  }
 0x2ec   :  { %2394 = vmatpush1.bf16.msra.mxu0 %v5281_v60  ;;  %2517 = vmatpush1.bf16.msra.mxu1 %v5284_v61  ;;  %v5370_v60 = vld [vmem:[#allocation12 + $0x63c] ss:$24 sps:$4 sm:$0xff]   ;;  %v7065_v61 = vpack.c.b16 %v7047_v40, %v7047_v40  ;;  %v5371_v40 = vld [vmem:[#allocation12 + $0x660] ss:$24 sps:$4 sm:$0xff]  }
 0x2ed   :  { %2395 = vmatprep.subr.bf16.mxu0 %v5289_v62  ;;  %2518 = vmatprep.subr.bf16.mxu1 %v5292_v63  ;;  %v7069_v62 = vpack.c.b16 %v7058_v53, %v7058_v53  ;;  %v5365_v63 = vld [vmem:[#allocation12 + $0x630] ss:$24 sps:$4 sm:$0xff]  }
 0x2ee   :  { %v5374_v53 = vld [vmem:[#allocation12 + $0x668] ss:$24 sps:$4 sm:$0xff]  }
 0x2f0   :  { %2396 = vmatpush1.bf16.msra.mxu0 %v5287_v0  ;;  %2519 = vmatpush1.bf16.msra.mxu1 %v5290_v3  ;;  %v5368_v0 = vld [vmem:[#allocation12 + $0x638] ss:$24 sps:$4 sm:$0xff]   ;;  %v5373_v3 = vld [vmem:[#allocation12 + $0x664] ss:$24 sps:$4 sm:$0xff]  }
 0x2f1   :  { %2397 = vmatprep.subr.bf16.mxu0 %v5295_v4  ;;  %2520 = vmatprep.subr.bf16.mxu1 %v5298_v5  ;;  %v5376_v4 = vld [vmem:[#allocation12 + $0x66c] ss:$24 sps:$4 sm:$0xff]  }
 0x2f2   :  { %v5379_v5 = vld [vmem:[#allocation12 + $0x694] ss:$24 sps:$4 sm:$0xff]  }
 0x2f4   :  { %2398 = vmatpush1.bf16.msra.mxu0 %v5293_v6  ;;  %2521 = vmatpush1.bf16.msra.mxu1 %v5296_v7  ;;  %v5382_v6 = vld [vmem:[#allocation12 + $0x69c] ss:$24 sps:$4 sm:$0xff]   ;;  %v5377_v7 = vld [vmem:[#allocation12 + $0x690] ss:$24 sps:$4 sm:$0xff]  }
 0x2f5   :  { %2399 = vmatprep.subr.bf16.mxu0 %v5301_v8  ;;  %2522 = vmatprep.subr.bf16.mxu1 %v5304_v10  ;;  %v5380_v8 = vld [vmem:[#allocation12 + $0x698] ss:$24 sps:$4 sm:$0xff]   ;;  %v5385_v10 = vld [vmem:[#allocation12 + $0x6c4] ss:$24 sps:$4 sm:$0xff]  }
 0x2f8   :  { %2400 = vmatpush1.bf16.msra.mxu0 %v5299_v11  ;;  %2523 = vmatpush1.bf16.msra.mxu1 %v5302_v12  ;;  %v5388_v11 = vld [vmem:[#allocation12 + $0x6cc] ss:$24 sps:$4 sm:$0xff]   ;;  %v5383_v12 = vld [vmem:[#allocation12 + $0x6c0] ss:$24 sps:$4 sm:$0xff]  }
 0x2f9   :  { %2401 = vmatprep.subr.bf16.mxu0 %v5307_v13  ;;  %2524 = vmatprep.subr.bf16.mxu1 %v5310_v57  ;;  %v5386_v13 = vld [vmem:[#allocation12 + $0x6c8] ss:$24 sps:$4 sm:$0xff]   ;;  %v5391_v57 = vld [vmem:[#allocation12 + $0x6f4] ss:$24 sps:$4 sm:$0xff]  }
 0x2fc   :  { %2402 = vmatpush1.bf16.msra.mxu0 %v5305_v9  ;;  %2525 = vmatpush1.bf16.msra.mxu1 %v5308_v14  ;;  %v5394_v9 = vld [vmem:[#allocation12 + $0x6fc] ss:$24 sps:$4 sm:$0xff]   ;;  %v5389_v14 = vld [vmem:[#allocation12 + $0x6f0] ss:$24 sps:$4 sm:$0xff]  }
 0x2fd   :  { %2403 = vmatprep.subr.bf16.mxu0 %v5313_v15  ;;  %2526 = vmatprep.subr.bf16.mxu1 %v5316_v16  ;;  %v5392_v15 = vld [vmem:[#allocation12 + $0x6f8] ss:$24 sps:$4 sm:$0xff]   ;;  %v5397_v16 = vld [vmem:[#allocation12 + $0x724] ss:$24 sps:$4 sm:$0xff]  }
 0x300   :  { %2404 = vmatpush1.bf16.msra.mxu0 %v5311_v59  ;;  %2527 = vmatpush1.bf16.msra.mxu1 %v5314_v17  ;;  %v5400_v59 = vld [vmem:[#allocation12 + $0x72c] ss:$24 sps:$4 sm:$0xff]   ;;  %v5395_v17 = vld [vmem:[#allocation12 + $0x720] ss:$24 sps:$4 sm:$0xff]  }
 0x301   :  { %2405 = vmatprep.subr.bf16.mxu0 %v5319_v18  ;;  %2528 = vmatprep.subr.bf16.mxu1 %v5322_v19  ;;  %v5398_v18 = vld [vmem:[#allocation12 + $0x728] ss:$24 sps:$4 sm:$0xff]   ;;  %v5403_v19 = vld [vmem:[#allocation12 + $0x754] ss:$24 sps:$4 sm:$0xff]  }
 0x304   :  { %2406 = vmatpush1.bf16.msra.mxu0 %v5317_v20  ;;  %2529 = vmatpush1.bf16.msra.mxu1 %v5320_v21  ;;  %v5406_v20 = vld [vmem:[#allocation12 + $0x75c] ss:$24 sps:$4 sm:$0xff]   ;;  %v5401_v21 = vld [vmem:[#allocation12 + $0x750] ss:$24 sps:$4 sm:$0xff]  }
 0x305   :  { %2407 = vmatprep.subr.bf16.mxu0 %v5325_v22  ;;  %2530 = vmatprep.subr.bf16.mxu1 %v5328_v23  ;;  %v5404_v22 = vld [vmem:[#allocation12 + $0x758] ss:$24 sps:$4 sm:$0xff]   ;;  %v5409_v23 = vld [vmem:[#allocation12 + $0x784] ss:$24 sps:$4 sm:$0xff]  }
 0x308   :  { %2408 = vmatpush1.bf16.msra.mxu0 %v5323_v24  ;;  %2531 = vmatpush1.bf16.msra.mxu1 %v5326_v25  ;;  %v5412_v24 = vld [vmem:[#allocation12 + $0x78c] ss:$24 sps:$4 sm:$0xff]   ;;  %v5407_v25 = vld [vmem:[#allocation12 + $0x780] ss:$24 sps:$4 sm:$0xff]  }
 0x309   :  { %2409 = vmatprep.subr.bf16.mxu0 %v5331_v27  ;;  %2532 = vmatprep.subr.bf16.mxu1 %v5334_v28  ;;  %v5410_v27 = vld [vmem:[#allocation12 + $0x788] ss:$24 sps:$4 sm:$0xff]   ;;  %v5415_v28 = vld [vmem:[#allocation12 + $0x7b4] ss:$24 sps:$4 sm:$0xff]  }
 0x30c   :  { %2410 = vmatpush1.bf16.msra.mxu0 %v5329_v29  ;;  %2533 = vmatpush1.bf16.msra.mxu1 %v5332_v30  ;;  %v5418_v29 = vld [vmem:[#allocation12 + $0x7bc] ss:$24 sps:$4 sm:$0xff]   ;;  %v5413_v30 = vld [vmem:[#allocation12 + $0x7b0] ss:$24 sps:$4 sm:$0xff]  }
 0x30d   :  { %2411 = vmatprep.subr.bf16.mxu0 %v5337_v31  ;;  %2534 = vmatprep.subr.bf16.mxu1 %v5340_v32  ;;  %v5416_v31 = vld [vmem:[#allocation12 + $0x7b8] ss:$24 sps:$4 sm:$0xff]   ;;  %v5421_v32 = vld [vmem:[#allocation12 + $0x7e4] ss:$24 sps:$4 sm:$0xff]  }
 0x310   :  { %2412 = vmatpush1.bf16.msra.mxu0 %v5335_v34  ;;  %2535 = vmatpush1.bf16.msra.mxu1 %v5338_v35  ;;  %v5424_v34 = vld [vmem:[#allocation12 + $0x7ec] ss:$24 sps:$4 sm:$0xff]   ;;  %v5419_v35 = vld [vmem:[#allocation12 + $0x7e0] ss:$24 sps:$4 sm:$0xff]  }
 0x311   :  { %2413 = vmatprep.subr.bf16.mxu0 %v5343_v37  ;;  %2536 = vmatprep.subr.bf16.mxu1 %v5346_v38  ;;  %v5422_v37 = vld [vmem:[#allocation12 + $0x7e8] ss:$24 sps:$4 sm:$0xff]   ;;  %v5427_v38 = vld [vmem:[#allocation12 + $0x814] ss:$24 sps:$4 sm:$0xff]  }
 0x314   :  { %2414 = vmatpush1.bf16.msra.mxu0 %v5341_v39  ;;  %2537 = vmatpush1.bf16.msra.mxu1 %v5344_v41  ;;  %v5430_v39 = vld [vmem:[#allocation12 + $0x81c] ss:$24 sps:$4 sm:$0xff]   ;;  %v5425_v41 = vld [vmem:[#allocation12 + $0x810] ss:$24 sps:$4 sm:$0xff]  }
 0x315   :  { %2415 = vmatprep.subr.bf16.mxu0 %v5349_v42  ;;  %2538 = vmatprep.subr.bf16.mxu1 %v5352_v43  ;;  %v5428_v42 = vld [vmem:[#allocation12 + $0x818] ss:$24 sps:$4 sm:$0xff]   ;;  %v5433_v43 = vld [vmem:[#allocation12 + $0x844] ss:$24 sps:$4 sm:$0xff]  }
 0x318   :  { %2416 = vmatpush1.bf16.msra.mxu0 %v5347_v45  ;;  %2539 = vmatpush1.bf16.msra.mxu1 %v5350_v46  ;;  %v5436_v45 = vld [vmem:[#allocation12 + $0x84c] ss:$24 sps:$4 sm:$0xff]   ;;  %v5431_v46 = vld [vmem:[#allocation12 + $0x840] ss:$24 sps:$4 sm:$0xff]  }
 0x319   :  { %2417 = vmatprep.subr.bf16.mxu0 %v5355_v47  ;;  %2540 = vmatprep.subr.bf16.mxu1 %v5358_v48  ;;  %v5434_v47 = vld [vmem:[#allocation12 + $0x848] ss:$24 sps:$4 sm:$0xff]   ;;  %v5439_v48 = vld [vmem:[#allocation12 + $0x874] ss:$24 sps:$4 sm:$0xff]  }
 0x31c   :  { %2418 = vmatpush1.bf16.msra.mxu0 %v5353_v49  ;;  %2541 = vmatpush1.bf16.msra.mxu1 %v5356_v52  ;;  %v5442_v49 = vld [vmem:[#allocation12 + $0x87c] ss:$24 sps:$4 sm:$0xff]   ;;  %v5437_v52 = vld [vmem:[#allocation12 + $0x870] ss:$24 sps:$4 sm:$0xff]  }
 0x31d   :  { %2428 = vmatprep.subr.bf16.mxu0 %v5361_v50  ;;  %2551 = vmatprep.subr.bf16.mxu1 %v5364_v55  ;;  %v5440_v50 = vld [vmem:[#allocation12 + $0x878] ss:$24 sps:$4 sm:$0xff]   ;;  %v5445_v55 = vld [vmem:[#allocation12 + $0x8a4] ss:$24 sps:$4 sm:$0xff]  }
 0x31f   :  { %2420 = vmatmul.mubr.bf16.vlgmr.msra.gmra.mrb[0].mxu0 %v7065_v61  ;;  %2543 = vmatmul.mubr.bf16.vlgmr.msra.gmra.mrb[0].mxu1 %v7065_v61 }
 0x320   :  { %2429 = vmatpush1.bf16.msra.mxu0 %v5359_v56  ;;  %2460 = vmatprep.mubr.bf16.mxu0 %v7069_v62  ;;  %v5448_v56 = vld [vmem:[#allocation12 + $0x8ac] ss:$24 sps:$4 sm:$0xff]  }
 0x321   :  { %2552 = vmatpush1.bf16.msra.mxu1 %v5362_v51  ;;  %2583 = vmatprep.mubr.bf16.mxu1 %v7069_v62  ;;  %v5443_v51 = vld [vmem:[#allocation12 + $0x8a0] ss:$24 sps:$4 sm:$0xff]  }
 0x322   :  { %2430 = vmatprep.subr.bf16.mxu0 %v5367_v58  ;;  %2553 = vmatprep.subr.bf16.mxu1 %v5370_v60  ;;  %v5446_v58 = vld [vmem:[#allocation12 + $0x8a8] ss:$24 sps:$4 sm:$0xff]   ;;  %v5451_v60 = vld [vmem:[#allocation12 + $0x8d4] ss:$24 sps:$4 sm:$0xff]  }
 0x324   :  { %2431 = vmatpush1.bf16.msra.mxu0 %v5365_v63  ;;  %v5454_v63 = vld [vmem:[#allocation12 + $0x8dc] ss:$24 sps:$4 sm:$0xff]  }
 0x325   :  { %2554 = vmatpush1.bf16.msra.mxu1 %v5368_v0  ;;  %2432 = vmatprep.subr.bf16.mxu0 %v5373_v3  ;;  %v5449_v0 = vld [vmem:[#allocation12 + $0x8d0] ss:$24 sps:$4 sm:$0xff]  }
 0x326   :  { %2555 = vmatprep.subr.bf16.mxu1 %v5376_v4  ;;  %v5452_v3 = vld [vmem:[#allocation12 + $0x8d8] ss:$24 sps:$4 sm:$0xff]   ;;  %v5457_v4 = vld [vmem:[#allocation12 + $0x14] ss:$24 sps:$4 sm:$0xff]  }
 0x328   :  { %2433 = vmatpush1.bf16.msra.mxu0 %v5371_v40  ;;  %v5455_v40 = vld [vmem:[#allocation12 + $0x10] ss:$24 sps:$4 sm:$0xff]  }
 0x329   :  { %2556 = vmatpush1.bf16.msra.mxu1 %v5374_v53  ;;  %2434 = vmatprep.subr.bf16.mxu0 %v5379_v5  ;;  %v7077_v53 = vpack.c.b16 %v7061_v54, %v7061_v54  ;;  %v5460_v5 = vld [vmem:[#allocation12 + $0x44] ss:$24 sps:$4 sm:$0xff]   ;;  %v5469_v54 = vld [vmem:[#allocation12 + $0xd4] ss:$24 sps:$4 sm:$0xff]  }
 0x32a   :  { %2557 = vmatprep.subr.bf16.mxu1 %v5382_v6  ;;  %v5458_v6 = vld [vmem:[#allocation12 + $0x40] ss:$24 sps:$4 sm:$0xff]  }
 0x32c   :  { %2435 = vmatpush1.bf16.msra.mxu0 %v5377_v7  ;;  %v5463_v7 = vld [vmem:[#allocation12 + $0x74] ss:$24 sps:$4 sm:$0xff]  }
 0x32d   :  { %2558 = vmatpush1.bf16.msra.mxu1 %v5380_v8  ;;  %2436 = vmatprep.subr.bf16.mxu0 %v5385_v10  ;;  %v5461_v8 = vld [vmem:[#allocation12 + $0x70] ss:$24 sps:$4 sm:$0xff]   ;;  %v5466_v10 = vld [vmem:[#allocation12 + $0xa4] ss:$24 sps:$4 sm:$0xff]  }
 0x32e   :  { %2559 = vmatprep.subr.bf16.mxu1 %v5388_v11  ;;  %v5464_v11 = vld [vmem:[#allocation12 + $0xa0] ss:$24 sps:$4 sm:$0xff]  }
 0x330   :  { %2437 = vmatpush1.bf16.msra.mxu0 %v5383_v12  ;;  %v5467_v12 = vld [vmem:[#allocation12 + $0xd0] ss:$24 sps:$4 sm:$0xff]  }
 0x331   :  { %2560 = vmatpush1.bf16.msra.mxu1 %v5386_v13  ;;  %2438 = vmatprep.subr.bf16.mxu0 %v5391_v57  ;;  %v5472_v13 = vld [vmem:[#allocation12 + $0x104] ss:$24 sps:$4 sm:$0xff]   ;;  %v5470_v57 = vld [vmem:[#allocation12 + $0x100] ss:$24 sps:$4 sm:$0xff]  }
 0x332   :  { %2561 = vmatprep.subr.bf16.mxu1 %v5394_v9  ;;  %v5475_v9 = vld [vmem:[#allocation12 + $0x134] ss:$24 sps:$4 sm:$0xff]  }
 0x334   :  { %2439 = vmatpush1.bf16.msra.mxu0 %v5389_v14  ;;  %v5569_v14 = vld [vmem:[#allocation16] ss:$16 sps:$4 sm:$0xff]  }
 0x335   :  { %2562 = vmatpush1.bf16.msra.mxu1 %v5392_v15  ;;  %2440 = vmatprep.subr.bf16.mxu0 %v5397_v16  ;;  %v5473_v15 = vld [vmem:[#allocation12 + $0x130] ss:$24 sps:$4 sm:$0xff]   ;;  %v5478_v16 = vld [vmem:[#allocation12 + $0x164] ss:$24 sps:$4 sm:$0xff]  }
 0x336   :  { %2563 = vmatprep.subr.bf16.mxu1 %v5400_v59  ;;  %v5575_v59 = vld [vmem:[#allocation16 + $0x20] ss:$16 sps:$4 sm:$0xff]  }
 0x338   :  { %2441 = vmatpush1.bf16.msra.mxu0 %v5395_v17  ;;  %v5577_v17 = vld [vmem:[#allocation16 + $0x24] ss:$16 sps:$4 sm:$0xff]  }
 0x339   :  { %2564 = vmatpush1.bf16.msra.mxu1 %v5398_v18  ;;  %2442 = vmatprep.subr.bf16.mxu0 %v5403_v19  ;;  %v5476_v18 = vld [vmem:[#allocation12 + $0x160] ss:$24 sps:$4 sm:$0xff]   ;;  %v5481_v19 = vld [vmem:[#allocation12 + $0x194] ss:$24 sps:$4 sm:$0xff]  }
 0x33a   :  { %2565 = vmatprep.subr.bf16.mxu1 %v5406_v20  ;;  %v5583_v20 = vld [vmem:[#allocation16 + $0xc] ss:$16 sps:$4 sm:$0xff]  }
 0x33c   :  { %2443 = vmatpush1.bf16.msra.mxu0 %v5401_v21  ;;  %v6559_v21 = vmov 0  }
 0x33d   :  { %2566 = vmatpush1.bf16.msra.mxu1 %v5404_v22  ;;  %2444 = vmatprep.subr.bf16.mxu0 %v5409_v23  ;;  %v5479_v22 = vld [vmem:[#allocation12 + $0x190] ss:$24 sps:$4 sm:$0xff]  }
 0x33e   :  { %2567 = vmatprep.subr.bf16.mxu1 %v5412_v24  ;;  %v5581_v23 = vld [vmem:[#allocation16 + $0x8] ss:$16 sps:$4 sm:$0xff]  }
 0x33f   :  { %v2954_v24 = vld [vmem:[#allocation10] sm:$0x3] }
 0x340   :  { %2445 = vmatpush1.bf16.msra.mxu0 %v5407_v25  ;;  %v5484_v25 = vld [vmem:[#allocation12 + $0x1c4] ss:$24 sps:$4 sm:$0xff]  }
 0x341   :  { %2568 = vmatpush1.bf16.msra.mxu1 %v5410_v27  ;;  %2446 = vmatprep.subr.bf16.mxu0 %v5415_v28  ;;  %v2955_v27 = vpack.c.bf16 %v2954_v24, %v2954_v24  ;;  %v5589_v28 = vld [vmem:[#allocation16 + $0x2c] ss:$16 sps:$4 sm:$0xff]   ;;  %v5662_v24 = vld [vmem:[#allocation15 + $0x180] ss:$16 sps:$4 sm:$0xff]  }
 0x342   :  { %2569 = vmatprep.subr.bf16.mxu1 %v5418_v29  ;;  %v5482_v29 = vld [vmem:[#allocation12 + $0x1c0] ss:$24 sps:$4 sm:$0xff]  }
 0x344   :  { %2447 = vmatpush1.bf16.msra.mxu0 %v5413_v30  ;;  %v5587_v30 = vld [vmem:[#allocation16 + $0x28] ss:$16 sps:$4 sm:$0xff]  }
 0x345   :  { %2570 = vmatpush1.bf16.msra.mxu1 %v5416_v31  ;;  %2448 = vmatprep.subr.bf16.mxu0 %v5421_v32  ;;  %v5487_v31 = vld [vmem:[#allocation12 + $0x1f4] ss:$24 sps:$4 sm:$0xff]  }
 0x346   :  { %2571 = vmatprep.subr.bf16.mxu1 %v5424_v34  ;;  %v5595_v32 = vld [vmem:[#allocation15 + $0x4] ss:$16 sps:$4 sm:$0xff]  }
 0x347   :  { %v5485_v34 = vld [vmem:[#allocation12 + $0x1f0] ss:$24 sps:$4 sm:$0xff]  }
 0x348   :  { %2449 = vmatpush1.bf16.msra.mxu0 %v5419_v35  ;;  %v5593_v35 = vld [vmem:[#allocation15] ss:$16 sps:$4 sm:$0xff]  }
 0x349   :  { %2572 = vmatpush1.bf16.msra.mxu1 %v5422_v37  ;;  %2450 = vmatprep.subr.bf16.mxu0 %v5427_v38  ;;  %v5490_v37 = vld [vmem:[#allocation12 + $0x224] ss:$24 sps:$4 sm:$0xff]  }
 0x34a   :  { %2573 = vmatprep.subr.bf16.mxu1 %v5430_v39  ;;  %v5601_v38 = vld [vmem:[#allocation15 + $0x24] ss:$16 sps:$4 sm:$0xff]  }
 0x34b   :  { %v5488_v39 = vld [vmem:[#allocation12 + $0x220] ss:$24 sps:$4 sm:$0xff]  }
 0x34c   :  { %2451 = vmatpush1.bf16.msra.mxu0 %v5425_v41  ;;  %v5599_v41 = vld [vmem:[#allocation15 + $0x20] ss:$16 sps:$4 sm:$0xff]  }
 0x34d   :  { %2574 = vmatpush1.bf16.msra.mxu1 %v5428_v42  ;;  %2452 = vmatprep.subr.bf16.mxu0 %v5433_v43  ;;  %v5493_v42 = vld [vmem:[#allocation12 + $0x254] ss:$24 sps:$4 sm:$0xff]  }
 0x34e   :  { %2575 = vmatprep.subr.bf16.mxu1 %v5436_v45  ;;  %v5607_v43 = vld [vmem:[#allocation15 + $0x44] ss:$16 sps:$4 sm:$0xff]  }
 0x34f   :  { %v5491_v45 = vld [vmem:[#allocation12 + $0x250] ss:$24 sps:$4 sm:$0xff]  }
 0x350   :  { %2453 = vmatpush1.bf16.msra.mxu0 %v5431_v46  ;;  %v5605_v46 = vld [vmem:[#allocation15 + $0x40] ss:$16 sps:$4 sm:$0xff]  }
 0x351   :  { %2576 = vmatpush1.bf16.msra.mxu1 %v5434_v47  ;;  %2454 = vmatprep.subr.bf16.mxu0 %v5439_v48  ;;  %v5496_v47 = vld [vmem:[#allocation12 + $0x284] ss:$24 sps:$4 sm:$0xff]  }
 0x352   :  { %2577 = vmatprep.subr.bf16.mxu1 %v5442_v49  ;;  %v5613_v48 = vld [vmem:[#allocation15 + $0x64] ss:$16 sps:$4 sm:$0xff]  }
 0x353   :  { %v5494_v49 = vld [vmem:[#allocation12 + $0x280] ss:$24 sps:$4 sm:$0xff]  }
 0x354   :  { %2455 = vmatpush1.bf16.msra.mxu0 %v5437_v52  ;;  %v5611_v52 = vld [vmem:[#allocation15 + $0x60] ss:$16 sps:$4 sm:$0xff]  }
 0x355   :  { %2578 = vmatpush1.bf16.msra.mxu1 %v5440_v50  ;;  %2456 = vmatprep.subr.bf16.mxu0 %v5445_v55  ;;  %v5499_v50 = vld [vmem:[#allocation12 + $0x2b4] ss:$24 sps:$4 sm:$0xff]  }
 0x356   :  { %2579 = vmatprep.subr.bf16.mxu1 %v5448_v56  ;;  %v5619_v55 = vld [vmem:[#allocation15 + $0x84] ss:$16 sps:$4 sm:$0xff]  }
 0x357   :  { %v5497_v56 = vld [vmem:[#allocation12 + $0x2b0] ss:$24 sps:$4 sm:$0xff]  }
 0x358   :  { %2457 = vmatpush1.bf16.msra.mxu0 %v5443_v51  ;;  %v5617_v51 = vld [vmem:[#allocation15 + $0x80] ss:$16 sps:$4 sm:$0xff]  }
 0x359   :  { %2580 = vmatpush1.bf16.msra.mxu1 %v5446_v58  ;;  %2458 = vmatprep.subr.bf16.mxu0 %v5451_v60  ;;  %v5502_v58 = vld [vmem:[#allocation12 + $0x2e4] ss:$24 sps:$4 sm:$0xff]  }
 0x35a   :  { %2581 = vmatprep.subr.bf16.mxu1 %v5454_v63  ;;  %v5625_v60 = vld [vmem:[#allocation15 + $0xa4] ss:$16 sps:$4 sm:$0xff]  }
 0x35b   :  { %v5500_v63 = vld [vmem:[#allocation12 + $0x2e0] ss:$24 sps:$4 sm:$0xff]  }
 0x35c   :  { %2459 = vmatpush1.bf16.msra.mxu0 %v5449_v0  ;;  %v5623_v0 = vld [vmem:[#allocation15 + $0xa0] ss:$16 sps:$4 sm:$0xff]  }
 0x35d   :  { %2582 = vmatpush1.bf16.msra.mxu1 %v5452_v3  ;;  %2592 = vmatprep.subr.bf16.mxu0 %v5457_v4  ;;  %v5505_v3 = vld [vmem:[#allocation12 + $0x314] ss:$24 sps:$4 sm:$0xff]  }
 0x35e   :  { %v5631_v4 = vld [vmem:[#allocation15 + $0xc4] ss:$16 sps:$4 sm:$0xff]  }
 0x35f   :  { %2461 = vmatmul.mubr.bf16.vlgmr.msra.gmra.mrb[0].mxu0 %v7077_v53 }
 0x360   :  { %2584 = vmatmul.mubr.bf16.vlgmr.msra.gmra.mrb[0].mxu1 %v7077_v53  ;;  %2593 = vmatpush1.bf16.msra.mxu0 %v5455_v40  ;;  %v5503_v40 = vld [vmem:[#allocation12 + $0x310] ss:$24 sps:$4 sm:$0xff]  }
 0x361   :  { %2624 = vmatprep.mubr.bf16.mxu0 %v7041_v33  ;;  %2594 = vmatprep.subr.bf16.mxu0 %v5460_v5  ;;  %v5571_v33 = vld [vmem:[#allocation16 + $0x4] ss:$16 sps:$4 sm:$0xff]  }
 0x362   :  { %3008 = vmatprep.subr.bf16.mxu1 %v5571_v33  ;;  %3040 = vmatprep.mubr.bf16.mxu1 %v6559_v21  ;;  %v5508_v5 = vld [vmem:[#allocation12 + $0x344] ss:$24 sps:$4 sm:$0xff]  }
 0x363   :  { %3009 = vmatpush1.bf16.msra.mxu1 %v5569_v14  ;;  %v5517_v14 = vld [vmem:[#allocation12 + $0x3d4] ss:$24 sps:$4 sm:$0xff]  }
 0x364   :  { %2595 = vmatpush1.bf16.msra.mxu0 %v5458_v6  ;;  %3010 = vmatprep.subr.bf16.mxu1 %v5577_v17  ;;  %v5629_v6 = vld [vmem:[#allocation15 + $0xc0] ss:$16 sps:$4 sm:$0xff]   ;;  %v5652_v33 = vld [vmem:[#allocation15 + $0x144] ss:$16 sps:$4 sm:$0xff]  }
 0x365   :  { %2596 = vmatprep.subr.bf16.mxu0 %v5463_v7  ;;  %v5634_v7 = vld [vmem:[#allocation15 + $0xe4] ss:$16 sps:$4 sm:$0xff]  }
 0x366   :  { %v5658_v17 = vld [vmem:[#allocation15 + $0x164] ss:$16 sps:$4 sm:$0xff]  }
 0x367   :  { %3011 = vmatpush1.bf16.msra.mxu1 %v5575_v59  ;;  %v5650_v59 = vld [vmem:[#allocation15 + $0x140] ss:$16 sps:$4 sm:$0xff]  }
 0x368   :  { %2597 = vmatpush1.bf16.msra.mxu0 %v5461_v8  ;;  %3049 = vmatprep.subr.bf16.mxu1 %v5583_v20  ;;  %v5506_v8 = vld [vmem:[#allocation12 + $0x340] ss:$24 sps:$4 sm:$0xff]  }
 0x369   :  { %2598 = vmatprep.subr.bf16.mxu0 %v5466_v10  ;;  %v5511_v10 = vld [vmem:[#allocation12 + $0x374] ss:$24 sps:$4 sm:$0xff]  }
 0x36a   :  { %4894 = vmatmul.mubr.msk.bf16.vlgmr.msra.gmra.mrb[4].mxu1 %vm3004_vm2, %v2955_v27  ;;  %v5656_v20 = vld [vmem:[#allocation15 + $0x160] ss:$16 sps:$4 sm:$0xff]  }
 0x36b   :  { %3050 = vmatpush1.bf16.msra.mxu1 %v5581_v23  ;;  %3081 = vmatprep.mubr.bf16.mxu1 %v6559_v21  ;;  %v5521_v21 = vld [vmem:[#allocation12 + $0x430] ss:$24 sps:$4 sm:$0xff]   ;;  %v5524_v23 = vld [vmem:[#allocation12 + $0x460] ss:$24 sps:$4 sm:$0xff]  }
 0x36c   :  { %2599 = vmatpush1.bf16.msra.mxu0 %v5464_v11  ;;  %3051 = vmatprep.subr.bf16.mxu1 %v5589_v28  ;;  %v5632_v11 = vld [vmem:[#allocation15 + $0xe0] ss:$16 sps:$4 sm:$0xff]   ;;  %v5670_v28 = vld [vmem:[#allocation15 + $0x1a4] ss:$16 sps:$4 sm:$0xff]  }
 0x36d   :  { %2600 = vmatprep.subr.bf16.mxu0 %v5469_v54  ;;  %v5640_v54 = vld [vmem:[#allocation15 + $0x104] ss:$16 sps:$4 sm:$0xff]  }
 0x36f   :  { %3052 = vmatpush1.bf16.msra.mxu1 %v5587_v30  ;;  %v5527_v30 = vld [vmem:[#allocation12 + $0x490] ss:$24 sps:$4 sm:$0xff]  }
 0x370   :  { %2601 = vmatpush1.bf16.msra.mxu0 %v5467_v12  ;;  %4050 = vmatprep.subr.bf16.mxu1 %v5595_v32  ;;  %v5509_v12 = vld [vmem:[#allocation12 + $0x370] ss:$24 sps:$4 sm:$0xff]   ;;  %v5532_v32 = vld [vmem:[#allocation12 + $0x4c4] ss:$24 sps:$4 sm:$0xff]  }
 0x371   :  { %2602 = vmatprep.subr.bf16.mxu0 %v5472_v13  ;;  %v5514_v13 = vld [vmem:[#allocation12 + $0x3a4] ss:$24 sps:$4 sm:$0xff]  }
 0x372   :  { %4895 = vmatmul.mubr.msk.bf16.vlgmr.msra.gmra.mrb[8].mxu1 %vm3004_vm2, %v2955_v27  ;;  %v5529_v27 = vld [vmem:[#allocation12 + $0x494] ss:$24 sps:$4 sm:$0xff]  }
 0x373   :  { %4051 = vmatpush1.bf16.msra.mxu1 %v5593_v35  ;;  %v5530_v35 = vld [vmem:[#allocation12 + $0x4c0] ss:$24 sps:$4 sm:$0xff]  }
 0x374   :  { %2603 = vmatpush1.bf16.msra.mxu0 %v5470_v57  ;;  %4052 = vmatprep.subr.bf16.mxu1 %v5601_v38  ;;  %v5638_v57 = vld [vmem:[#allocation15 + $0x100] ss:$16 sps:$4 sm:$0xff]  }
 0x375   :  { %2604 = vmatprep.subr.bf16.mxu0 %v5475_v9  ;;  %v5646_v9 = vld [vmem:[#allocation15 + $0x124] ss:$16 sps:$4 sm:$0xff]  }
 0x376   :  { %v5535_v38 = vld [vmem:[#allocation12 + $0x4f4] ss:$24 sps:$4 sm:$0xff]  }
 0x377   :  { %4053 = vmatpush1.bf16.msra.mxu1 %v5599_v41  ;;  %v5533_v41 = vld [vmem:[#allocation12 + $0x4f0] ss:$24 sps:$4 sm:$0xff]  }
 0x378   :  { %2605 = vmatpush1.bf16.msra.mxu0 %v5473_v15  ;;  %4054 = vmatprep.subr.bf16.mxu1 %v5607_v43  ;;  %v5515_v15 = vld [vmem:[#allocation12 + $0x3d0] ss:$24 sps:$4 sm:$0xff]   ;;  %v5538_v43 = vld [vmem:[#allocation12 + $0x524] ss:$24 sps:$4 sm:$0xff]  }
 0x379   :  { %2606 = vmatprep.subr.bf16.mxu0 %v5478_v16  ;;  %v5520_v16 = vld [vmem:[#allocation12 + $0x404] ss:$24 sps:$4 sm:$0xff]  }
 0x37b   :  { %4055 = vmatpush1.bf16.msra.mxu1 %v5605_v46  ;;  %v5541_v46 = vld [vmem:[#allocation12 + $0x554] ss:$24 sps:$4 sm:$0xff]  }
 0x37c   :  { %2607 = vmatpush1.bf16.msra.mxu0 %v5476_v18  ;;  %4056 = vmatprep.subr.bf16.mxu1 %v5613_v48  ;;  %v5518_v18 = vld [vmem:[#allocation12 + $0x400] ss:$24 sps:$4 sm:$0xff]   ;;  %v5544_v48 = vld [vmem:[#allocation12 + $0x584] ss:$24 sps:$4 sm:$0xff]  }
 0x37d   :  { %2608 = vmatprep.subr.bf16.mxu0 %v5481_v19  ;;  %v5523_v19 = vld [vmem:[#allocation12 + $0x434] ss:$24 sps:$4 sm:$0xff]  }
 0x37f   :  { %4057 = vmatpush1.bf16.msra.mxu1 %v5611_v52  ;;  %v5547_v52 = vld [vmem:[#allocation12 + $0x5b4] ss:$24 sps:$4 sm:$0xff]  }
 0x380   :  { %2609 = vmatpush1.bf16.msra.mxu0 %v5479_v22  ;;  %4058 = vmatprep.subr.bf16.mxu1 %v5619_v55  ;;  %v5526_v22 = vld [vmem:[#allocation12 + $0x464] ss:$24 sps:$4 sm:$0xff]  }
 0x381   :  { %2610 = vmatprep.subr.bf16.mxu0 %v5484_v25  ;;  %v5664_v25 = vld [vmem:[#allocation15 + $0x184] ss:$16 sps:$4 sm:$0xff]  }
 0x382   :  { %v5550_v55 = vld [vmem:[#allocation12 + $0x5e4] ss:$24 sps:$4 sm:$0xff]  }
 0x383   :  { %4059 = vmatpush1.bf16.msra.mxu1 %v5617_v51  ;;  %v5553_v51 = vld [vmem:[#allocation12 + $0x614] ss:$24 sps:$4 sm:$0xff]  }
 0x384   :  { %2611 = vmatpush1.bf16.msra.mxu0 %v5482_v29  ;;  %4060 = vmatprep.subr.bf16.mxu1 %v5625_v60  ;;  %v5668_v29 = vld [vmem:[#allocation15 + $0x1a0] ss:$16 sps:$4 sm:$0xff]  }
 0x385   :  { %2612 = vmatprep.subr.bf16.mxu0 %v5487_v31  ;;  %v5676_v31 = vld [vmem:[#allocation15 + $0x1c4] ss:$16 sps:$4 sm:$0xff]  }
 0x386   :  { %v5556_v60 = vld [vmem:[#allocation12 + $0x644] ss:$24 sps:$4 sm:$0xff]  }
 0x387   :  { %4061 = vmatpush1.bf16.msra.mxu1 %v5623_v0  ;;  %v5559_v0 = vld [vmem:[#allocation12 + $0x674] ss:$24 sps:$4 sm:$0xff]  }
 0x388   :  { %2613 = vmatpush1.bf16.msra.mxu0 %v5485_v34  ;;  %4062 = vmatprep.subr.bf16.mxu1 %v5631_v4  ;;  %v5674_v34 = vld [vmem:[#allocation15 + $0x1c0] ss:$16 sps:$4 sm:$0xff]  }
 0x389   :  { %2614 = vmatprep.subr.bf16.mxu0 %v5490_v37  ;;  %v5682_v37 = vld [vmem:[#allocation15 + $0x1e4] ss:$16 sps:$4 sm:$0xff]  }
 0x38a   :  { %v5562_v4 = vld [vmem:[#allocation12 + $0x6a4] ss:$24 sps:$4 sm:$0xff]  }
 0x38b   :  { %4063 = vmatpush1.bf16.msra.mxu1 %v5629_v6  ;;  %v5563_v6 = vld [vmem:[#allocation12 + $0x6d0] ss:$24 sps:$4 sm:$0xff]  }
 0x38c   :  { %2615 = vmatpush1.bf16.msra.mxu0 %v5488_v39  ;;  %4064 = vmatprep.subr.bf16.mxu1 %v5634_v7  ;;  %v5680_v39 = vld [vmem:[#allocation15 + $0x1e0] ss:$16 sps:$4 sm:$0xff]  }
 0x38d   :  { %2616 = vmatprep.subr.bf16.mxu0 %v5493_v42  ;;  %v5688_v42 = vld [vmem:[#allocation15 + $0x204] ss:$16 sps:$4 sm:$0xff]  }
 0x38e   :  { %v5568_v7 = vld [vmem:[#allocation12 + $0x704] ss:$24 sps:$4 sm:$0xff]  }
 0x38f   :  { %4065 = vmatpush1.bf16.msra.mxu1 %v5632_v11  ;;  %v5578_v11 = vld [vmem:[#allocation12 + $0x760] ss:$24 sps:$4 sm:$0xff]  }
 0x390   :  { %2617 = vmatpush1.bf16.msra.mxu0 %v5491_v45  ;;  %4066 = vmatprep.subr.bf16.mxu1 %v5640_v54  ;;  %v5536_v45 = vld [vmem:[#allocation12 + $0x520] ss:$24 sps:$4 sm:$0xff]   ;;  %v5586_v54 = vld [vmem:[#allocation12 + $0x794] ss:$24 sps:$4 sm:$0xff]  }
 0x391   :  { %2618 = vmatprep.subr.bf16.mxu0 %v5496_v47  ;;  %v5539_v47 = vld [vmem:[#allocation12 + $0x550] ss:$24 sps:$4 sm:$0xff]  }
 0x393   :  { %4067 = vmatpush1.bf16.msra.mxu1 %v5638_v57  ;;  %v5590_v57 = vld [vmem:[#allocation12 + $0x7c0] ss:$24 sps:$4 sm:$0xff]  }
 0x394   :  { %2619 = vmatpush1.bf16.msra.mxu0 %v5494_v49  ;;  %4068 = vmatprep.subr.bf16.mxu1 %v5646_v9  ;;  %v5542_v49 = vld [vmem:[#allocation12 + $0x580] ss:$24 sps:$4 sm:$0xff]   ;;  %v5598_v9 = vld [vmem:[#allocation12 + $0x7f4] ss:$24 sps:$4 sm:$0xff]  }
 0x395   :  { %2620 = vmatprep.subr.bf16.mxu0 %v5499_v50  ;;  %v5545_v50 = vld [vmem:[#allocation12 + $0x5b0] ss:$24 sps:$4 sm:$0xff]  }
 0x398   :  { %2621 = vmatpush1.bf16.msra.mxu0 %v5497_v56  ;;  %v5548_v56 = vld [vmem:[#allocation12 + $0x5e0] ss:$24 sps:$4 sm:$0xff]  }
 0x399   :  { %2622 = vmatprep.subr.bf16.mxu0 %v5502_v58  ;;  %v5551_v58 = vld [vmem:[#allocation12 + $0x610] ss:$24 sps:$4 sm:$0xff]  }
 0x39c   :  { %2623 = vmatpush1.bf16.msra.mxu0 %v5500_v63  ;;  %v5554_v63 = vld [vmem:[#allocation12 + $0x640] ss:$24 sps:$4 sm:$0xff]  }
 0x39d   :  { %2633 = vmatprep.subr.bf16.mxu0 %v5505_v3  ;;  %v5557_v3 = vld [vmem:[#allocation12 + $0x670] ss:$24 sps:$4 sm:$0xff]  }
 0x39f   :  { %2625 = vmatmul.mubr.bf16.vlgmr.msra.gmra.mrb[4].mxu0 %v7043_v36  ;;  %v5512_v36 = vld [vmem:[#allocation12 + $0x3a0] ss:$24 sps:$4 sm:$0xff]  }
 0x3a0   :  { %2634 = vmatpush1.bf16.msra.mxu0 %v5503_v40  ;;  %2665 = vmatprep.mubr.bf16.mxu0 %v7053_v44  ;;  %v5644_v44 = vld [vmem:[#allocation15 + $0x120] ss:$16 sps:$4 sm:$0xff]  }
 0x3a1   :  { %2635 = vmatprep.subr.bf16.mxu0 %v5508_v5  ;;  %4069 = vmatpush1.bf16.msra.mxu1 %v5644_v44  ;;  %v5560_v40 = vld [vmem:[#allocation12 + $0x6a0] ss:$24 sps:$4 sm:$0xff]   ;;  %v5565_v5 = vld [vmem:[#allocation12 + $0x6d4] ss:$24 sps:$4 sm:$0xff]  }
 0x3a2   :  { %4070 = vmatprep.subr.bf16.mxu1 %v5652_v33  ;;  %v5602_v44 = vld [vmem:[#allocation12 + $0x820] ss:$24 sps:$4 sm:$0xff]   ;;  %v5610_v33 = vld [vmem:[#allocation12 + $0x854] ss:$24 sps:$4 sm:$0xff]  }
 0x3a4   :  { %2636 = vmatpush1.bf16.msra.mxu0 %v5506_v8  ;;  %v5574_v8 = vld [vmem:[#allocation12 + $0x734] ss:$24 sps:$4 sm:$0xff]  }
 0x3a5   :  { %2637 = vmatprep.subr.bf16.mxu0 %v5511_v10  ;;  %4071 = vmatpush1.bf16.msra.mxu1 %v5650_v59  ;;  %v5580_v10 = vld [vmem:[#allocation12 + $0x764] ss:$24 sps:$4 sm:$0xff]   ;;  %v5614_v59 = vld [vmem:[#allocation12 + $0x880] ss:$24 sps:$4 sm:$0xff]  }
 0x3a6   :  { %4072 = vmatprep.subr.bf16.mxu1 %v5658_v17  ;;  %v5622_v17 = vld [vmem:[#allocation12 + $0x8b4] ss:$24 sps:$4 sm:$0xff]  }
 0x3a8   :  { %2638 = vmatpush1.bf16.msra.mxu0 %v5509_v12  ;;  %v5584_v12 = vld [vmem:[#allocation12 + $0x790] ss:$24 sps:$4 sm:$0xff]  }
 0x3a9   :  { %2639 = vmatprep.subr.bf16.mxu0 %v5514_v13  ;;  %4073 = vmatpush1.bf16.msra.mxu1 %v5656_v20  ;;  %v5592_v13 = vld [vmem:[#allocation12 + $0x7c4] ss:$24 sps:$4 sm:$0xff]   ;;  %v5626_v20 = vld [vmem:[#allocation12 + $0x8e0] ss:$24 sps:$4 sm:$0xff]  }
 0x3aa   :  { %4074 = vmatprep.subr.bf16.mxu1 %v5664_v25  ;;  %v5649_v25 = vld [vmem:[#allocation15 + $0x4c] ss:$16 sps:$4 sm:$0xff]  }
 0x3ac   :  { %2640 = vmatpush1.bf16.msra.mxu0 %v5512_v36  ;;  %v5596_v36 = vld [vmem:[#allocation12 + $0x7f0] ss:$24 sps:$4 sm:$0xff]  }
 0x3ad   :  { %2641 = vmatprep.subr.bf16.mxu0 %v5517_v14  ;;  %4075 = vmatpush1.bf16.msra.mxu1 %v5662_v24  ;;  %v5604_v14 = vld [vmem:[#allocation12 + $0x824] ss:$24 sps:$4 sm:$0xff]  }
 0x3ae   :  { %4076 = vmatprep.subr.bf16.mxu1 %v5670_v28  ;;  %v5641_v24 = vld [vmem:[#allocation15 + $0x28] ss:$16 sps:$4 sm:$0xff]   ;;  %v5655_v28 = vld [vmem:[#allocation15 + $0x6c] ss:$16 sps:$4 sm:$0xff]  }
 0x3b0   :  { %2642 = vmatpush1.bf16.msra.mxu0 %v5515_v15  ;;  %v5608_v15 = vld [vmem:[#allocation12 + $0x850] ss:$24 sps:$4 sm:$0xff]  }
 0x3b1   :  { %2643 = vmatprep.subr.bf16.mxu0 %v5520_v16  ;;  %4077 = vmatpush1.bf16.msra.mxu1 %v5668_v29  ;;  %v5616_v16 = vld [vmem:[#allocation12 + $0x884] ss:$24 sps:$4 sm:$0xff]  }
 0x3b2   :  { %4078 = vmatprep.subr.bf16.mxu1 %v5676_v31  ;;  %v5653_v29 = vld [vmem:[#allocation15 + $0x68] ss:$16 sps:$4 sm:$0xff]  }
 0x3b3   :  { %v5659_v31 = vld [vmem:[#allocation15 + $0x88] ss:$16 sps:$4 sm:$0xff]  }
 0x3b4   :  { %2644 = vmatpush1.bf16.msra.mxu0 %v5518_v18  ;;  %v5620_v18 = vld [vmem:[#allocation12 + $0x8b0] ss:$24 sps:$4 sm:$0xff]  }
 0x3b5   :  { %2645 = vmatprep.subr.bf16.mxu0 %v5523_v19  ;;  %4079 = vmatpush1.bf16.msra.mxu1 %v5674_v34  ;;  %v5628_v19 = vld [vmem:[#allocation12 + $0x8e4] ss:$24 sps:$4 sm:$0xff]   ;;  %v7092_v34 = vsub.s32 2, %v7029_v1 }
 0x3b6   :  { %4080 = vmatprep.subr.bf16.mxu1 %v5682_v37 }
 0x3b8   :  { %2646 = vmatpush1.bf16.msra.mxu0 %v5521_v21  ;;  %v5637_v21 = vld [vmem:[#allocation15 + $0xc] ss:$16 sps:$4 sm:$0xff]  }
 0x3b9   :  { %2647 = vmatprep.subr.bf16.mxu0 %v5526_v22  ;;  %4081 = vmatpush1.bf16.msra.mxu1 %v5680_v39  ;;  %v5635_v22 = vld [vmem:[#allocation15 + $0x8] ss:$16 sps:$4 sm:$0xff]  }
 0x3ba   :  { %4091 = vmatprep.subr.bf16.mxu1 %v5688_v42 }
 0x3bc   :  { %2648 = vmatpush1.bf16.msra.mxu0 %v5524_v23  ;;  %v5643_v23 = vld [vmem:[#allocation15 + $0x2c] ss:$16 sps:$4 sm:$0xff]  }
 0x3bd   :  { %2649 = vmatprep.subr.bf16.mxu0 %v5529_v27  ;;  %v5647_v27 = vld [vmem:[#allocation15 + $0x48] ss:$16 sps:$4 sm:$0xff]  }
 0x3c0   :  { %2650 = vmatpush1.bf16.msra.mxu0 %v5527_v30  ;;  %v5661_v30 = vld [vmem:[#allocation15 + $0x8c] ss:$16 sps:$4 sm:$0xff]  }
 0x3c1   :  { %2651 = vmatprep.subr.bf16.mxu0 %v5532_v32  ;;  %v7089_v32 = vld [vmem:[#allocation13] sm:$0x3f] }
 0x3c2   :  { %v830_v37 = vrot.slane %v7089_v32, %v7032_v2  ;;  %v834_v39 = vrot.slane %v7089_v32, %v7036_v26 }
 0x3c4   :  { %2652 = vmatpush1.bf16.msra.mxu0 %v5530_v35  ;;  %v5667_v35 = vld [vmem:[#allocation15 + $0xac] ss:$16 sps:$4 sm:$0xff]  }
 0x3c5   :  { %2653 = vmatprep.subr.bf16.mxu0 %v5535_v38  ;;  %v838_v38 = vrot.slane %v7089_v32, %v7092_v34 }
 0x3c8   :  { %2654 = vmatpush1.bf16.msra.mxu0 %v5533_v41  ;;  %v5665_v41 = vld [vmem:[#allocation15 + $0xa8] ss:$16 sps:$4 sm:$0xff]  }
 0x3c9   :  { %2655 = vmatprep.subr.bf16.mxu0 %v5538_v43  ;;  %v5673_v43 = vld [vmem:[#allocation15 + $0xcc] ss:$16 sps:$4 sm:$0xff]  }
 0x3cc   :  { %2656 = vmatpush1.bf16.msra.mxu0 %v5536_v45 }
 0x3cd   :  { %2657 = vmatprep.subr.bf16.mxu0 %v5541_v46 }
 0x3d0   :  { %2658 = vmatpush1.bf16.msra.mxu0 %v5539_v47 }
 0x3d1   :  { %2659 = vmatprep.subr.bf16.mxu0 %v5544_v48 }
 0x3d4   :  { %2660 = vmatpush1.bf16.msra.mxu0 %v5542_v49 }
 0x3d5   :  { %2661 = vmatprep.subr.bf16.mxu0 %v5547_v52 }
 0x3d8   :  { %2662 = vmatpush1.bf16.msra.mxu0 %v5545_v50 }
 0x3d9   :  { %2663 = vmatprep.subr.bf16.mxu0 %v5550_v55 }
 0x3dc   :  { %2664 = vmatpush1.bf16.msra.mxu0 %v5548_v56  ;;  %v5671_v56 = vld [vmem:[#allocation15 + $0xc8] ss:$16 sps:$4 sm:$0xff]  }
 0x3dd   :  { %2674 = vmatprep.subr.bf16.mxu0 %v5553_v51 }
 0x3df   :  { %2666 = vmatmul.mubr.bf16.vlgmr.msra.gmra.mrb[4].mxu0 %v7065_v61  ;;  %v5566_v61 = vld [vmem:[#allocation12 + $0x700] ss:$24 sps:$4 sm:$0xff]  }
 0x3e0   :  { %2675 = vmatpush1.bf16.msra.mxu0 %v5551_v58  ;;  %2706 = vmatprep.mubr.bf16.mxu0 %v7069_v62  ;;  %v5572_v62 = vld [vmem:[#allocation12 + $0x730] ss:$24 sps:$4 sm:$0xff]  }
 0x3e1   :  { %2676 = vmatprep.subr.bf16.mxu0 %v5556_v60 }
 0x3e4   :  { %2677 = vmatpush1.bf16.msra.mxu0 %v5554_v63  ;;  %v5679_v63 = vld [vmem:[#allocation15 + $0xec] ss:$16 sps:$4 sm:$0xff]  }
 0x3e5   :  { %2678 = vmatprep.subr.bf16.mxu0 %v5559_v0 }
 0x3e8   :  { %2679 = vmatpush1.bf16.msra.mxu0 %v5557_v3  ;;  %v5677_v3 = vld [vmem:[#allocation15 + $0xe8] ss:$16 sps:$4 sm:$0xff]  }
 0x3e9   :  { %2680 = vmatprep.subr.bf16.mxu0 %v5562_v4  ;;  %v6560_v4 = vmov 1983009808  }
 0x3ec   :  { %2681 = vmatpush1.bf16.msra.mxu0 %v5560_v40  ;;  %v2730_v40 = vunpack.c.l.s4 %v6560_v4  ;;  %v5739_v4 = vld [vmem:[#allocation15 + $0x344] ss:$16 sps:$4 sm:$0xff]  }
 0x3ed   :  { %2682 = vmatprep.subr.bf16.mxu0 %v5565_v5  ;;  %v5685_v5 = vld [vmem:[#allocation15 + $0x10c] ss:$16 sps:$4 sm:$0xff]  }
 0x3f0   :  { %2683 = vmatpush1.bf16.msra.mxu0 %v5563_v6  ;;  %v5683_v6 = vld [vmem:[#allocation15 + $0x108] ss:$16 sps:$4 sm:$0xff]  }
 0x3f1   :  { %2684 = vmatprep.subr.bf16.mxu0 %v5568_v7  ;;  %v2731_v7 = vunpack.c.0.s8 %v2730_v40  ;;  %v5776_v40 = vld [vmem:[#allocation15 + $0x468] ss:$16 sps:$4 sm:$0xff]  }
 0x3f4   :  { %2685 = vmatpush1.bf16.msra.mxu0 %v5566_v61  ;;  %v5691_v61 = vld [vmem:[#allocation15 + $0x12c] ss:$16 sps:$4 sm:$0xff]  }
 0x3f5   :  { %2686 = vmatprep.subr.bf16.mxu0 %v5574_v8 }
 0x3f8   :  { %2687 = vmatpush1.bf16.msra.mxu0 %v5572_v62 }
 0x3f9   :  { %2688 = vmatprep.subr.bf16.mxu0 %v5580_v10  ;;  %v2734_v10 = vsub.s32 %v2731_v7, %v7029_v1  ;;  %v5742_v7 = vld [vmem:[#allocation15 + $0x364] ss:$16 sps:$4 sm:$0xff]  }
 0x3fc   :  { %2689 = vmatpush1.bf16.msra.mxu0 %v5578_v11 }
 0x3fd   :  { %2690 = vmatprep.subr.bf16.mxu0 %v5586_v54  ;;  %v5689_v54 = vld [vmem:[#allocation15 + $0x128] ss:$16 sps:$4 sm:$0xff]  }
 0x400   :  { %2691 = vmatpush1.bf16.msra.mxu0 %v5584_v12 }
 0x401   :  { %2692 = vmatprep.subr.bf16.mxu0 %v5592_v13 }
 0x404   :  { %2693 = vmatpush1.bf16.msra.mxu0 %v5590_v57  ;;  %v5686_v57 = vld [vmem:[#allocation15 + $0x200] ss:$16 sps:$4 sm:$0xff]  }
 0x405   :  { %2694 = vmatprep.subr.bf16.mxu0 %v5598_v9 }
 0x408   :  { %2695 = vmatpush1.bf16.msra.mxu0 %v5596_v36 }
 0x409   :  { %2696 = vmatprep.subr.bf16.mxu0 %v5604_v14  ;;  %v5694_v14 = vld [vmem:[#allocation15 + $0x224] ss:$16 sps:$4 sm:$0xff]  }
 0x40c   :  { %2697 = vmatpush1.bf16.msra.mxu0 %v5602_v44  ;;  %v5697_v44 = vld [vmem:[#allocation15 + $0x14c] ss:$16 sps:$4 sm:$0xff]  }
 0x40d   :  { %2698 = vmatprep.subr.bf16.mxu0 %v5610_v33 }
 0x410   :  { %2699 = vmatpush1.bf16.msra.mxu0 %v5608_v15 }
 0x411   :  { %2700 = vmatprep.subr.bf16.mxu0 %v5616_v16 }
 0x414   :  { %2701 = vmatpush1.bf16.msra.mxu0 %v5614_v59  ;;  %v5695_v59 = vld [vmem:[#allocation15 + $0x148] ss:$16 sps:$4 sm:$0xff]  }
 0x415   :  { %2702 = vmatprep.subr.bf16.mxu0 %v5622_v17 }
 0x418   :  { %2703 = vmatpush1.bf16.msra.mxu0 %v5620_v18  ;;  %v5692_v18 = vld [vmem:[#allocation15 + $0x220] ss:$16 sps:$4 sm:$0xff]  }
 0x419   :  { %2704 = vmatprep.subr.bf16.mxu0 %v5628_v19  ;;  %v5703_v19 = vld [vmem:[#allocation15 + $0x16c] ss:$16 sps:$4 sm:$0xff]  }
 0x41c   :  { %2705 = vmatpush1.bf16.msra.mxu0 %v5626_v20  ;;  %v5700_v20 = vld [vmem:[#allocation15 + $0x244] ss:$16 sps:$4 sm:$0xff]  }
 0x41d   :  { %4173 = vmatprep.subr.bf16.mxu0 %v5637_v21 }
 0x41f   :  { %2707 = vmatmul.mubr.bf16.vlgmr.msra.gmra.mrb[4].mxu0 %v7077_v53  ;;  %v7095_v53 = vsub.s32 3, %v7029_v1 }
 0x420   :  { %4174 = vmatpush1.bf16.msra.mxu0 %v5635_v22  ;;  %v5701_v22 = vld [vmem:[#allocation15 + $0x168] ss:$16 sps:$4 sm:$0xff]  }
 0x421   :  { %4175 = vmatprep.subr.bf16.mxu0 %v5643_v23  ;;  %v842_v42 = vrot.slane %v7089_v32, %v7095_v53  ;;  %v5698_v23 = vld [vmem:[#allocation15 + $0x240] ss:$16 sps:$4 sm:$0xff]  }
 0x424   :  { %4176 = vmatpush1.bf16.msra.mxu0 %v5641_v24  ;;  %v5709_v24 = vld [vmem:[#allocation15 + $0x18c] ss:$16 sps:$4 sm:$0xff]  }
 0x425   :  { %4177 = vmatprep.subr.bf16.mxu0 %v5649_v25  ;;  %v5706_v25 = vld [vmem:[#allocation15 + $0x264] ss:$16 sps:$4 sm:$0xff]  }
 0x428   :  { %4178 = vmatpush1.bf16.msra.mxu0 %v5647_v27  ;;  %v5707_v27 = vld [vmem:[#allocation15 + $0x188] ss:$16 sps:$4 sm:$0xff]  }
 0x429   :  { %4179 = vmatprep.subr.bf16.mxu0 %v5655_v28  ;;  %v5704_v28 = vld [vmem:[#allocation15 + $0x260] ss:$16 sps:$4 sm:$0xff]  }
 0x42c   :  { %4180 = vmatpush1.bf16.msra.mxu0 %v5653_v29  ;;  %v5715_v29 = vld [vmem:[#allocation15 + $0x1ac] ss:$16 sps:$4 sm:$0xff]  }
 0x42d   :  { %4181 = vmatprep.subr.bf16.mxu0 %v5661_v30  ;;  %v5712_v30 = vld [vmem:[#allocation15 + $0x284] ss:$16 sps:$4 sm:$0xff]  }
 0x430   :  { %4182 = vmatpush1.bf16.msra.mxu0 %v5659_v31  ;;  %v5713_v31 = vld [vmem:[#allocation15 + $0x1a8] ss:$16 sps:$4 sm:$0xff]  }
 0x431   :  { %4183 = vmatprep.subr.bf16.mxu0 %v5667_v35  ;;  %v5710_v35 = vld [vmem:[#allocation15 + $0x280] ss:$16 sps:$4 sm:$0xff]  }
 0x432   :  { %v2462_v45 = vpop.f32.mrb[0].mxu0 }
 0x433   :  { %v5104_v46 = vadd.f32 %v2462_v45, %v830_v37  ;;  %v2585_v47 = vpop.f32.mrb[0].mxu1  ;;  %v2464_v48 = vpop.f32.mrb[1].mxu0  ;;  %v5721_v37 = vld [vmem:[#allocation15 + $0x1cc] ss:$16 sps:$4 sm:$0xff]   ;;  %v5725_v45 = vld [vmem:[#allocation15 + $0x1e8] ss:$16 sps:$4 sm:$0xff]  }
 0x434   :  { %v5106_v49 = vadd.f32 %v2585_v47, %v838_v38  ;;  %v5105_v52 = vadd.f32 %v2464_v48, %v834_v39  ;;  %v2587_v50 = vpop.f32.mrb[1].mxu1  ;;  %v2466_v55 = vpop.f32.mrb[2].mxu0  ;;  %4184 = vmatpush1.bf16.msra.mxu0 %v5665_v41  ;;  %v5718_v38 = vld [vmem:[#allocation15 + $0x2a4] ss:$16 sps:$4 sm:$0xff]   ;;  %v5719_v39 = vld [vmem:[#allocation15 + $0x1c8] ss:$16 sps:$4 sm:$0xff]  }
 0x435   :  { %5903 = vtanh.f32 %v5104_v46  ;;  %v5107_v51 = vadd.f32 %v2587_v50, %v842_v42  ;;  %v2589_v58 = vpop.f32.mrb[2].mxu1  ;;  %v2467_v60 = vpop.f32.mrb[3].mxu0  ;;  %4185 = vmatprep.subr.bf16.mxu0 %v5673_v43  ;;  %v5716_v41 = vld [vmem:[#allocation15 + $0x2a0] ss:$16 sps:$4 sm:$0xff]   ;;  %v5727_v42 = vld [vmem:[#allocation15 + $0x1ec] ss:$16 sps:$4 sm:$0xff]  }
 0x436   :  { %5905 = vtanh.f32 %v5106_v49  ;;  %v2590_v0 = vpop.f32.mrb[3].mxu1  ;;  %v5724_v43 = vld [vmem:[#allocation15 + $0x2c4] ss:$16 sps:$4 sm:$0xff]   ;;  %v5722_v46 = vld [vmem:[#allocation15 + $0x2c0] ss:$16 sps:$4 sm:$0xff]  }
 0x437   :  { %5907 = vtanh.f32 %v5105_v52  ;;  %v5760_v47 = vld [vmem:[#allocation15 + $0x40c] ss:$16 sps:$4 sm:$0xff]   ;;  %v5730_v48 = vld [vmem:[#allocation15 + $0x2e4] ss:$16 sps:$4 sm:$0xff]   ;;  %v5758_v49 = vld [vmem:[#allocation15 + $0x408] ss:$16 sps:$4 sm:$0xff]  }
 0x438   :  { %5909 = vtanh.f32 %v5107_v51  ;;  %4186 = vmatpush1.bf16.msra.mxu0 %v5671_v56  ;;  %v5728_v52 = vld [vmem:[#allocation15 + $0x2e0] ss:$16 sps:$4 sm:$0xff]   ;;  %v5766_v50 = vld [vmem:[#allocation15 + $0x42c] ss:$16 sps:$4 sm:$0xff]   ;;  %v5733_v55 = vld [vmem:[#allocation15 + $0x304] ss:$16 sps:$4 sm:$0xff]  }
 0x439   :  { %4187 = vmatprep.subr.bf16.mxu0 %v5679_v63  ;;  %v5764_v56 = vld [vmem:[#allocation15 + $0x428] ss:$16 sps:$4 sm:$0xff]   ;;  %v5731_v51 = vld [vmem:[#allocation15 + $0x300] ss:$16 sps:$4 sm:$0xff]   ;;  %v5772_v58 = vld [vmem:[#allocation15 + $0x44c] ss:$16 sps:$4 sm:$0xff]  }
 0x43a   :  { %v5736_v60 = vld [vmem:[#allocation15 + $0x324] ss:$16 sps:$4 sm:$0xff]   ;;  %v5770_v63 = vld [vmem:[#allocation15 + $0x448] ss:$16 sps:$4 sm:$0xff]   ;;  %v5734_v0 = vld [vmem:[#allocation15 + $0x320] ss:$16 sps:$4 sm:$0xff]  }
 0x43c   :  { %4188 = vmatpush1.bf16.msra.mxu0 %v5677_v3  ;;  %v5778_v3 = vld [vmem:[#allocation15 + $0x46c] ss:$16 sps:$4 sm:$0xff]  }
 0x43d   :  { %4189 = vmatprep.subr.bf16.mxu0 %v5685_v5  ;;  %v5737_v5 = vld [vmem:[#allocation15 + $0x340] ss:$16 sps:$4 sm:$0xff]  }
 0x43f   :  { %v5904_v8 = vpop.eup %5903 }
 0x440   :  { %v7105_v62 = vpop.eup %5905  ;;  %4190 = vmatpush1.bf16.msra.mxu0 %v5683_v6  ;;  %v7108_v36 = vpack.c.bf16 %v5904_v8, %v5904_v8  ;;  %v5784_v6 = vld [vmem:[#allocation15 + $0x48c] ss:$16 sps:$4 sm:$0xff]  }
 0x441   :  { %v5908_v11 = vpop.eup %5907  ;;  %4191 = vmatprep.subr.bf16.mxu0 %v5691_v61  ;;  %v5782_v61 = vld [vmem:[#allocation15 + $0x488] ss:$16 sps:$4 sm:$0xff]  }
 0x442   :  { %v5910_v12 = vpop.eup %5909  ;;  %v2757_v13 = vpack.c.bf16 %v5908_v11, %v5908_v11  ;;  %v2727_v9 = vcombine.low %v5904_v8, %v5908_v11  ;;  %v5740_v8 = vld [vmem:[#allocation15 + $0x360] ss:$16 sps:$4 sm:$0xff]   ;;  %v5745_v11 = vld [vmem:[#allocation15 + $0x384] ss:$16 sps:$4 sm:$0xff]  }
 0x443   :  { %v2728_v33 = vcombine.low %v7105_v62, %v5910_v12  ;;  %v7111_v15 = vpack.c.bf16 %v5910_v12, %v5910_v12  ;;  %v5743_v12 = vld [vmem:[#allocation15 + $0x380] ss:$16 sps:$4 sm:$0xff]  }
 0x444   :  { %4082 = vmatprep.mubr.bf16.mxu1 %v2757_v13  ;;  %4205 = vmatprep.mubr.bf16.mxu0 %v2757_v13  ;;  %v2735_v16 = vrot.slane %v2727_v9, %v2734_v10  ;;  %v5796_v13 = vld [vmem:[#allocation15 + $0x4cc] ss:$16 sps:$4 sm:$0xff]   ;;  %v5794_v9 = vld [vmem:[#allocation15 + $0x4c8] ss:$16 sps:$4 sm:$0xff]  }
 0x445   :  { %4083 = vmatmul.mubr.bf16.vlgmr.msra.gmra.mrb[12].mxu1 %v7108_v36  ;;  %4192 = vmatpush1.bf16.msra.mxu0 %v5689_v54  ;;  %v2742_v17 = vrot.slane %v2728_v33, %v2734_v10  ;;  %v5790_v10 = vld [vmem:[#allocation15 + $0x4ac] ss:$16 sps:$4 sm:$0xff]   ;;  %v5788_v54 = vld [vmem:[#allocation15 + $0x4a8] ss:$16 sps:$4 sm:$0xff]  }
 0x446   :  { %4092 = vmatpush1.bf16.msra.mxu1 %v5686_v57  ;;  %4123 = vmatprep.mubr.bf16.mxu1 %v7111_v15  ;;  %v5748_v57 = vld [vmem:[#allocation15 + $0x3a4] ss:$16 sps:$4 sm:$0xff]   ;;  %v5800_v33 = vld [vmem:[#allocation15 + $0x4e8] ss:$16 sps:$4 sm:$0xff]  }
 0x447   :  { %4093 = vmatprep.subr.bf16.mxu1 %v5694_v14  ;;  %4193 = vmatprep.subr.bf16.mxu0 %v5697_v44  ;;  %v2743_v21 = vcombine.low %v2735_v16, %v2742_v17  ;;  %v5802_v14 = vld [vmem:[#allocation15 + $0x4ec] ss:$16 sps:$4 sm:$0xff]   ;;  %v5751_v44 = vld [vmem:[#allocation15 + $0x3c4] ss:$16 sps:$4 sm:$0xff]   ;;  %v5749_v16 = vld [vmem:[#allocation15 + $0x3c0] ss:$16 sps:$4 sm:$0xff]  }
 0x448   :  { %v5754_v17 = vld [vmem:[#allocation15 + $0x3e4] ss:$16 sps:$4 sm:$0xff]  }
 0x449   :  { %4194 = vmatpush1.bf16.msra.mxu0 %v5695_v59  ;;  %2754 = vst [vmem:[#allocation19] sm:$0xff] %v2743_v21  ;;  %v5808_v59 = vld [vmem:[#allocation15 + $0x50c] ss:$16 sps:$4 sm:$0xff]   ;;  %v5757_v21 = vld [vmem:[#allocation15 + $0x404] ss:$16 sps:$4 sm:$0xff]  }
 0x44a   :  { %4094 = vmatpush1.bf16.msra.mxu1 %v5692_v18  ;;  %4195 = vmatprep.subr.bf16.mxu0 %v5703_v19  ;;  %v5806_v18 = vld [vmem:[#allocation15 + $0x508] ss:$16 sps:$4 sm:$0xff]   ;;  %v5752_v19 = vld [vmem:[#allocation15 + $0x3e0] ss:$16 sps:$4 sm:$0xff]  }
 0x44b   :  { %4095 = vmatprep.subr.bf16.mxu1 %v5700_v20  ;;  %v5814_v20 = vld [vmem:[#allocation15 + $0x52c] ss:$16 sps:$4 sm:$0xff]  }
 0x44d   :  { %4196 = vmatpush1.bf16.msra.mxu0 %v5701_v22  ;;  %v5812_v22 = vld [vmem:[#allocation15 + $0x528] ss:$16 sps:$4 sm:$0xff]  }
 0x44e   :  { %4096 = vmatpush1.bf16.msra.mxu1 %v5698_v23  ;;  %4197 = vmatprep.subr.bf16.mxu0 %v5709_v24  ;;  %v5755_v23 = vld [vmem:[#allocation15 + $0x400] ss:$16 sps:$4 sm:$0xff]   ;;  %v5820_v24 = vld [vmem:[#allocation15 + $0x54c] ss:$16 sps:$4 sm:$0xff]  }
 0x44f   :  { %4097 = vmatprep.subr.bf16.mxu1 %v5706_v25  ;;  %v7118_v25 = vpack.c.bf16 %v7105_v62, %v7105_v62  ;;  %v7121_v62 = vpop.f32.mrb[4].mxu1 }
 0x451   :  { %4198 = vmatpush1.bf16.msra.mxu0 %v5707_v27  ;;  %v5763_v27 = vld [vmem:[#allocation15 + $0x424] ss:$16 sps:$4 sm:$0xff]  }
 0x452   :  { %4098 = vmatpush1.bf16.msra.mxu1 %v5704_v28  ;;  %4199 = vmatprep.subr.bf16.mxu0 %v5715_v29  ;;  %v5818_v28 = vld [vmem:[#allocation15 + $0x548] ss:$16 sps:$4 sm:$0xff]   ;;  %v5761_v29 = vld [vmem:[#allocation15 + $0x420] ss:$16 sps:$4 sm:$0xff]  }
 0x453   :  { %4099 = vmatprep.subr.bf16.mxu1 %v5712_v30  ;;  %v5826_v30 = vld [vmem:[#allocation15 + $0x56c] ss:$16 sps:$4 sm:$0xff]  }
 0x455   :  { %4200 = vmatpush1.bf16.msra.mxu0 %v5713_v31  ;;  %v5769_v31 = vld [vmem:[#allocation15 + $0x444] ss:$16 sps:$4 sm:$0xff]  }
 0x456   :  { %4100 = vmatpush1.bf16.msra.mxu1 %v5710_v35  ;;  %4201 = vmatprep.subr.bf16.mxu0 %v5721_v37  ;;  %v5824_v35 = vld [vmem:[#allocation15 + $0x568] ss:$16 sps:$4 sm:$0xff]   ;;  %v5767_v37 = vld [vmem:[#allocation15 + $0x440] ss:$16 sps:$4 sm:$0xff]  }
 0x457   :  { %4101 = vmatprep.subr.bf16.mxu1 %v5718_v38  ;;  %v5832_v38 = vld [vmem:[#allocation15 + $0x58c] ss:$16 sps:$4 sm:$0xff]  }
 0x459   :  { %4202 = vmatpush1.bf16.msra.mxu0 %v5719_v39  ;;  %v5775_v39 = vld [vmem:[#allocation15 + $0x464] ss:$16 sps:$4 sm:$0xff]  }
 0x45a   :  { %4102 = vmatpush1.bf16.msra.mxu1 %v5716_v41  ;;  %4203 = vmatprep.subr.bf16.mxu0 %v5727_v42  ;;  %v5830_v41 = vld [vmem:[#allocation15 + $0x588] ss:$16 sps:$4 sm:$0xff]   ;;  %v7123_v42 = vpop.f32.mrb[5].mxu1 }
 0x45b   :  { %4103 = vmatprep.subr.bf16.mxu1 %v5724_v43  ;;  %v5773_v43 = vld [vmem:[#allocation15 + $0x460] ss:$16 sps:$4 sm:$0xff]  }
 0x45d   :  { %4204 = vmatpush1.bf16.msra.mxu0 %v5725_v45  ;;  %v5838_v45 = vld [vmem:[#allocation15 + $0x5ac] ss:$16 sps:$4 sm:$0xff]  }
 0x45e   :  { %4104 = vmatpush1.bf16.msra.mxu1 %v5722_v46  ;;  %4255 = vmatprep.subr.bf16.mxu0 %v5760_v47  ;;  %v3046_v46 = vpop.f32.mrb[6].mxu1  ;;  %v5781_v47 = vld [vmem:[#allocation15 + $0x484] ss:$16 sps:$4 sm:$0xff]  }
 0x45f   :  { %4105 = vmatprep.subr.bf16.mxu1 %v5730_v48  ;;  %v3047_v48 = vpop.f32.mrb[7].mxu1  ;;  %v5862_v46 = vld [vmem:[#allocation15 + $0x26c] ss:$16 sps:$4 sm:$0xff]  }
 0x460   :  { %4206 = vmatmul.mubr.bf16.vlgmr.msra.gmra.mrb[8].mxu0 %v7108_v36  ;;  %v5746_v36 = vld [vmem:[#allocation15 + $0x3a0] ss:$16 sps:$4 sm:$0xff]   ;;  %v5865_v48 = vld [vmem:[#allocation15 + $0x28c] ss:$16 sps:$4 sm:$0xff]  }
 0x461   :  { %4256 = vmatpush1.bf16.msra.mxu0 %v5758_v49  ;;  %v5836_v49 = vld [vmem:[#allocation15 + $0x5a8] ss:$16 sps:$4 sm:$0xff]  }
 0x462   :  { %4106 = vmatpush1.bf16.msra.mxu1 %v5728_v52  ;;  %4257 = vmatprep.subr.bf16.mxu0 %v5766_v50  ;;  %v7125_v52 = vpop.f32.mrb[8].mxu1  ;;  %v5779_v50 = vld [vmem:[#allocation15 + $0x480] ss:$16 sps:$4 sm:$0xff]  }
 0x463   :  { %4107 = vmatprep.subr.bf16.mxu1 %v5733_v55  ;;  %v5844_v55 = vld [vmem:[#allocation15 + $0x5cc] ss:$16 sps:$4 sm:$0xff]  }
 0x465   :  { %4258 = vmatpush1.bf16.msra.mxu0 %v5764_v56  ;;  %v7127_v56 = vpop.f32.mrb[9].mxu1 }
 0x466   :  { %4108 = vmatpush1.bf16.msra.mxu1 %v5731_v51  ;;  %4259 = vmatprep.subr.bf16.mxu0 %v5772_v58  ;;  %v5787_v51 = vld [vmem:[#allocation15 + $0x4a4] ss:$16 sps:$4 sm:$0xff]   ;;  %v3087_v58 = vpop.f32.mrb[10].mxu1 }
 0x467   :  { %4109 = vmatprep.subr.bf16.mxu1 %v5736_v60  ;;  %v3088_v60 = vpop.f32.mrb[11].mxu1 }
 0x469   :  { %4260 = vmatpush1.bf16.msra.mxu0 %v5770_v63  ;;  %v5842_v63 = vld [vmem:[#allocation15 + $0x5c8] ss:$16 sps:$4 sm:$0xff]  }
 0x46a   :  { %4110 = vmatpush1.bf16.msra.mxu1 %v5734_v0  ;;  %4261 = vmatprep.subr.bf16.mxu0 %v5778_v3  ;;  %v5785_v0 = vld [vmem:[#allocation15 + $0x4a0] ss:$16 sps:$4 sm:$0xff]   ;;  %v5850_v3 = vld [vmem:[#allocation15 + $0x5ec] ss:$16 sps:$4 sm:$0xff]  }
 0x46b   :  { %4111 = vmatprep.subr.bf16.mxu1 %v5739_v4  ;;  %v5793_v4 = vld [vmem:[#allocation15 + $0x4c4] ss:$16 sps:$4 sm:$0xff]  }
 0x46d   :  { %4262 = vmatpush1.bf16.msra.mxu0 %v5776_v40  ;;  %v5848_v40 = vld [vmem:[#allocation15 + $0x5e8] ss:$16 sps:$4 sm:$0xff]  }
 0x46e   :  { %4112 = vmatpush1.bf16.msra.mxu1 %v5737_v5  ;;  %4263 = vmatprep.subr.bf16.mxu0 %v5784_v6  ;;  %v5791_v5 = vld [vmem:[#allocation15 + $0x4c0] ss:$16 sps:$4 sm:$0xff]   ;;  %v5799_v6 = vld [vmem:[#allocation15 + $0x4e4] ss:$16 sps:$4 sm:$0xff]  }
 0x46f   :  { %4113 = vmatprep.subr.bf16.mxu1 %v5742_v7  ;;  %v5797_v7 = vld [vmem:[#allocation15 + $0x4e0] ss:$16 sps:$4 sm:$0xff]  }
 0x471   :  { %4264 = vmatpush1.bf16.msra.mxu0 %v5782_v61  ;;  %v5805_v61 = vld [vmem:[#allocation15 + $0x504] ss:$16 sps:$4 sm:$0xff]  }
 0x472   :  { %4114 = vmatpush1.bf16.msra.mxu1 %v5740_v8  ;;  %4265 = vmatprep.subr.bf16.mxu0 %v5790_v10  ;;  %v5803_v8 = vld [vmem:[#allocation15 + $0x500] ss:$16 sps:$4 sm:$0xff]   ;;  %v5811_v10 = vld [vmem:[#allocation15 + $0x524] ss:$16 sps:$4 sm:$0xff]  }
 0x473   :  { %4115 = vmatprep.subr.bf16.mxu1 %v5745_v11  ;;  %v5809_v11 = vld [vmem:[#allocation15 + $0x520] ss:$16 sps:$4 sm:$0xff]  }
 0x475   :  { %4266 = vmatpush1.bf16.msra.mxu0 %v5788_v54  ;;  %v5817_v54 = vld [vmem:[#allocation15 + $0x544] ss:$16 sps:$4 sm:$0xff]  }
 0x476   :  { %4116 = vmatpush1.bf16.msra.mxu1 %v5743_v12  ;;  %4267 = vmatprep.subr.bf16.mxu0 %v5796_v13  ;;  %v5815_v12 = vld [vmem:[#allocation15 + $0x540] ss:$16 sps:$4 sm:$0xff]   ;;  %v5823_v13 = vld [vmem:[#allocation15 + $0x564] ss:$16 sps:$4 sm:$0xff]  }
 0x477   :  { %4117 = vmatprep.subr.bf16.mxu1 %v5748_v57  ;;  %v5821_v57 = vld [vmem:[#allocation15 + $0x560] ss:$16 sps:$4 sm:$0xff]  }
 0x479   :  { %4268 = vmatpush1.bf16.msra.mxu0 %v5794_v9  ;;  %v5829_v9 = vld [vmem:[#allocation15 + $0x584] ss:$16 sps:$4 sm:$0xff]  }
 0x47a   :  { %4118 = vmatpush1.bf16.msra.mxu1 %v5746_v36  ;;  %4269 = vmatprep.subr.bf16.mxu0 %v5802_v14  ;;  %v5827_v36 = vld [vmem:[#allocation15 + $0x580] ss:$16 sps:$4 sm:$0xff]   ;;  %v5835_v14 = vld [vmem:[#allocation15 + $0x5a4] ss:$16 sps:$4 sm:$0xff]  }
 0x47b   :  { %4119 = vmatprep.subr.bf16.mxu1 %v5751_v44  ;;  %v5833_v44 = vld [vmem:[#allocation15 + $0x5a0] ss:$16 sps:$4 sm:$0xff]  }
 0x47d   :  { %4270 = vmatpush1.bf16.msra.mxu0 %v5800_v33  ;;  %v5841_v33 = vld [vmem:[#allocation15 + $0x5c4] ss:$16 sps:$4 sm:$0xff]  }
 0x47e   :  { %4120 = vmatpush1.bf16.msra.mxu1 %v5749_v16  ;;  %4271 = vmatprep.subr.bf16.mxu0 %v5808_v59  ;;  %v5839_v16 = vld [vmem:[#allocation15 + $0x5c0] ss:$16 sps:$4 sm:$0xff]   ;;  %v5847_v59 = vld [vmem:[#allocation15 + $0x5e4] ss:$16 sps:$4 sm:$0xff]  }
 0x47f   :  { %4121 = vmatprep.subr.bf16.mxu1 %v5754_v17  ;;  %v5845_v17 = vld [vmem:[#allocation15 + $0x5e0] ss:$16 sps:$4 sm:$0xff]  }
 0x481   :  { %4272 = vmatpush1.bf16.msra.mxu0 %v5806_v18  ;;  %v5853_v18 = vld [vmem:[#allocation15 + $0x20c] ss:$16 sps:$4 sm:$0xff]  }
 0x482   :  { %4122 = vmatpush1.bf16.msra.mxu1 %v5752_v19  ;;  %4273 = vmatprep.subr.bf16.mxu0 %v5814_v20  ;;  %v845_v19 = vsub.s32 4, %v7029_v1  ;;  %v849_v20 = vsub.s32 5, %v7029_v1  ;;  %v5854_v1 = vld [vmem:[#allocation15 + $0x228] ss:$16 sps:$4 sm:$0xff]  }
 0x483   :  { %4132 = vmatprep.subr.bf16.mxu1 %v5757_v21 }
 0x484   :  { %v846_v21 = vrot.slane %v7089_v32, %v845_v19  ;;  %v5896_v19 = vld [vmem:[#allocation15 + $0x3e8] ss:$16 sps:$4 sm:$0xff]  }
 0x485   :  { %4124 = vmatmul.mubr.bf16.vlgmr.msra.gmra.mrb[16].mxu1 %v7118_v25  ;;  %4274 = vmatpush1.bf16.msra.mxu0 %v5812_v22  ;;  %v850_v22 = vrot.slane %v7089_v32, %v849_v20  ;;  %v5859_v32 = vld [vmem:[#allocation15 + $0x24c] ss:$16 sps:$4 sm:$0xff]  }
 0x486   :  { %4133 = vmatpush1.bf16.msra.mxu1 %v5755_v23  ;;  %4275 = vmatprep.subr.bf16.mxu0 %v5820_v24 }
 0x487   :  { %4134 = vmatprep.subr.bf16.mxu1 %v5763_v27 }
 0x489   :  { %4276 = vmatpush1.bf16.msra.mxu0 %v5818_v28 }
 0x48a   :  { %4135 = vmatpush1.bf16.msra.mxu1 %v5761_v29  ;;  %4277 = vmatprep.subr.bf16.mxu0 %v5826_v30 }
 0x48b   :  { %4136 = vmatprep.subr.bf16.mxu1 %v5769_v31 }
 0x48d   :  { %4278 = vmatpush1.bf16.msra.mxu0 %v5824_v35 }
 0x48e   :  { %4137 = vmatpush1.bf16.msra.mxu1 %v5767_v37  ;;  %4279 = vmatprep.subr.bf16.mxu0 %v5832_v38  ;;  %v5851_v38 = vld [vmem:[#allocation15 + $0x208] ss:$16 sps:$4 sm:$0xff]  }
 0x48f   :  { %4138 = vmatprep.subr.bf16.mxu1 %v5775_v39 }
 0x491   :  { %4280 = vmatpush1.bf16.msra.mxu0 %v5830_v41 }
 0x492   :  { %4139 = vmatpush1.bf16.msra.mxu1 %v5773_v43  ;;  %4281 = vmatprep.subr.bf16.mxu0 %v5838_v45  ;;  %v5856_v43 = vld [vmem:[#allocation15 + $0x22c] ss:$16 sps:$4 sm:$0xff]   ;;  %v5857_v45 = vld [vmem:[#allocation15 + $0x248] ss:$16 sps:$4 sm:$0xff]  }
 0x493   :  { %4140 = vmatprep.subr.bf16.mxu1 %v5781_v47  ;;  %v5860_v47 = vld [vmem:[#allocation15 + $0x268] ss:$16 sps:$4 sm:$0xff]  }
 0x495   :  { %4282 = vmatpush1.bf16.msra.mxu0 %v5836_v49  ;;  %v5863_v49 = vld [vmem:[#allocation15 + $0x288] ss:$16 sps:$4 sm:$0xff]  }
 0x496   :  { %4141 = vmatpush1.bf16.msra.mxu1 %v5779_v50  ;;  %4283 = vmatprep.subr.bf16.mxu0 %v5844_v55  ;;  %v5868_v50 = vld [vmem:[#allocation15 + $0x2ac] ss:$16 sps:$4 sm:$0xff]   ;;  %v5866_v55 = vld [vmem:[#allocation15 + $0x2a8] ss:$16 sps:$4 sm:$0xff]  }
 0x497   :  { %4142 = vmatprep.subr.bf16.mxu1 %v5787_v51  ;;  %v5871_v51 = vld [vmem:[#allocation15 + $0x2cc] ss:$16 sps:$4 sm:$0xff]  }
 0x499   :  { %4284 = vmatpush1.bf16.msra.mxu0 %v5842_v63  ;;  %v5869_v63 = vld [vmem:[#allocation15 + $0x2c8] ss:$16 sps:$4 sm:$0xff]  }
 0x49a   :  { %4143 = vmatpush1.bf16.msra.mxu1 %v5785_v0  ;;  %4285 = vmatprep.subr.bf16.mxu0 %v5850_v3 }
 0x49b   :  { %4144 = vmatprep.subr.bf16.mxu1 %v5793_v4  ;;  %v5874_v4 = vld [vmem:[#allocation15 + $0x2ec] ss:$16 sps:$4 sm:$0xff]  }
 0x49d   :  { %4286 = vmatpush1.bf16.msra.mxu0 %v5848_v40 }
 0x49e   :  { %4145 = vmatpush1.bf16.msra.mxu1 %v5791_v5  ;;  %v5872_v5 = vld [vmem:[#allocation15 + $0x2e8] ss:$16 sps:$4 sm:$0xff]  }
 0x49f   :  { %4146 = vmatprep.subr.bf16.mxu1 %v5799_v6  ;;  %v5877_v6 = vld [vmem:[#allocation15 + $0x30c] ss:$16 sps:$4 sm:$0xff]  }
 0x4a2   :  { %4147 = vmatpush1.bf16.msra.mxu1 %v5797_v7  ;;  %v5875_v7 = vld [vmem:[#allocation15 + $0x308] ss:$16 sps:$4 sm:$0xff]  }
 0x4a3   :  { %4148 = vmatprep.subr.bf16.mxu1 %v5805_v61  ;;  %v5880_v61 = vld [vmem:[#allocation15 + $0x32c] ss:$16 sps:$4 sm:$0xff]  }
 0x4a6   :  { %4149 = vmatpush1.bf16.msra.mxu1 %v5803_v8  ;;  %v5878_v8 = vld [vmem:[#allocation15 + $0x328] ss:$16 sps:$4 sm:$0xff]  }
 0x4a7   :  { %4150 = vmatprep.subr.bf16.mxu1 %v5811_v10  ;;  %v5881_v10 = vld [vmem:[#allocation15 + $0x348] ss:$16 sps:$4 sm:$0xff]  }
 0x4aa   :  { %4151 = vmatpush1.bf16.msra.mxu1 %v5809_v11  ;;  %v5884_v11 = vld [vmem:[#allocation15 + $0x368] ss:$16 sps:$4 sm:$0xff]  }
 0x4ab   :  { %4152 = vmatprep.subr.bf16.mxu1 %v5817_v54  ;;  %v5889_v54 = vld [vmem:[#allocation15 + $0x38c] ss:$16 sps:$4 sm:$0xff]  }
 0x4ae   :  { %4153 = vmatpush1.bf16.msra.mxu1 %v5815_v12  ;;  %v5887_v12 = vld [vmem:[#allocation15 + $0x388] ss:$16 sps:$4 sm:$0xff]  }
 0x4af   :  { %4154 = vmatprep.subr.bf16.mxu1 %v5823_v13  ;;  %v5892_v13 = vld [vmem:[#allocation15 + $0x3ac] ss:$16 sps:$4 sm:$0xff]  }
 0x4b2   :  { %4155 = vmatpush1.bf16.msra.mxu1 %v5821_v57 }
 0x4b3   :  { %4156 = vmatprep.subr.bf16.mxu1 %v5829_v9 }
 0x4b6   :  { %4157 = vmatpush1.bf16.msra.mxu1 %v5827_v36 }
 0x4b7   :  { %4158 = vmatprep.subr.bf16.mxu1 %v5835_v14 }
 0x4ba   :  { %4159 = vmatpush1.bf16.msra.mxu1 %v5833_v44 }
 0x4bb   :  { %4160 = vmatprep.subr.bf16.mxu1 %v5841_v33  ;;  %v5890_v33 = vld [vmem:[#allocation15 + $0x3a8] ss:$16 sps:$4 sm:$0xff]  }
 0x4be   :  { %4161 = vmatpush1.bf16.msra.mxu1 %v5839_v16 }
 0x4bf   :  { %4162 = vmatprep.subr.bf16.mxu1 %v5847_v59  ;;  %v5895_v59 = vld [vmem:[#allocation15 + $0x3cc] ss:$16 sps:$4 sm:$0xff]  }
 0x4c2   :  { %4163 = vmatpush1.bf16.msra.mxu1 %v5845_v17  ;;  %v5893_v17 = vld [vmem:[#allocation15 + $0x3c8] ss:$16 sps:$4 sm:$0xff]  }
 0x4c3   :  { %4214 = vmatprep.subr.bf16.mxu1 %v5853_v18  ;;  %v5898_v18 = vld [vmem:[#allocation15 + $0x3ec] ss:$16 sps:$4 sm:$0xff]  }
 0x4f2   :  { %v2708_v23 = vpop.f32.mrb[4].mxu0 }
 0x4f3   :  { %v5108_v24 = vadd.f32 %v2708_v23, %v846_v21  ;;  %v2710_v27 = vpop.f32.mrb[5].mxu0 }
 0x4f4   :  { %v5109_v28 = vadd.f32 %v2710_v27, %v850_v22  ;;  %v2712_v29 = vpop.f32.mrb[6].mxu0 }
 0x4f5   :  { %5911 = vtanh.f32 %v5108_v24  ;;  %v2713_v30 = vpop.f32.mrb[7].mxu0  ;;  %v4296_v24 = vld [vmem:[#allocation18] ss:$2 sm:$0xf] }
 0x4f6   :  { %5913 = vtanh.f32 %v5109_v28  ;;  %v4301_v27 = vrot.slane %v4296_v24, %v7032_v2  ;;  %v4327_v29 = vld [vmem:[#allocation18 + $0x1] ss:$2 sm:$0xf] }
 0x4ff   :  { %v5912_v31 = vpop.eup %5911 }
 0x500   :  { %v5914_v35 = vpop.eup %5913  ;;  %v2760_v41 = vpack.c.bf16 %v5912_v31, %v5912_v31 }
 0x501   :  { %v2761_v37 = vpack.c.bf16 %v5914_v35, %v5914_v35  ;;  %v2744_v39 = vcombine.low %v5912_v31, %v5914_v35  ;;  %v4305_v31 = vrot.slane %v4296_v24, %v7036_v26 }
 0x503   :  { %4164 = vmatprep.mubr.bf16.mxu1 %v2761_v37  ;;  %4287 = vmatprep.mubr.bf16.mxu0 %v2761_v37  ;;  %4885 = vst.sshfl [vmem:[#allocation19 + $0x8] sm:$0x33 pattern:$0x76325410] %v2744_v39 }
 0x504   :  { %4165 = vmatmul.mubr.bf16.vlgmr.msra.gmra.mrb[20].mxu1 %v2760_v41  ;;  %4288 = vmatmul.mubr.bf16.vlgmr.msra.gmra.mrb[12].mxu0 %v2760_v41 }
 0x505   :  { %4215 = vmatpush1.bf16.msra.mxu1 %v5851_v38  ;;  %4246 = vmatprep.mubr.bf16.mxu1 %v7111_v15 }
 0x506   :  { %4216 = vmatprep.subr.bf16.mxu1 %v5856_v43 }
 0x509   :  { %4217 = vmatpush1.bf16.msra.mxu1 %v5854_v1  ;;  %v4332_v1 = vrot.slane %v4327_v29, %v7032_v2 }
 0x50a   :  { %4218 = vmatprep.subr.bf16.mxu1 %v5859_v32 }
 0x50d   :  { %4219 = vmatpush1.bf16.msra.mxu1 %v5857_v45 }
 0x50e   :  { %4220 = vmatprep.subr.bf16.mxu1 %v5862_v46 }
 0x511   :  { %4221 = vmatpush1.bf16.msra.mxu1 %v5860_v47  ;;  %v4336_v47 = vrot.slane %v4327_v29, %v7036_v26 }
 0x512   :  { %4222 = vmatprep.subr.bf16.mxu1 %v5865_v48 }
 0x515   :  { %4223 = vmatpush1.bf16.msra.mxu1 %v5863_v49 }
 0x516   :  { %4224 = vmatprep.subr.bf16.mxu1 %v5868_v50 }
 0x518   :  { %v4084_v15 = vpop.f32.mrb[12].mxu1 }
 0x519   :  { %v4085_v58 = vadd.f32 %v4084_v15, %v7121_v62  ;;  %v4086_v60 = vpop.f32.mrb[13].mxu1  ;;  %4225 = vmatpush1.bf16.msra.mxu1 %v5866_v55  ;;  %v5883_v62 = vld [vmem:[#allocation15 + $0x34c] ss:$16 sps:$4 sm:$0xff]  }
 0x51a   :  { %v4087_v0 = vadd.f32 %v4086_v60, %v7123_v42  ;;  %v4088_v3 = vpop.f32.mrb[14].mxu1  ;;  %4226 = vmatprep.subr.bf16.mxu1 %v5871_v51  ;;  %v5886_v42 = vld [vmem:[#allocation15 + $0x36c] ss:$16 sps:$4 sm:$0xff]  }
 0x51b   :  { %v4089_v40 = vpop.f32.mrb[15].mxu1 }
 0x51d   :  { %4227 = vmatpush1.bf16.msra.mxu1 %v5869_v63 }
 0x51e   :  { %4228 = vmatprep.subr.bf16.mxu1 %v5874_v4  ;;  %v4313_v4 = vrot.slane %v4296_v24, %v7095_v53 }
 0x521   :  { %4229 = vmatpush1.bf16.msra.mxu1 %v5872_v5 }
 0x522   :  { %4230 = vmatprep.subr.bf16.mxu1 %v5877_v6 }
 0x525   :  { %4231 = vmatpush1.bf16.msra.mxu1 %v5875_v7 }
 0x526   :  { %4232 = vmatprep.subr.bf16.mxu1 %v5880_v61  ;;  %v4340_v61 = vrot.slane %v4327_v29, %v7092_v34 }
 0x529   :  { %4233 = vmatpush1.bf16.msra.mxu1 %v5878_v8 }
 0x52a   :  { %4234 = vmatprep.subr.bf16.mxu1 %v5883_v62  ;;  %v4344_v62 = vrot.slane %v4327_v29, %v7095_v53 }
 0x52d   :  { %4235 = vmatpush1.bf16.msra.mxu1 %v5881_v10 }
 0x52e   :  { %4236 = vmatprep.subr.bf16.mxu1 %v5886_v42 }
 0x531   :  { %4237 = vmatpush1.bf16.msra.mxu1 %v5884_v11 }
 0x532   :  { %4238 = vmatprep.subr.bf16.mxu1 %v5889_v54 }
 0x533   :  { %v4207_v57 = vpop.f32.mrb[8].mxu0 }
 0x534   :  { %v4208_v9 = vadd.f32 %v4207_v57, %v7125_v52  ;;  %v4209_v36 = vpop.f32.mrb[9].mxu0 }
 0x535   :  { %v4210_v14 = vadd.f32 %v4209_v36, %v7127_v56  ;;  %v4211_v44 = vpop.f32.mrb[10].mxu0  ;;  %4239 = vmatpush1.bf16.msra.mxu1 %v5887_v12 }
 0x536   :  { %v4212_v16 = vpop.f32.mrb[11].mxu0  ;;  %4240 = vmatprep.subr.bf16.mxu1 %v5892_v13 }
 0x539   :  { %4241 = vmatpush1.bf16.msra.mxu1 %v5890_v33 }
 0x53a   :  { %4242 = vmatprep.subr.bf16.mxu1 %v5895_v59 }
 0x53d   :  { %4243 = vmatpush1.bf16.msra.mxu1 %v5893_v17 }
 0x53e   :  { %4244 = vmatprep.subr.bf16.mxu1 %v5898_v18 }
 0x541   :  { %4245 = vmatpush1.bf16.msra.mxu1 %v5896_v19 }
 0x544   :  { %4247 = vmatmul.mubr.bf16.vlgmr.msra.gmra.mrb[24].mxu1 %v7118_v25 }
 0x558   :  { %v4125_v52 = vpop.f32.mrb[16].mxu1 }
 0x559   :  { %v4126_v20 = vadd.f32 %v4125_v52, %v4085_v58  ;;  %v4127_v21 = vpop.f32.mrb[17].mxu1 }
 0x55a   :  { %v4128_v56 = vadd.f32 %v4127_v21, %v4087_v0  ;;  %v4129_v22 = vpop.f32.mrb[18].mxu1  ;;  %v4309_v0 = vrot.slane %v4296_v24, %v7092_v34 }
 0x55b   :  { %v4130_v23 = vpop.f32.mrb[19].mxu1 }
 0x5d7   :  { %v4166_v28 = vpop.f32.mrb[20].mxu1  ;;  %v4289_v30 = vpop.f32.mrb[12].mxu0 }
 0x5d8   :  { %v4167_v35 = vadd.f32 %v4166_v28, %v4126_v20  ;;  %v4168_v37 = vpop.f32.mrb[21].mxu1  ;;  %v4291_v38 = vpop.f32.mrb[13].mxu0 }
 0x5d9   :  { %v4169_v39 = vadd.f32 %v4168_v37, %v4128_v56  ;;  %v4170_v41 = vpop.f32.mrb[22].mxu1  ;;  %v4293_v25 = vpop.f32.mrb[14].mxu0 }
 0x5da   :  { %v4318_v43 = vadd.f32 %v4301_v27, %v4167_v35  ;;  %v4171_v32 = vpop.f32.mrb[23].mxu1  ;;  %v4294_v45 = vpop.f32.mrb[15].mxu0 }
 0x5db   :  { %v4319_v46 = vadd.f32 %v4305_v31, %v4169_v39 }
 0x5dc   :  { %v4322_v48 = vmax.f32 %v4318_v43, 0.0 }
 0x5dd   :  { %v4323_v49 = vmax.f32 %v4319_v46, 0.0 }
 0x5de   :  { %v4349_v50 = vmul.f32 %v4332_v1, %v4322_v48 }
 0x5df   :  { %v4350_v55 = vmul.f32 %v4336_v47, %v4323_v49 }
 0x5e0   :  { %v4354_v51 = vsel %vm4353_vm3, %v4349_v50, 0.0 }
 0x5e1   :  { %v4355_v15 = vsel %vm4353_vm3, %v4350_v55, 0.0 }
 0x5e2   :  { %v4356_v58 = vadd.f32 %v4355_v15, %v4354_v51 }
 0x617   :  { %v4248_v60 = vpop.f32.mrb[24].mxu1 }
 0x618   :  { %v4249_v63 = vadd.f32 %v4248_v60, %v4208_v9  ;;  %v4250_v2 = vpop.f32.mrb[25].mxu1 }
 0x619   :  { %v4251_v3 = vadd.f32 %v4250_v2, %v4210_v14  ;;  %v4252_v40 = vpop.f32.mrb[26].mxu1 }
 0x61a   :  { %v4290_v26 = vadd.f32 %v4289_v30, %v4249_v63  ;;  %v4253_v5 = vpop.f32.mrb[27].mxu1 }
 0x61b   :  { %v4292_v6 = vadd.f32 %v4291_v38, %v4251_v3 }
 0x61c   :  { %v4320_v7 = vadd.f32 %v4309_v0, %v4290_v26 }
 0x61d   :  { %v4321_v8 = vadd.f32 %v4313_v4, %v4292_v6 }
 0x61e   :  { %v4324_v10 = vmax.f32 %v4320_v7, 0.0 }
 0x61f   :  { %v4325_v42 = vmax.f32 %v4321_v8, 0.0 }
 0x620   :  { %v4351_v11 = vmul.f32 %v4340_v61, %v4324_v10 }
 0x621   :  { %v4352_v54 = vmul.f32 %v4344_v62, %v4325_v42 }
 0x622   :  { %v4357_v12 = vsel %vm4353_vm3, %v4351_v11, 0.0 }
 0x623   :  { %v4358_v13 = vadd.f32 %v4357_v12, %v4356_v58  ;;  %v4359_v57 = vsel %vm4353_vm3, %v4352_v54, 0.0 }
 0x625   :  { %v4360_v9 = vadd.f32 %v4359_v57, %v4358_v13 }
 0x627   :  { %4361 = vadd.xlane.f32.xlu1 %v4360_v9 }
 0x628   :  { %6474 = shalt.err (!%p6471_p3)
}
 0x629   :  { %s6475_s8 = scalar_lea.hbm %s7180_s11, 192 }
 0x62a   :  { %p6476_p4 = scmp.ne.s32.totalorder %s7180_s11, %s6475_s8  ;;  %p6479_p5 = scmp.lt.u32.totalorder %s6475_s8, %s7180_s11 }
 0x62c   :  { %p6481_p6 = pnand %p6479_p5, %p6476_p4 }
 0x62e   :  { %6484 = shalt.err (!%p6481_p6)
}
 0x62f   :  { %4379 = dma.vmem_to_hbm [thread:$0]  %s4377_s29, 192, %s7180_s11, [#allocation7]   ;;  %vm4366_vm4 = vcmask 1024  }
 0x630   :  { %s7189_s24 = sld [smem:[#allocation58_spill]]  ;;  %s7190_s25 = sld [smem:[#allocation59_spill]] }
 0x636   :  { %v4364_v34 = vstv %s7189_s24 }
 0x6b4   :  { %v4362_v53 = vpop.xlane.xlu1 %4361 }
 0x6b5   :  { %v4365_v36 = vadd.f32 %v4364_v34, %v4362_v53 }
 0x6b7   :  { %4367 = vst.msk [vmem:[%s7190_s25] sm:$0x3] %vm4366_vm4, %v4365_v36 }
 0x6b8   :  { %6527 = dma.done.wait [#allocation7], 192  }
 0x6b9   :  { %6528 = vsyncadd [#allocation7], 4294967104 }
 0x6ba   :  { %4385 = vsyncpa [#allocation6], 1 }
 0x6bb   :  { %4386 = vsyncpa [#allocation11], 1 }
 0x6bc   :  { %4387 = vsyncpa [#allocation14], 1 }
 0x6bd   :  { %4388 = vsyncpa [#allocation17], 1 }
 0x6be   :  { %4389 = vsyncpa [#allocation7], 1 }
 0x6bf   :  { %4390 = vsyncpa [#allocation8], 1 }
 0x6c0   :  { %4391 = vsyncmov [#allocation3] }
 0x6c3   :  { %s4392_s11 = vpop.sfrf %4391 }
 0x6c4   :  { %p5088_p7 = scmp.ne.s32.totalorder %s4392_s11, 0 }
 0x6c6   :  { %4396 = shalt.err (%p5088_p7)  }
 0x6c7   :  { %4398 = vsyncmov [#allocation3 + $0x1] }
 0x6ca   :  { %s4399_s13 = vpop.sfrf %4398 }
 0x6cb   :  { %p5089_p8 = scmp.ne.s32.totalorder %s4399_s13, 0 }
 0x6cd   :  { %4403 = shalt.err (%p5089_p8)  }
 0x6ce   :  { %4405 = vsyncmov [#allocation3 + $0x2] }
 0x6d1   :  { %s4406_s1 = vpop.sfrf %4405 }
 0x6d2   :  { %p5090_p9 = scmp.ne.s32.totalorder %s4406_s1, 0 }
 0x6d4   :  { %4410 = shalt.err (%p5090_p9)  }
 0x6d5   :  { %4412 = vsyncmov [#allocation3 + $0x3] }
 0x6d8   :  { %s4413_s0 = vpop.sfrf %4412 }
 0x6d9   :  { %p5091_p10 = scmp.ne.s32.totalorder %s4413_s0, 0 }
 0x6db   :  { %4417 = shalt.err (%p5091_p10)  }
 0x6dc   :  { %4419 = vsyncmov [#allocation3 + $0x4] }
 0x6df   :  { %s4420_s6 = vpop.sfrf %4419 }
 0x6e0   :  { %p5092_p11 = scmp.ne.s32.totalorder %s4420_s6, 0 }
 0x6e2   :  { %4424 = shalt.err (%p5092_p11)  }
 0x6e3   :  { %4426 = vsyncmov [#allocation3 + $0x5] }
 0x6e6   :  { %s4427_s27 = vpop.sfrf %4426 }
 0x6e7   :  { %p5093_p12 = scmp.ne.s32.totalorder %s4427_s27, 0 }
 0x6e9   :  { %4431 = shalt.err (%p5093_p12)  }
 0x6ea   :  { %4433 = vsyncmov [#allocation3 + $0x6] }
 0x6ed   :  { %s4434_s9 = vpop.sfrf %4433 }
 0x6ee   :  { %p5094_p13 = scmp.ne.s32.totalorder %s4434_s9, 0 }
 0x6f0   :  { %4438 = shalt.err (%p5094_p13)  }
 0x6f1   :  { %4440 = vsyncmov [#allocation3 + $0x7] }
 0x6f4   :  { %s4441_s10 = vpop.sfrf %4440 }
 0x6f5   :  { %p5095_p0 = scmp.ne.s32.totalorder %s4441_s10, 0 }
 0x6f7   :  { %4445 = shalt.err (%p5095_p0)  }
 0x6f8   :  { %4447 = vsyncmov [#allocation3 + $0x8] }
 0x6fb   :  { %s4448_s15 = vpop.sfrf %4447 }
 0x6fc   :  { %p5096_p1 = scmp.ne.s32.totalorder %s4448_s15, 0 }
 0x6fe   :  { %4452 = shalt.err (%p5096_p1)  }
 0x6ff   :  { %4454 = vsyncmov [#allocation3 + $0x9] }
 0x702   :  { %s4455_s26 = vpop.sfrf %4454 }
 0x703   :  { %p5097_p2 = scmp.ne.s32.totalorder %s4455_s26, 0 }
 0x705   :  { %4459 = shalt.err (%p5097_p2)  }
 0x706   :  { %4461 = vsyncmov [#allocation3 + $0xa] }
 0x709   :  { %s4462_s4 = vpop.sfrf %4461 }
 0x70a   :  { %p5098_p3 = scmp.ne.s32.totalorder %s4462_s4, 0 }
 0x70c   :  { %4466 = shalt.err (%p5098_p3)  }
 0x70d   :  { %4468 = vsyncmov [#allocation3 + $0xb] }
 0x710   :  { %s4469_s16 = vpop.sfrf %4468 }
 0x711   :  { %p5099_p4 = scmp.ne.s32.totalorder %s4469_s16, 0 }
 0x713   :  { %4473 = shalt.err (%p5099_p4)  }
 0x714   :  { %4475 = vsyncmov [#allocation3 + $0xc] }
 0x717   :  { %s4476_s20 = vpop.sfrf %4475 }
 0x718   :  { %p5100_p5 = scmp.ne.s32.totalorder %s4476_s20, 0 }
 0x71a   :  { %4480 = shalt.err (%p5100_p5)  }
 0x71b   :  { %4482 = vsyncmov [#allocation3 + $0xd] }
 0x71e   :  { %s4483_s3 = vpop.sfrf %4482 }
 0x71f   :  { %p5101_p6 = scmp.ne.s32.totalorder %s4483_s3, 0 }
 0x721   :  { %4487 = shalt.err (%p5101_p6)  }
 0x722   :  { %4489 = vsyncmov [#allocation3 + $0xe] }
 0x725   :  { %s4490_s29 = vpop.sfrf %4489 }
 0x726   :  { %p5102_p7 = scmp.ne.s32.totalorder %s4490_s29, 0 }
 0x728   :  { %4494 = shalt.err (%p5102_p7)  }
 0x729   :  { %4496 = vsyncmov [#allocation3 + $0xf] }
 0x72c   :  { %s4497_s7 = vpop.sfrf %4496 }
 0x72d   :  { %p5103_p8 = scmp.ne.s32.totalorder %s4497_s7, 0 }
 0x72f   :  { %4501 = shalt.err (%p5103_p8)  }

</bundles_post_ra>
